<compile_context>
chip_gen: v7x
topology: tpu7x:2x2x1
jax: 0.10.0
libtpu: 0.0.40
codegen_flags: <defaults>
</compile_context>

<pallas_src>
import functools

import jax
import jax.numpy as jnp
import numpy as np
from jax.experimental import pallas as pl
from jax.experimental.pallas import tpu as pltpu


def _round_up(x, m):
    return ((x + m - 1) // m) * m


# ---------------------------------------------------------------------------
# Single fused kernel: conv1 -> conv2 -> fc -> LayerNorm -> Q1 / Q2
# ---------------------------------------------------------------------------

def _critic_kernel(b3_ref, p1_ref, act_ref,
                   w1_ref, b1_ref, w2_ref, b2_ref,
                   fcw_ref, fcb_ref, lng_ref, lnb_ref,
                   w1q_ref, b1q_ref, w2q_ref, b2q_ref, w3q_ref,
                   q_ref, c2_scr,
                   *, tile_b, Wo, P_anchor):
    f32 = jnp.float32
    bf16 = jnp.bfloat16

    # ---------------- pixel encoder (all VMEM-resident) ----------------
    w1 = w1_ref[...]            # (F1, K1)  conv1 weight, im2col-flattened
    b1c = b1_ref[...]           # (F1, 1)
    b2c = b2_ref[...]           # (F2, 1)
    F2 = b2c.shape[0]

    for b in range(tile_b):     # static, unrolled loop over the batch tile
        # conv1 (stride 2): one matmul on the im2col patches of image b.
        c1 = jnp.dot(w1, p1_ref[b], preferred_element_type=f32) + b1c
        c1 = jnp.maximum(c1, 0.0).astype(bf16)                       # (F1, P1)

        # conv2 (stride 1): 9 shifted matmuls on the VMEM-resident c1 (no im2col
        # blowup, no HBM round trip).  Output anchored at p0 = y*Wo + x; anchors past
        # the valid window produce finite garbage that the expanded fc weight zeroes.
        acc = jnp.zeros((F2, P_anchor), f32)
        for ky in range(3):
            for kx in range(3):
                s = ky * Wo + kx
                acc = acc + jnp.dot(w2_ref[ky * 3 + kx], c1[:, s:s + P_anchor],
                                    preferred_element_type=f32)
        c2_scr[b] = jnp.maximum(acc + b2c, 0.0).astype(bf16)         # (F2, P_anchor)

    # ---------------- fc: flatten folded into the zero-expanded weight ----------------
    # feat_pre[b, f] = sum_{g, p0} c2[b, g, p0] * fc_w3d[g, p0, f]
    Fdim = fcw_ref.shape[2]
    y = jnp.zeros((tile_b, Fdim), f32)
    for g in range(F2):
        y = y + jnp.dot(c2_scr[:, g, :], fcw_ref[g], preferred_element_type=f32)
    y = y + fcb_ref[...]

    # LayerNorm (eps=1e-5, biased variance; output_logits=True -> no tanh)
    mean = jnp.mean(y, axis=-1, keepdims=True)
    var = jnp.mean((y - mean) ** 2, axis=-1, keepdims=True)
    feat = (y - mean) * jax.lax.rsqrt(var + 1e-5) * lng_ref[...] + lnb_ref[...]

    # ---------------- Q heads ----------------
    # z = concat(feat, action) realized once in VMEM (single K = F+A dot per head);
    # layer 2 is two separate (H, H) matmuls; final H->1 projection on the VPU.
    z = jnp.concatenate([feat, act_ref[...].astype(f32)], axis=-1).astype(bf16)
    qcols = []
    for qi in range(2):
        h1 = jnp.maximum(
            jnp.dot(z, w1q_ref[qi], preferred_element_type=f32) + b1q_ref[qi], 0.0)
        h2 = jnp.maximum(
            jnp.dot(h1.astype(bf16), w2q_ref[qi], preferred_element_type=f32)
            + b2q_ref[qi], 0.0)
        qcols.append(jnp.sum(h2 * w3q_ref[qi], axis=-1, keepdims=True) + b3_ref[qi])
    q_ref[...] = jnp.concatenate(qcols, axis=-1)                     # (tile_b, 2)


# ---------------------------------------------------------------------------
# Pallas wrapper
# ---------------------------------------------------------------------------

def _pick_tile_b(B):
    if B <= 8:
        return B                      # block == full batch (sublane rule satisfied)
    # multiple of 8 (sublane rule for the 2-D action / q blocks); >= 2 grid steps so
    # v7x's second TensorCore gets work; capped to bound unroll + per-step VMEM (v7x).
    return min(16, _round_up(-(-B // 2), 8))


def pallas_critic(p1, action, fp, Wo):
    """p1: (B, K1, P1) bf16 conv1 im2col patches; action: (B, A) f32.  Returns (B, 2)."""
    B, K1, P1 = p1.shape
    A = action.shape[1]
    F1 = fp["conv1_w"].shape[0]
    F2 = fp["conv2_w"].shape[1]
    P_anchor = fp["fc_w"].shape[1]
    Fdim = fp["fc_w"].shape[2]
    Hq = fp["w2q"].shape[-1]

    tile_b = _pick_tile_b(B)
    grid = (pl.cdiv(B, tile_b),)
    kernel = functools.partial(_critic_kernel, tile_b=tile_b, Wo=Wo, P_anchor=P_anchor)

    return pl.pallas_call(
        kernel,
        out_shape=jax.ShapeDtypeStruct((B, 2), jnp.float32),
        grid=grid,
        in_specs=[
            pl.BlockSpec(memory_space=pltpu.MemorySpace.SMEM),            # b3 (2,) scalars
            pl.BlockSpec((tile_b, K1, P1), lambda i: (i, 0, 0)),          # conv1 patches
            pl.BlockSpec((tile_b, A), lambda i: (i, 0)),                  # action
            pl.BlockSpec((F1, K1), lambda i: (0, 0)),                     # conv1 w (F1, C*9)
            pl.BlockSpec((F1, 1), lambda i: (0, 0)),                      # conv1 b
            pl.BlockSpec((9, F2, F1), lambda i: (0, 0, 0)),               # conv2 w per shift
            pl.BlockSpec((F2, 1), lambda i: (0, 0)),                      # conv2 b
            pl.BlockSpec((F2, P_anchor, Fdim), lambda i: (0, 0, 0)),      # fc w (anchor layout)
            pl.BlockSpec((1, Fdim), lambda i: (0, 0)),                    # fc b
            pl.BlockSpec((1, Fdim), lambda i: (0, 0)),                    # ln gamma
            pl.BlockSpec((1, Fdim), lambda i: (0, 0)),                    # ln beta
            pl.BlockSpec((2, Fdim + A, Hq), lambda i: (0, 0, 0)),         # q w1 (stacked)
            pl.BlockSpec((2, 1, Hq), lambda i: (0, 0, 0)),                # q b1
            pl.BlockSpec((2, Hq, Hq), lambda i: (0, 0, 0)),               # q w2
            pl.BlockSpec((2, 1, Hq), lambda i: (0, 0, 0)),                # q b2
            pl.BlockSpec((2, 1, Hq), lambda i: (0, 0, 0)),                # q w3 rows
        ],
        out_specs=pl.BlockSpec((tile_b, 2), lambda i: (i, 0)),
        scratch_shapes=[pltpu.VMEM((tile_b, F2, P_anchor), jnp.bfloat16)],
        compiler_params=pltpu.CompilerParams(dimension_semantics=("parallel",)),
    )(fp["b3"], p1, action, fp["conv1_w"], fp["conv1_b"], fp["conv2_w"], fp["conv2_b"],
      fp["fc_w"], fp["fc_b"], fp["ln_g"], fp["ln_b"],
      fp["w1q"], fp["b1q"], fp["w2q"], fp["b2q"], fp["w3q"])


# ---------------------------------------------------------------------------
# Glue: channel-first im2col for conv1 only (fuses under jit)
# ---------------------------------------------------------------------------

def _im2col_conv1(x, ksize, stride):
    """x: (B, C, H, W) -> (B, C*k*k, Ho*Wo); K index ordered (c, ky, kx) so the OIHW
    conv1 weight maps with a plain reshape."""
    B, C, H, W = x.shape
    Ho = (H - ksize) // stride + 1
    Wo = (W - ksize) // stride + 1
    cols = [x[:, :, ky:ky + stride * Ho:stride, kx:kx + stride * Wo:stride]
            for ky in range(ksize) for kx in range(ksize)]
    p = jnp.stack(cols, axis=2)                       # (B, C, k*k, Ho, Wo)
    return p.reshape(B, C * ksize * ksize, Ho * Wo), Ho, Wo


# ---------------------------------------------------------------------------
# Forward pass
# ---------------------------------------------------------------------------

@functools.partial(jax.jit, static_argnames=("detach_encoder", "detach_mlp"))
def critic_forward_pallas(obs, action, fp, detach_encoder=False, detach_mlp=False):
    """obs: (B, C, H, W) float32 in [0, 255]; action: (B, action_dim)."""
    del detach_encoder, detach_mlp  # gradient-only flags; forward values unchanged
    # TODO(synk): conv1's patch extraction could also move inside the kernel (stride-2
    # slicing on the VMEM obs tile); kept in (jit-fused) XLA glue for robust lowering.
    x = obs.astype(jnp.float32) * (1.0 / 255.0)
    p1, _, Wo = _im2col_conv1(x, 3, 2)
    q = pallas_critic(p1.astype(jnp.bfloat16), action.astype(jnp.float32), fp, Wo)
    return q[:, 0:1], q[:, 1:2]


# ---------------------------------------------------------------------------
# Parameter packing for the fused kernel (done once, outside the forward)
# ---------------------------------------------------------------------------

def prepare_fused_params(params, obs_shape):
    bf = jnp.bfloat16
    f32 = jnp.float32
    _, Himg, Wimg = obs_shape
    F1 = params["conv1_w"].shape[0]
    F2 = params["conv2_w"].shape[0]
    Fdim = params["fc_w"].shape[1]
    Hq = params["q1"]["w1"].shape[1]

    assert params["conv1_w"].shape[2:] == (3, 3) and params["conv2_w"].shape[2:] == (3, 3)
    Ho = (Himg - 3) // 2 + 1
    Wo = (Wimg - 3) // 2 + 1
    H2, W2 = Ho - 2, Wo - 2
    P_anchor = (H2 - 1) * Wo + W2
    assert params["fc_w"].shape[0] == F2 * H2 * W2
    for n in ("w1", "b1", "w2", "b2", "w3", "b3"):
        assert params["q1"][n].shape == params["q2"][n].shape

    # conv2 weight per (ky, kx) shift: (9, F2, F1)
    w2_stack = jnp.transpose(params["conv2_w"], (2, 3, 0, 1)).reshape(9, F2, F1)

    # fc weight expanded to the conv2 "anchor" layout (p0 = y2*Wo + x2), zero at
    # invalid anchors, so the PyTorch (C, H, W) flatten happens for free in-kernel.
    fc_r = params["fc_w"].reshape(F2, H2, W2, Fdim)
    fc_w3d = jnp.zeros((F2, Ho, Wo, Fdim), f32).at[:, :H2, :W2, :].set(fc_r)
    fc_w3d = fc_w3d.reshape(F2, Ho * Wo, Fdim)[:, :P_anchor, :]

    def stack(name):
        return jnp.stack([params["q1"][name], params["q2"][name]], axis=0)

    return {
        "conv1_w": params["conv1_w"].reshape(F1, -1).astype(bf),          # (F1, C*9)
        "conv1_b": params["conv1_b"].reshape(F1, 1).astype(f32),
        "conv2_w": w2_stack.astype(bf),                                   # (9, F2, F1)
        "conv2_b": params["conv2_b"].reshape(F2, 1).astype(f32),
        "fc_w": fc_w3d.astype(bf),                                        # (F2, P_anchor, Fdim)
        "fc_b": params["fc_b"].reshape(1, Fdim).astype(f32),
        "ln_g": params["ln_g"].reshape(1, Fdim).astype(f32),
        "ln_b": params["ln_b"].reshape(1, Fdim).astype(f32),
        "w1q": stack("w1").astype(bf),                                    # (2, Fdim+A, Hq)
        "b1q": stack("b1").reshape(2, 1, Hq).astype(f32),
        "w2q": stack("w2").astype(bf),                                    # (2, Hq, Hq)
        "b2q": stack("b2").reshape(2, 1, Hq).astype(f32),
        "w3q": stack("w3")[..., 0].reshape(2, 1, Hq).astype(f32),         # f32, VPU path
        "b3": jnp.concatenate([params["q1"]["b3"], params["q2"]["b3"]]).astype(f32),
    }


# ---------------------------------------------------------------------------
# Pure-JAX f32 reference for validation
# ---------------------------------------------------------------------------

def critic_forward_reference(obs, action, params):
    hp = jax.lax.Precision.HIGHEST
    x = (obs / 255.0).astype(jnp.float32)
    x = jax.lax.conv_general_dilated(x, params["conv1_w"], (2, 2), "VALID",
                                     dimension_numbers=("NCHW", "OIHW", "NCHW"),
                                     precision=hp)
    x = jax.nn.relu(x + params["conv1_b"][None, :, None, None])
    x = jax.lax.conv_general_dilated(x, params["conv2_w"], (1, 1), "VALID",
                                     dimension_numbers=("NCHW", "OIHW", "NCHW"),
                                     precision=hp)
    x = jax.nn.relu(x + params["conv2_b"][None, :, None, None])
    h = x.reshape(x.shape[0], -1)
    y = jnp.dot(h, params["fc_w"], precision=hp) + params["fc_b"]
    mean = y.mean(-1, keepdims=True)
    var = ((y - mean) ** 2).mean(-1, keepdims=True)
    feat = (y - mean) / jnp.sqrt(var + 1e-5) * params["ln_g"] + params["ln_b"]
    z = jnp.concatenate([feat, action.astype(jnp.float32)], axis=1)

    def q(z, p):
        h1 = jax.nn.relu(jnp.dot(z, p["w1"], precision=hp) + p["b1"])
        h2 = jax.nn.relu(jnp.dot(h1, p["w2"], precision=hp) + p["b2"])
        return jnp.dot(h2, p["w3"], precision=hp) + p["b3"]

    return q(z, params["q1"]), q(z, params["q2"])


# ---------------------------------------------------------------------------
# Deterministic parameter construction (synthetic, not a checkpoint load)
# ---------------------------------------------------------------------------

def make_params(key, obs_shape, action_dim, hidden_dim, feature_dim, num_filters):
    C, H, W = obs_shape
    ks = jax.random.split(key, 16)
    nrm = lambda k, s, scale=0.1: (scale * jax.random.normal(k, s)).astype(jnp.float32)

    h1 = (H - 3) // 2 + 1
    h2 = h1 - 2
    flat = num_filters * h2 * h2

    def q_params(k):
        kk = jax.random.split(k, 6)
        return {
            "w1": nrm(kk[0], (feature_dim + action_dim, hidden_dim)),
            "b1": nrm(kk[1], (hidden_dim,)),
            "w2": nrm(kk[2], (hidden_dim, hidden_dim)),
            "b2": nrm(kk[3], (hidden_dim,)),
            "w3": nrm(kk[4], (hidden_dim, 1)),
            "b3": nrm(kk[5], (1,)),
        }

    return {
        "conv1_w": nrm(ks[0], (num_filters, C, 3, 3)),
        "conv1_b": nrm(ks[1], (num_filters,)),
        "conv2_w": nrm(ks[2], (num_filters, num_filters, 3, 3)),
        "conv2_b": nrm(ks[3], (num_filters,)),
        "fc_w": nrm(ks[4], (flat, feature_dim), 0.02),
        "fc_b": nrm(ks[5], (feature_dim,)),
        "ln_g": jnp.ones((feature_dim,), jnp.float32),   # PyTorch LayerNorm default init
        "ln_b": jnp.zeros((feature_dim,), jnp.float32),
        "q1": q_params(ks[6]),
        "q2": q_params(ks[7]),
    }


# TODO(synk): `make_encoder` source unavailable in the prompt; standard SAC-AE/CURL
# PixelEncoder (as used by agent/sac_aux.py, output_logits=True -> no tanh) is assumed.
# `Critic.log` / `self.outputs` bookkeeping has no compute and is not translated.

if __name__ == "__main__":
    key = jax.random.PRNGKey(0)
    k_obs, k_act, k_par = jax.random.split(key, 3)

    # Small shapes: batch=2, obs (3, 32, 32) "pixels" in [0, 255], action_dim=4,
    # hidden_dim=32, encoder_feature_dim=32, num_layers=2, num_filters=16.
    B = 2
    obs_shape = (3, 32, 32)
    action_dim = 4
    hidden_dim = 32
    feature_dim = 32
    num_filters = 16

    obs = jax.random.uniform(k_obs, (B,) + obs_shape, jnp.float32, 0.0, 255.0)
    action = jax.random.uniform(k_act, (B, action_dim), jnp.float32, -1.0, 1.0)
    params = make_params(k_par, obs_shape, action_dim, hidden_dim, feature_dim, num_filters)
    fused = prepare_fused_params(params, obs_shape)

    q1, q2 = critic_forward_pallas(obs, action, fused)
    q1, q2 = jax.block_until_ready((q1, q2))

    # Reference is full f32 (HIGHEST); the Pallas path feeds the MXU bf16 inputs with
    # f32 accumulation, so tolerance is 2e-2.
    q1_ref, q2_ref = critic_forward_reference(obs, action, params)
    np.testing.assert_allclose(np.asarray(q1), np.asarray(q1_ref), rtol=2e-2, atol=2e-2)
    np.testing.assert_allclose(np.asarray(q2), np.asarray(q2_ref), rtol=2e-2, atol=2e-2)
    assert q1.shape == (B, 1) and q2.shape == (B, 1)

    print("KERNEL_OK")
</pallas_src>

<mosaic_0001>
module attributes {stable_mosaic.version = 11 : i64} {
  func.func @_critic_kernel(%arg0: i32, %arg1: memref<2xf32, #tpu.memory_space<smem>>, %arg2: memref<2x27x225xbf16, #tpu.memory_space<vmem>>, %arg3: memref<2x4xf32, #tpu.memory_space<vmem>>, %arg4: memref<16x27xbf16, #tpu.memory_space<vmem>>, %arg5: memref<16x1xf32, #tpu.memory_space<vmem>>, %arg6: memref<9x16x16xbf16, #tpu.memory_space<vmem>>, %arg7: memref<16x1xf32, #tpu.memory_space<vmem>>, %arg8: memref<16x193x32xbf16, #tpu.memory_space<vmem>>, %arg9: memref<1x32xf32, #tpu.memory_space<vmem>>, %arg10: memref<1x32xf32, #tpu.memory_space<vmem>>, %arg11: memref<1x32xf32, #tpu.memory_space<vmem>>, %arg12: memref<2x36x32xbf16, #tpu.memory_space<vmem>>, %arg13: memref<2x1x32xf32, #tpu.memory_space<vmem>>, %arg14: memref<2x32x32xbf16, #tpu.memory_space<vmem>>, %arg15: memref<2x1x32xf32, #tpu.memory_space<vmem>>, %arg16: memref<2x1x32xf32, #tpu.memory_space<vmem>>, %arg17: memref<2x2xf32, #tpu.memory_space<vmem>>, %arg18: memref<2x16x193xbf16, #tpu.memory_space<vmem>>) attributes {dimension_semantics = [#tpu.dimension_semantics<parallel>], iteration_bounds = array<i64: 1>, scalar_prefetch = 0 : i64, scratch_operands = 1 : i64, tpu.core_type = #tpu.core_type<tc>, window_params = [{transform_indices = @transform_0, window_bounds = array<i64: 2>}, {transform_indices = @transform_1, window_bounds = array<i64: 2, 27, 225>}, {transform_indices = @transform_2, window_bounds = array<i64: 2, 4>}, {pipeline_mode = #tpu.pipeline_mode<synchronous>, transform_indices = @transform_3, window_bounds = array<i64: 16, 27>}, {pipeline_mode = #tpu.pipeline_mode<synchronous>, transform_indices = @transform_4, window_bounds = array<i64: 16, 1>}, {pipeline_mode = #tpu.pipeline_mode<synchronous>, transform_indices = @transform_5, window_bounds = array<i64: 9, 16, 16>}, {pipeline_mode = #tpu.pipeline_mode<synchronous>, transform_indices = @transform_6, window_bounds = array<i64: 16, 1>}, {pipeline_mode = #tpu.pipeline_mode<synchronous>, transform_indices = @transform_7, window_bounds = array<i64: 16, 193, 32>}, {pipeline_mode = #tpu.pipeline_mode<synchronous>, transform_indices = @transform_8, window_bounds = array<i64: 1, 32>}, {pipeline_mode = #tpu.pipeline_mode<synchronous>, transform_indices = @transform_9, window_bounds = array<i64: 1, 32>}, {pipeline_mode = #tpu.pipeline_mode<synchronous>, transform_indices = @transform_10, window_bounds = array<i64: 1, 32>}, {pipeline_mode = #tpu.pipeline_mode<synchronous>, transform_indices = @transform_11, window_bounds = array<i64: 2, 36, 32>}, {pipeline_mode = #tpu.pipeline_mode<synchronous>, transform_indices = @transform_12, window_bounds = array<i64: 2, 1, 32>}, {pipeline_mode = #tpu.pipeline_mode<synchronous>, transform_indices = @transform_13, window_bounds = array<i64: 2, 32, 32>}, {pipeline_mode = #tpu.pipeline_mode<synchronous>, transform_indices = @transform_14, window_bounds = array<i64: 2, 1, 32>}, {pipeline_mode = #tpu.pipeline_mode<synchronous>, transform_indices = @transform_15, window_bounds = array<i64: 2, 1, 32>}, {transform_indices = @transform_16, window_bounds = array<i64: 2, 2>}]} {
    %c0 = arith.constant 0 : index
    %c0_0 = arith.constant 0 : index
    %0 = vector.load %arg4[%c0, %c0_0] : memref<16x27xbf16, #tpu.memory_space<vmem>>, vector<16x27xbf16>
    %c0_1 = arith.constant 0 : index
    %c0_2 = arith.constant 0 : index
    %1 = vector.load %arg5[%c0_1, %c0_2] : memref<16x1xf32, #tpu.memory_space<vmem>>, vector<16x1xf32>
    %c0_3 = arith.constant 0 : index
    %c0_4 = arith.constant 0 : index
    %2 = vector.load %arg7[%c0_3, %c0_4] : memref<16x1xf32, #tpu.memory_space<vmem>>, vector<16x1xf32>
    %c0_5 = arith.constant 0 : index
    %c0_6 = arith.constant 0 : index
    %c0_7 = arith.constant 0 : index
    %3 = vector.load %arg2[%c0_5, %c0_6, %c0_7] : memref<2x27x225xbf16, #tpu.memory_space<vmem>>, vector<1x27x225xbf16>
    %4 = vector.shape_cast %3 : vector<1x27x225xbf16> to vector<27x225xbf16>
    %cst = arith.constant dense<0.000000e+00> : vector<16x225xf32>
    %5 = tpu.matmul %0, %4, %cst {dimension_numbers = #tpu.dot_dimension_numbers<[1], [0], [0], [1], [0, 0, 1, 1], [], []>} : vector<16x27xbf16>, vector<27x225xbf16>, vector<16x225xf32> -> vector<16x225xf32>
    %6 = vector.broadcast %1 : vector<16x1xf32> to vector<16x225xf32>
    %7 = arith.addf %5, %6 : vector<16x225xf32>
    %cst_8 = arith.constant 0.000000e+00 : f32
    %8 = vector.broadcast %cst_8 : f32 to vector<16x225xf32>
    %9 = arith.maximumf %7, %8 : vector<16x225xf32>
    %10 = arith.truncf %9 : vector<16x225xf32> to vector<16x225xbf16>
    %cst_9 = arith.constant 0.000000e+00 : f32
    %11 = vector.broadcast %cst_9 : f32 to vector<16x193xf32>
    %c0_10 = arith.constant 0 : index
    %c0_11 = arith.constant 0 : index
    %c0_12 = arith.constant 0 : index
    %12 = vector.load %arg6[%c0_10, %c0_11, %c0_12] : memref<9x16x16xbf16, #tpu.memory_space<vmem>>, vector<1x16x16xbf16>
    %13 = vector.shape_cast %12 : vector<1x16x16xbf16> to vector<16x16xbf16>
    %14 = vector.extract_strided_slice %10 {offsets = [0, 0], sizes = [16, 193], strides = [1, 1]} : vector<16x225xbf16> to vector<16x193xbf16>
    %cst_13 = arith.constant dense<0.000000e+00> : vector<16x193xf32>
    %15 = tpu.matmul %13, %14, %cst_13 {dimension_numbers = #tpu.dot_dimension_numbers<[1], [0], [0], [1], [0, 0, 1, 1], [], []>} : vector<16x16xbf16>, vector<16x193xbf16>, vector<16x193xf32> -> vector<16x193xf32>
    %16 = arith.addf %11, %15 : vector<16x193xf32>
    %c1 = arith.constant 1 : index
    %c0_14 = arith.constant 0 : index
    %c0_15 = arith.constant 0 : index
    %17 = vector.load %arg6[%c1, %c0_14, %c0_15] : memref<9x16x16xbf16, #tpu.memory_space<vmem>>, vector<1x16x16xbf16>
    %18 = vector.shape_cast %17 : vector<1x16x16xbf16> to vector<16x16xbf16>
    %19 = vector.extract_strided_slice %10 {offsets = [0, 1], sizes = [16, 193], strides = [1, 1]} : vector<16x225xbf16> to vector<16x193xbf16>
    %cst_16 = arith.constant dense<0.000000e+00> : vector<16x193xf32>
    %20 = tpu.matmul %18, %19, %cst_16 {dimension_numbers = #tpu.dot_dimension_numbers<[1], [0], [0], [1], [0, 0, 1, 1], [], []>} : vector<16x16xbf16>, vector<16x193xbf16>, vector<16x193xf32> -> vector<16x193xf32>
    %21 = arith.addf %16, %20 : vector<16x193xf32>
    %c2 = arith.constant 2 : index
    %c0_17 = arith.constant 0 : index
    %c0_18 = arith.constant 0 : index
    %22 = vector.load %arg6[%c2, %c0_17, %c0_18] : memref<9x16x16xbf16, #tpu.memory_space<vmem>>, vector<1x16x16xbf16>
    %23 = vector.shape_cast %22 : vector<1x16x16xbf16> to vector<16x16xbf16>
    %24 = vector.extract_strided_slice %10 {offsets = [0, 2], sizes = [16, 193], strides = [1, 1]} : vector<16x225xbf16> to vector<16x193xbf16>
    %cst_19 = arith.constant dense<0.000000e+00> : vector<16x193xf32>
    %25 = tpu.matmul %23, %24, %cst_19 {dimension_numbers = #tpu.dot_dimension_numbers<[1], [0], [0], [1], [0, 0, 1, 1], [], []>} : vector<16x16xbf16>, vector<16x193xbf16>, vector<16x193xf32> -> vector<16x193xf32>
    %26 = arith.addf %21, %25 : vector<16x193xf32>
    %c3 = arith.constant 3 : index
    %c0_20 = arith.constant 0 : index
    %c0_21 = arith.constant 0 : index
    %27 = vector.load %arg6[%c3, %c0_20, %c0_21] : memref<9x16x16xbf16, #tpu.memory_space<vmem>>, vector<1x16x16xbf16>
    %28 = vector.shape_cast %27 : vector<1x16x16xbf16> to vector<16x16xbf16>
    %29 = vector.extract_strided_slice %10 {offsets = [0, 15], sizes = [16, 193], strides = [1, 1]} : vector<16x225xbf16> to vector<16x193xbf16>
    %cst_22 = arith.constant dense<0.000000e+00> : vector<16x193xf32>
    %30 = tpu.matmul %28, %29, %cst_22 {dimension_numbers = #tpu.dot_dimension_numbers<[1], [0], [0], [1], [0, 0, 1, 1], [], []>} : vector<16x16xbf16>, vector<16x193xbf16>, vector<16x193xf32> -> vector<16x193xf32>
    %31 = arith.addf %26, %30 : vector<16x193xf32>
    %c4 = arith.constant 4 : index
    %c0_23 = arith.constant 0 : index
    %c0_24 = arith.constant 0 : index
    %32 = vector.load %arg6[%c4, %c0_23, %c0_24] : memref<9x16x16xbf16, #tpu.memory_space<vmem>>, vector<1x16x16xbf16>
    %33 = vector.shape_cast %32 : vector<1x16x16xbf16> to vector<16x16xbf16>
    %34 = vector.extract_strided_slice %10 {offsets = [0, 16], sizes = [16, 193], strides = [1, 1]} : vector<16x225xbf16> to vector<16x193xbf16>
    %cst_25 = arith.constant dense<0.000000e+00> : vector<16x193xf32>
    %35 = tpu.matmul %33, %34, %cst_25 {dimension_numbers = #tpu.dot_dimension_numbers<[1], [0], [0], [1], [0, 0, 1, 1], [], []>} : vector<16x16xbf16>, vector<16x193xbf16>, vector<16x193xf32> -> vector<16x193xf32>
    %36 = arith.addf %31, %35 : vector<16x193xf32>
    %c5 = arith.constant 5 : index
    %c0_26 = arith.constant 0 : index
    %c0_27 = arith.constant 0 : index
    %37 = vector.load %arg6[%c5, %c0_26, %c0_27] : memref<9x16x16xbf16, #tpu.memory_space<vmem>>, vector<1x16x16xbf16>
    %38 = vector.shape_cast %37 : vector<1x16x16xbf16> to vector<16x16xbf16>
    %39 = vector.extract_strided_slice %10 {offsets = [0, 17], sizes = [16, 193], strides = [1, 1]} : vector<16x225xbf16> to vector<16x193xbf16>
    %cst_28 = arith.constant dense<0.000000e+00> : vector<16x193xf32>
    %40 = tpu.matmul %38, %39, %cst_28 {dimension_numbers = #tpu.dot_dimension_numbers<[1], [0], [0], [1], [0, 0, 1, 1], [], []>} : vector<16x16xbf16>, vector<16x193xbf16>, vector<16x193xf32> -> vector<16x193xf32>
    %41 = arith.addf %36, %40 : vector<16x193xf32>
    %c6 = arith.constant 6 : index
    %c0_29 = arith.constant 0 : index
    %c0_30 = arith.constant 0 : index
    %42 = vector.load %arg6[%c6, %c0_29, %c0_30] : memref<9x16x16xbf16, #tpu.memory_space<vmem>>, vector<1x16x16xbf16>
    %43 = vector.shape_cast %42 : vector<1x16x16xbf16> to vector<16x16xbf16>
    %44 = vector.extract_strided_slice %10 {offsets = [0, 30], sizes = [16, 193], strides = [1, 1]} : vector<16x225xbf16> to vector<16x193xbf16>
    %cst_31 = arith.constant dense<0.000000e+00> : vector<16x193xf32>
    %45 = tpu.matmul %43, %44, %cst_31 {dimension_numbers = #tpu.dot_dimension_numbers<[1], [0], [0], [1], [0, 0, 1, 1], [], []>} : vector<16x16xbf16>, vector<16x193xbf16>, vector<16x193xf32> -> vector<16x193xf32>
    %46 = arith.addf %41, %45 : vector<16x193xf32>
    %c7 = arith.constant 7 : index
    %c0_32 = arith.constant 0 : index
    %c0_33 = arith.constant 0 : index
    %47 = vector.load %arg6[%c7, %c0_32, %c0_33] : memref<9x16x16xbf16, #tpu.memory_space<vmem>>, vector<1x16x16xbf16>
    %48 = vector.shape_cast %47 : vector<1x16x16xbf16> to vector<16x16xbf16>
    %49 = vector.extract_strided_slice %10 {offsets = [0, 31], sizes = [16, 193], strides = [1, 1]} : vector<16x225xbf16> to vector<16x193xbf16>
    %cst_34 = arith.constant dense<0.000000e+00> : vector<16x193xf32>
    %50 = tpu.matmul %48, %49, %cst_34 {dimension_numbers = #tpu.dot_dimension_numbers<[1], [0], [0], [1], [0, 0, 1, 1], [], []>} : vector<16x16xbf16>, vector<16x193xbf16>, vector<16x193xf32> -> vector<16x193xf32>
    %51 = arith.addf %46, %50 : vector<16x193xf32>
    %c8 = arith.constant 8 : index
    %c0_35 = arith.constant 0 : index
    %c0_36 = arith.constant 0 : index
    %52 = vector.load %arg6[%c8, %c0_35, %c0_36] : memref<9x16x16xbf16, #tpu.memory_space<vmem>>, vector<1x16x16xbf16>
    %53 = vector.shape_cast %52 : vector<1x16x16xbf16> to vector<16x16xbf16>
    %54 = vector.extract_strided_slice %10 {offsets = [0, 32], sizes = [16, 193], strides = [1, 1]} : vector<16x225xbf16> to vector<16x193xbf16>
    %cst_37 = arith.constant dense<0.000000e+00> : vector<16x193xf32>
    %55 = tpu.matmul %53, %54, %cst_37 {dimension_numbers = #tpu.dot_dimension_numbers<[1], [0], [0], [1], [0, 0, 1, 1], [], []>} : vector<16x16xbf16>, vector<16x193xbf16>, vector<16x193xf32> -> vector<16x193xf32>
    %56 = arith.addf %51, %55 : vector<16x193xf32>
    %57 = vector.broadcast %2 : vector<16x1xf32> to vector<16x193xf32>
    %58 = arith.addf %56, %57 : vector<16x193xf32>
    %cst_38 = arith.constant 0.000000e+00 : f32
    %59 = vector.broadcast %cst_38 : f32 to vector<16x193xf32>
    %60 = arith.maximumf %58, %59 : vector<16x193xf32>
    %61 = arith.truncf %60 : vector<16x193xf32> to vector<16x193xbf16>
    %c0_39 = arith.constant 0 : index
    %c0_40 = arith.constant 0 : index
    %c0_41 = arith.constant 0 : index
    %62 = vector.load %arg18[%c0_39, %c0_40, %c0_41] : memref<2x16x193xbf16, #tpu.memory_space<vmem>>, vector<1x16x193xbf16>
    %63 = vector.shape_cast %62 : vector<1x16x193xbf16> to vector<16x193xbf16>
    %64 = vector.shape_cast %61 : vector<16x193xbf16> to vector<1x16x193xbf16>
    tpu.vector_store %arg18[%c0_39, %c0_40, %c0_41], %64 {strides = array<i32>} : memref<2x16x193xbf16, #tpu.memory_space<vmem>>, vector<1x16x193xbf16>,
    %c1_42 = arith.constant 1 : index
    %c0_43 = arith.constant 0 : index
    %c0_44 = arith.constant 0 : index
    %65 = vector.load %arg2[%c1_42, %c0_43, %c0_44] : memref<2x27x225xbf16, #tpu.memory_space<vmem>>, vector<1x27x225xbf16>
    %66 = vector.shape_cast %65 : vector<1x27x225xbf16> to vector<27x225xbf16>
    %cst_45 = arith.constant dense<0.000000e+00> : vector<16x225xf32>
    %67 = tpu.matmul %0, %66, %cst_45 {dimension_numbers = #tpu.dot_dimension_numbers<[1], [0], [0], [1], [0, 0, 1, 1], [], []>} : vector<16x27xbf16>, vector<27x225xbf16>, vector<16x225xf32> -> vector<16x225xf32>
    %68 = vector.broadcast %1 : vector<16x1xf32> to vector<16x225xf32>
    %69 = arith.addf %67, %68 : vector<16x225xf32>
    %cst_46 = arith.constant 0.000000e+00 : f32
    %70 = vector.broadcast %cst_46 : f32 to vector<16x225xf32>
    %71 = arith.maximumf %69, %70 : vector<16x225xf32>
    %72 = arith.truncf %71 : vector<16x225xf32> to vector<16x225xbf16>
    %cst_47 = arith.constant 0.000000e+00 : f32
    %73 = vector.broadcast %cst_47 : f32 to vector<16x193xf32>
    %c0_48 = arith.constant 0 : index
    %c0_49 = arith.constant 0 : index
    %c0_50 = arith.constant 0 : index
    %74 = vector.load %arg6[%c0_48, %c0_49, %c0_50] : memref<9x16x16xbf16, #tpu.memory_space<vmem>>, vector<1x16x16xbf16>
    %75 = vector.shape_cast %74 : vector<1x16x16xbf16> to vector<16x16xbf16>
    %76 = vector.extract_strided_slice %72 {offsets = [0, 0], sizes = [16, 193], strides = [1, 1]} : vector<16x225xbf16> to vector<16x193xbf16>
    %cst_51 = arith.constant dense<0.000000e+00> : vector<16x193xf32>
    %77 = tpu.matmul %75, %76, %cst_51 {dimension_numbers = #tpu.dot_dimension_numbers<[1], [0], [0], [1], [0, 0, 1, 1], [], []>} : vector<16x16xbf16>, vector<16x193xbf16>, vector<16x193xf32> -> vector<16x193xf32>
    %78 = arith.addf %73, %77 : vector<16x193xf32>
    %c1_52 = arith.constant 1 : index
    %c0_53 = arith.constant 0 : index
    %c0_54 = arith.constant 0 : index
    %79 = vector.load %arg6[%c1_52, %c0_53, %c0_54] : memref<9x16x16xbf16, #tpu.memory_space<vmem>>, vector<1x16x16xbf16>
    %80 = vector.shape_cast %79 : vector<1x16x16xbf16> to vector<16x16xbf16>
    %81 = vector.extract_strided_slice %72 {offsets = [0, 1], sizes = [16, 193], strides = [1, 1]} : vector<16x225xbf16> to vector<16x193xbf16>
    %cst_55 = arith.constant dense<0.000000e+00> : vector<16x193xf32>
    %82 = tpu.matmul %80, %81, %cst_55 {dimension_numbers = #tpu.dot_dimension_numbers<[1], [0], [0], [1], [0, 0, 1, 1], [], []>} : vector<16x16xbf16>, vector<16x193xbf16>, vector<16x193xf32> -> vector<16x193xf32>
    %83 = arith.addf %78, %82 : vector<16x193xf32>
    %c2_56 = arith.constant 2 : index
    %c0_57 = arith.constant 0 : index
    %c0_58 = arith.constant 0 : index
    %84 = vector.load %arg6[%c2_56, %c0_57, %c0_58] : memref<9x16x16xbf16, #tpu.memory_space<vmem>>, vector<1x16x16xbf16>
    %85 = vector.shape_cast %84 : vector<1x16x16xbf16> to vector<16x16xbf16>
    %86 = vector.extract_strided_slice %72 {offsets = [0, 2], sizes = [16, 193], strides = [1, 1]} : vector<16x225xbf16> to vector<16x193xbf16>
    %cst_59 = arith.constant dense<0.000000e+00> : vector<16x193xf32>
    %87 = tpu.matmul %85, %86, %cst_59 {dimension_numbers = #tpu.dot_dimension_numbers<[1], [0], [0], [1], [0, 0, 1, 1], [], []>} : vector<16x16xbf16>, vector<16x193xbf16>, vector<16x193xf32> -> vector<16x193xf32>
    %88 = arith.addf %83, %87 : vector<16x193xf32>
    %c3_60 = arith.constant 3 : index
    %c0_61 = arith.constant 0 : index
    %c0_62 = arith.constant 0 : index
    %89 = vector.load %arg6[%c3_60, %c0_61, %c0_62] : memref<9x16x16xbf16, #tpu.memory_space<vmem>>, vector<1x16x16xbf16>
    %90 = vector.shape_cast %89 : vector<1x16x16xbf16> to vector<16x16xbf16>
    %91 = vector.extract_strided_slice %72 {offsets = [0, 15], sizes = [16, 193], strides = [1, 1]} : vector<16x225xbf16> to vector<16x193xbf16>
    %cst_63 = arith.constant dense<0.000000e+00> : vector<16x193xf32>
    %92 = tpu.matmul %90, %91, %cst_63 {dimension_numbers = #tpu.dot_dimension_numbers<[1], [0], [0], [1], [0, 0, 1, 1], [], []>} : vector<16x16xbf16>, vector<16x193xbf16>, vector<16x193xf32> -> vector<16x193xf32>
    %93 = arith.addf %88, %92 : vector<16x193xf32>
    %c4_64 = arith.constant 4 : index
    %c0_65 = arith.constant 0 : index
    %c0_66 = arith.constant 0 : index
    %94 = vector.load %arg6[%c4_64, %c0_65, %c0_66] : memref<9x16x16xbf16, #tpu.memory_space<vmem>>, vector<1x16x16xbf16>
    %95 = vector.shape_cast %94 : vector<1x16x16xbf16> to vector<16x16xbf16>
    %96 = vector.extract_strided_slice %72 {offsets = [0, 16], sizes = [16, 193], strides = [1, 1]} : vector<16x225xbf16> to vector<16x193xbf16>
    %cst_67 = arith.constant dense<0.000000e+00> : vector<16x193xf32>
    %97 = tpu.matmul %95, %96, %cst_67 {dimension_numbers = #tpu.dot_dimension_numbers<[1], [0], [0], [1], [0, 0, 1, 1], [], []>} : vector<16x16xbf16>, vector<16x193xbf16>, vector<16x193xf32> -> vector<16x193xf32>
    %98 = arith.addf %93, %97 : vector<16x193xf32>
    %c5_68 = arith.constant 5 : index
    %c0_69 = arith.constant 0 : index
    %c0_70 = arith.constant 0 : index
    %99 = vector.load %arg6[%c5_68, %c0_69, %c0_70] : memref<9x16x16xbf16, #tpu.memory_space<vmem>>, vector<1x16x16xbf16>
    %100 = vector.shape_cast %99 : vector<1x16x16xbf16> to vector<16x16xbf16>
    %101 = vector.extract_strided_slice %72 {offsets = [0, 17], sizes = [16, 193], strides = [1, 1]} : vector<16x225xbf16> to vector<16x193xbf16>
    %cst_71 = arith.constant dense<0.000000e+00> : vector<16x193xf32>
    %102 = tpu.matmul %100, %101, %cst_71 {dimension_numbers = #tpu.dot_dimension_numbers<[1], [0], [0], [1], [0, 0, 1, 1], [], []>} : vector<16x16xbf16>, vector<16x193xbf16>, vector<16x193xf32> -> vector<16x193xf32>
    %103 = arith.addf %98, %102 : vector<16x193xf32>
    %c6_72 = arith.constant 6 : index
    %c0_73 = arith.constant 0 : index
    %c0_74 = arith.constant 0 : index
    %104 = vector.load %arg6[%c6_72, %c0_73, %c0_74] : memref<9x16x16xbf16, #tpu.memory_space<vmem>>, vector<1x16x16xbf16>
    %105 = vector.shape_cast %104 : vector<1x16x16xbf16> to vector<16x16xbf16>
    %106 = vector.extract_strided_slice %72 {offsets = [0, 30], sizes = [16, 193], strides = [1, 1]} : vector<16x225xbf16> to vector<16x193xbf16>
    %cst_75 = arith.constant dense<0.000000e+00> : vector<16x193xf32>
    %107 = tpu.matmul %105, %106, %cst_75 {dimension_numbers = #tpu.dot_dimension_numbers<[1], [0], [0], [1], [0, 0, 1, 1], [], []>} : vector<16x16xbf16>, vector<16x193xbf16>, vector<16x193xf32> -> vector<16x193xf32>
    %108 = arith.addf %103, %107 : vector<16x193xf32>
    %c7_76 = arith.constant 7 : index
    %c0_77 = arith.constant 0 : index
    %c0_78 = arith.constant 0 : index
    %109 = vector.load %arg6[%c7_76, %c0_77, %c0_78] : memref<9x16x16xbf16, #tpu.memory_space<vmem>>, vector<1x16x16xbf16>
    %110 = vector.shape_cast %109 : vector<1x16x16xbf16> to vector<16x16xbf16>
    %111 = vector.extract_strided_slice %72 {offsets = [0, 31], sizes = [16, 193], strides = [1, 1]} : vector<16x225xbf16> to vector<16x193xbf16>
    %cst_79 = arith.constant dense<0.000000e+00> : vector<16x193xf32>
    %112 = tpu.matmul %110, %111, %cst_79 {dimension_numbers = #tpu.dot_dimension_numbers<[1], [0], [0], [1], [0, 0, 1, 1], [], []>} : vector<16x16xbf16>, vector<16x193xbf16>, vector<16x193xf32> -> vector<16x193xf32>
    %113 = arith.addf %108, %112 : vector<16x193xf32>
    %c8_80 = arith.constant 8 : index
    %c0_81 = arith.constant 0 : index
    %c0_82 = arith.constant 0 : index
    %114 = vector.load %arg6[%c8_80, %c0_81, %c0_82] : memref<9x16x16xbf16, #tpu.memory_space<vmem>>, vector<1x16x16xbf16>
    %115 = vector.shape_cast %114 : vector<1x16x16xbf16> to vector<16x16xbf16>
    %116 = vector.extract_strided_slice %72 {offsets = [0, 32], sizes = [16, 193], strides = [1, 1]} : vector<16x225xbf16> to vector<16x193xbf16>
    %cst_83 = arith.constant dense<0.000000e+00> : vector<16x193xf32>
    %117 = tpu.matmul %115, %116, %cst_83 {dimension_numbers = #tpu.dot_dimension_numbers<[1], [0], [0], [1], [0, 0, 1, 1], [], []>} : vector<16x16xbf16>, vector<16x193xbf16>, vector<16x193xf32> -> vector<16x193xf32>
    %118 = arith.addf %113, %117 : vector<16x193xf32>
    %119 = vector.broadcast %2 : vector<16x1xf32> to vector<16x193xf32>
    %120 = arith.addf %118, %119 : vector<16x193xf32>
    %cst_84 = arith.constant 0.000000e+00 : f32
    %121 = vector.broadcast %cst_84 : f32 to vector<16x193xf32>
    %122 = arith.maximumf %120, %121 : vector<16x193xf32>
    %123 = arith.truncf %122 : vector<16x193xf32> to vector<16x193xbf16>
    %c1_85 = arith.constant 1 : index
    %c0_86 = arith.constant 0 : index
    %c0_87 = arith.constant 0 : index
    %124 = vector.load %arg18[%c1_85, %c0_86, %c0_87] : memref<2x16x193xbf16, #tpu.memory_space<vmem>>, vector<1x16x193xbf16>
    %125 = vector.shape_cast %124 : vector<1x16x193xbf16> to vector<16x193xbf16>
    %126 = vector.shape_cast %123 : vector<16x193xbf16> to vector<1x16x193xbf16>
    tpu.vector_store %arg18[%c1_85, %c0_86, %c0_87], %126 {strides = array<i32>} : memref<2x16x193xbf16, #tpu.memory_space<vmem>>, vector<1x16x193xbf16>,
    %cst_88 = arith.constant 0.000000e+00 : f32
    %127 = vector.broadcast %cst_88 : f32 to vector<2x32xf32>
    %c0_89 = arith.constant 0 : index
    %c0_90 = arith.constant 0 : index
    %c0_91 = arith.constant 0 : index
    %128 = vector.load %arg18[%c0_89, %c0_90, %c0_91] : memref<2x16x193xbf16, #tpu.memory_space<vmem>>, vector<2x1x193xbf16>
    %129 = vector.shape_cast %128 : vector<2x1x193xbf16> to vector<2x193xbf16>
    %c0_92 = arith.constant 0 : index
    %c0_93 = arith.constant 0 : index
    %c0_94 = arith.constant 0 : index
    %130 = vector.load %arg8[%c0_92, %c0_93, %c0_94] : memref<16x193x32xbf16, #tpu.memory_space<vmem>>, vector<1x193x32xbf16>
    %131 = vector.shape_cast %130 : vector<1x193x32xbf16> to vector<193x32xbf16>
    %cst_95 = arith.constant dense<0.000000e+00> : vector<2x32xf32>
    %132 = tpu.matmul %129, %131, %cst_95 {dimension_numbers = #tpu.dot_dimension_numbers<[1], [0], [0], [1], [0, 0, 1, 1], [], []>} : vector<2x193xbf16>, vector<193x32xbf16>, vector<2x32xf32> -> vector<2x32xf32>
    %133 = arith.addf %127, %132 : vector<2x32xf32>
    %c0_96 = arith.constant 0 : index
    %c1_97 = arith.constant 1 : index
    %c0_98 = arith.constant 0 : index
    %134 = vector.load %arg18[%c0_96, %c1_97, %c0_98] : memref<2x16x193xbf16, #tpu.memory_space<vmem>>, vector<2x1x193xbf16>
    %135 = vector.shape_cast %134 : vector<2x1x193xbf16> to vector<2x193xbf16>
    %c1_99 = arith.constant 1 : index
    %c0_100 = arith.constant 0 : index
    %c0_101 = arith.constant 0 : index
    %136 = vector.load %arg8[%c1_99, %c0_100, %c0_101] : memref<16x193x32xbf16, #tpu.memory_space<vmem>>, vector<1x193x32xbf16>
    %137 = vector.shape_cast %136 : vector<1x193x32xbf16> to vector<193x32xbf16>
    %cst_102 = arith.constant dense<0.000000e+00> : vector<2x32xf32>
    %138 = tpu.matmul %135, %137, %cst_102 {dimension_numbers = #tpu.dot_dimension_numbers<[1], [0], [0], [1], [0, 0, 1, 1], [], []>} : vector<2x193xbf16>, vector<193x32xbf16>, vector<2x32xf32> -> vector<2x32xf32>
    %139 = arith.addf %133, %138 : vector<2x32xf32>
    %c0_103 = arith.constant 0 : index
    %c2_104 = arith.constant 2 : index
    %c0_105 = arith.constant 0 : index
    %140 = vector.load %arg18[%c0_103, %c2_104, %c0_105] : memref<2x16x193xbf16, #tpu.memory_space<vmem>>, vector<2x1x193xbf16>
    %141 = vector.shape_cast %140 : vector<2x1x193xbf16> to vector<2x193xbf16>
    %c2_106 = arith.constant 2 : index
    %c0_107 = arith.constant 0 : index
    %c0_108 = arith.constant 0 : index
    %142 = vector.load %arg8[%c2_106, %c0_107, %c0_108] : memref<16x193x32xbf16, #tpu.memory_space<vmem>>, vector<1x193x32xbf16>
    %143 = vector.shape_cast %142 : vector<1x193x32xbf16> to vector<193x32xbf16>
    %cst_109 = arith.constant dense<0.000000e+00> : vector<2x32xf32>
    %144 = tpu.matmul %141, %143, %cst_109 {dimension_numbers = #tpu.dot_dimension_numbers<[1], [0], [0], [1], [0, 0, 1, 1], [], []>} : vector<2x193xbf16>, vector<193x32xbf16>, vector<2x32xf32> -> vector<2x32xf32>
    %145 = arith.addf %139, %144 : vector<2x32xf32>
    %c0_110 = arith.constant 0 : index
    %c3_111 = arith.constant 3 : index
    %c0_112 = arith.constant 0 : index
    %146 = vector.load %arg18[%c0_110, %c3_111, %c0_112] : memref<2x16x193xbf16, #tpu.memory_space<vmem>>, vector<2x1x193xbf16>
    %147 = vector.shape_cast %146 : vector<2x1x193xbf16> to vector<2x193xbf16>
    %c3_113 = arith.constant 3 : index
    %c0_114 = arith.constant 0 : index
    %c0_115 = arith.constant 0 : index
    %148 = vector.load %arg8[%c3_113, %c0_114, %c0_115] : memref<16x193x32xbf16, #tpu.memory_space<vmem>>, vector<1x193x32xbf16>
    %149 = vector.shape_cast %148 : vector<1x193x32xbf16> to vector<193x32xbf16>
    %cst_116 = arith.constant dense<0.000000e+00> : vector<2x32xf32>
    %150 = tpu.matmul %147, %149, %cst_116 {dimension_numbers = #tpu.dot_dimension_numbers<[1], [0], [0], [1], [0, 0, 1, 1], [], []>} : vector<2x193xbf16>, vector<193x32xbf16>, vector<2x32xf32> -> vector<2x32xf32>
    %151 = arith.addf %145, %150 : vector<2x32xf32>
    %c0_117 = arith.constant 0 : index
    %c4_118 = arith.constant 4 : index
    %c0_119 = arith.constant 0 : index
    %152 = vector.load %arg18[%c0_117, %c4_118, %c0_119] : memref<2x16x193xbf16, #tpu.memory_space<vmem>>, vector<2x1x193xbf16>
    %153 = vector.shape_cast %152 : vector<2x1x193xbf16> to vector<2x193xbf16>
    %c4_120 = arith.constant 4 : index
    %c0_121 = arith.constant 0 : index
    %c0_122 = arith.constant 0 : index
    %154 = vector.load %arg8[%c4_120, %c0_121, %c0_122] : memref<16x193x32xbf16, #tpu.memory_space<vmem>>, vector<1x193x32xbf16>
    %155 = vector.shape_cast %154 : vector<1x193x32xbf16> to vector<193x32xbf16>
    %cst_123 = arith.constant dense<0.000000e+00> : vector<2x32xf32>
    %156 = tpu.matmul %153, %155, %cst_123 {dimension_numbers = #tpu.dot_dimension_numbers<[1], [0], [0], [1], [0, 0, 1, 1], [], []>} : vector<2x193xbf16>, vector<193x32xbf16>, vector<2x32xf32> -> vector<2x32xf32>
    %157 = arith.addf %151, %156 : vector<2x32xf32>
    %c0_124 = arith.constant 0 : index
    %c5_125 = arith.constant 5 : index
    %c0_126 = arith.constant 0 : index
    %158 = vector.load %arg18[%c0_124, %c5_125, %c0_126] : memref<2x16x193xbf16, #tpu.memory_space<vmem>>, vector<2x1x193xbf16>
    %159 = vector.shape_cast %158 : vector<2x1x193xbf16> to vector<2x193xbf16>
    %c5_127 = arith.constant 5 : index
    %c0_128 = arith.constant 0 : index
    %c0_129 = arith.constant 0 : index
    %160 = vector.load %arg8[%c5_127, %c0_128, %c0_129] : memref<16x193x32xbf16, #tpu.memory_space<vmem>>, vector<1x193x32xbf16>
    %161 = vector.shape_cast %160 : vector<1x193x32xbf16> to vector<193x32xbf16>
    %cst_130 = arith.constant dense<0.000000e+00> : vector<2x32xf32>
    %162 = tpu.matmul %159, %161, %cst_130 {dimension_numbers = #tpu.dot_dimension_numbers<[1], [0], [0], [1], [0, 0, 1, 1], [], []>} : vector<2x193xbf16>, vector<193x32xbf16>, vector<2x32xf32> -> vector<2x32xf32>
    %163 = arith.addf %157, %162 : vector<2x32xf32>
    %c0_131 = arith.constant 0 : index
    %c6_132 = arith.constant 6 : index
    %c0_133 = arith.constant 0 : index
    %164 = vector.load %arg18[%c0_131, %c6_132, %c0_133] : memref<2x16x193xbf16, #tpu.memory_space<vmem>>, vector<2x1x193xbf16>
    %165 = vector.shape_cast %164 : vector<2x1x193xbf16> to vector<2x193xbf16>
    %c6_134 = arith.constant 6 : index
    %c0_135 = arith.constant 0 : index
    %c0_136 = arith.constant 0 : index
    %166 = vector.load %arg8[%c6_134, %c0_135, %c0_136] : memref<16x193x32xbf16, #tpu.memory_space<vmem>>, vector<1x193x32xbf16>
    %167 = vector.shape_cast %166 : vector<1x193x32xbf16> to vector<193x32xbf16>
    %cst_137 = arith.constant dense<0.000000e+00> : vector<2x32xf32>
    %168 = tpu.matmul %165, %167, %cst_137 {dimension_numbers = #tpu.dot_dimension_numbers<[1], [0], [0], [1], [0, 0, 1, 1], [], []>} : vector<2x193xbf16>, vector<193x32xbf16>, vector<2x32xf32> -> vector<2x32xf32>
    %169 = arith.addf %163, %168 : vector<2x32xf32>
    %c0_138 = arith.constant 0 : index
    %c7_139 = arith.constant 7 : index
    %c0_140 = arith.constant 0 : index
    %170 = vector.load %arg18[%c0_138, %c7_139, %c0_140] : memref<2x16x193xbf16, #tpu.memory_space<vmem>>, vector<2x1x193xbf16>
    %171 = vector.shape_cast %170 : vector<2x1x193xbf16> to vector<2x193xbf16>
    %c7_141 = arith.constant 7 : index
    %c0_142 = arith.constant 0 : index
    %c0_143 = arith.constant 0 : index
    %172 = vector.load %arg8[%c7_141, %c0_142, %c0_143] : memref<16x193x32xbf16, #tpu.memory_space<vmem>>, vector<1x193x32xbf16>
    %173 = vector.shape_cast %172 : vector<1x193x32xbf16> to vector<193x32xbf16>
    %cst_144 = arith.constant dense<0.000000e+00> : vector<2x32xf32>
    %174 = tpu.matmul %171, %173, %cst_144 {dimension_numbers = #tpu.dot_dimension_numbers<[1], [0], [0], [1], [0, 0, 1, 1], [], []>} : vector<2x193xbf16>, vector<193x32xbf16>, vector<2x32xf32> -> vector<2x32xf32>
    %175 = arith.addf %169, %174 : vector<2x32xf32>
    %c0_145 = arith.constant 0 : index
    %c8_146 = arith.constant 8 : index
    %c0_147 = arith.constant 0 : index
    %176 = vector.load %arg18[%c0_145, %c8_146, %c0_147] : memref<2x16x193xbf16, #tpu.memory_space<vmem>>, vector<2x1x193xbf16>
    %177 = vector.shape_cast %176 : vector<2x1x193xbf16> to vector<2x193xbf16>
    %c8_148 = arith.constant 8 : index
    %c0_149 = arith.constant 0 : index
    %c0_150 = arith.constant 0 : index
    %178 = vector.load %arg8[%c8_148, %c0_149, %c0_150] : memref<16x193x32xbf16, #tpu.memory_space<vmem>>, vector<1x193x32xbf16>
    %179 = vector.shape_cast %178 : vector<1x193x32xbf16> to vector<193x32xbf16>
    %cst_151 = arith.constant dense<0.000000e+00> : vector<2x32xf32>
    %180 = tpu.matmul %177, %179, %cst_151 {dimension_numbers = #tpu.dot_dimension_numbers<[1], [0], [0], [1], [0, 0, 1, 1], [], []>} : vector<2x193xbf16>, vector<193x32xbf16>, vector<2x32xf32> -> vector<2x32xf32>
    %181 = arith.addf %175, %180 : vector<2x32xf32>
    %c0_152 = arith.constant 0 : index
    %c9 = arith.constant 9 : index
    %c0_153 = arith.constant 0 : index
    %182 = vector.load %arg18[%c0_152, %c9, %c0_153] : memref<2x16x193xbf16, #tpu.memory_space<vmem>>, vector<2x1x193xbf16>
    %183 = vector.shape_cast %182 : vector<2x1x193xbf16> to vector<2x193xbf16>
    %c9_154 = arith.constant 9 : index
    %c0_155 = arith.constant 0 : index
    %c0_156 = arith.constant 0 : index
    %184 = vector.load %arg8[%c9_154, %c0_155, %c0_156] : memref<16x193x32xbf16, #tpu.memory_space<vmem>>, vector<1x193x32xbf16>
    %185 = vector.shape_cast %184 : vector<1x193x32xbf16> to vector<193x32xbf16>
    %cst_157 = arith.constant dense<0.000000e+00> : vector<2x32xf32>
    %186 = tpu.matmul %183, %185, %cst_157 {dimension_numbers = #tpu.dot_dimension_numbers<[1], [0], [0], [1], [0, 0, 1, 1], [], []>} : vector<2x193xbf16>, vector<193x32xbf16>, vector<2x32xf32> -> vector<2x32xf32>
    %187 = arith.addf %181, %186 : vector<2x32xf32>
    %c0_158 = arith.constant 0 : index
    %c10 = arith.constant 10 : index
    %c0_159 = arith.constant 0 : index
    %188 = vector.load %arg18[%c0_158, %c10, %c0_159] : memref<2x16x193xbf16, #tpu.memory_space<vmem>>, vector<2x1x193xbf16>
    %189 = vector.shape_cast %188 : vector<2x1x193xbf16> to vector<2x193xbf16>
    %c10_160 = arith.constant 10 : index
    %c0_161 = arith.constant 0 : index
    %c0_162 = arith.constant 0 : index
    %190 = vector.load %arg8[%c10_160, %c0_161, %c0_162] : memref<16x193x32xbf16, #tpu.memory_space<vmem>>, vector<1x193x32xbf16>
    %191 = vector.shape_cast %190 : vector<1x193x32xbf16> to vector<193x32xbf16>
    %cst_163 = arith.constant dense<0.000000e+00> : vector<2x32xf32>
    %192 = tpu.matmul %189, %191, %cst_163 {dimension_numbers = #tpu.dot_dimension_numbers<[1], [0], [0], [1], [0, 0, 1, 1], [], []>} : vector<2x193xbf16>, vector<193x32xbf16>, vector<2x32xf32> -> vector<2x32xf32>
    %193 = arith.addf %187, %192 : vector<2x32xf32>
    %c0_164 = arith.constant 0 : index
    %c11 = arith.constant 11 : index
    %c0_165 = arith.constant 0 : index
    %194 = vector.load %arg18[%c0_164, %c11, %c0_165] : memref<2x16x193xbf16, #tpu.memory_space<vmem>>, vector<2x1x193xbf16>
    %195 = vector.shape_cast %194 : vector<2x1x193xbf16> to vector<2x193xbf16>
    %c11_166 = arith.constant 11 : index
    %c0_167 = arith.constant 0 : index
    %c0_168 = arith.constant 0 : index
    %196 = vector.load %arg8[%c11_166, %c0_167, %c0_168] : memref<16x193x32xbf16, #tpu.memory_space<vmem>>, vector<1x193x32xbf16>
    %197 = vector.shape_cast %196 : vector<1x193x32xbf16> to vector<193x32xbf16>
    %cst_169 = arith.constant dense<0.000000e+00> : vector<2x32xf32>
    %198 = tpu.matmul %195, %197, %cst_169 {dimension_numbers = #tpu.dot_dimension_numbers<[1], [0], [0], [1], [0, 0, 1, 1], [], []>} : vector<2x193xbf16>, vector<193x32xbf16>, vector<2x32xf32> -> vector<2x32xf32>
    %199 = arith.addf %193, %198 : vector<2x32xf32>
    %c0_170 = arith.constant 0 : index
    %c12 = arith.constant 12 : index
    %c0_171 = arith.constant 0 : index
    %200 = vector.load %arg18[%c0_170, %c12, %c0_171] : memref<2x16x193xbf16, #tpu.memory_space<vmem>>, vector<2x1x193xbf16>
    %201 = vector.shape_cast %200 : vector<2x1x193xbf16> to vector<2x193xbf16>
    %c12_172 = arith.constant 12 : index
    %c0_173 = arith.constant 0 : index
    %c0_174 = arith.constant 0 : index
    %202 = vector.load %arg8[%c12_172, %c0_173, %c0_174] : memref<16x193x32xbf16, #tpu.memory_space<vmem>>, vector<1x193x32xbf16>
    %203 = vector.shape_cast %202 : vector<1x193x32xbf16> to vector<193x32xbf16>
    %cst_175 = arith.constant dense<0.000000e+00> : vector<2x32xf32>
    %204 = tpu.matmul %201, %203, %cst_175 {dimension_numbers = #tpu.dot_dimension_numbers<[1], [0], [0], [1], [0, 0, 1, 1], [], []>} : vector<2x193xbf16>, vector<193x32xbf16>, vector<2x32xf32> -> vector<2x32xf32>
    %205 = arith.addf %199, %204 : vector<2x32xf32>
    %c0_176 = arith.constant 0 : index
    %c13 = arith.constant 13 : index
    %c0_177 = arith.constant 0 : index
    %206 = vector.load %arg18[%c0_176, %c13, %c0_177] : memref<2x16x193xbf16, #tpu.memory_space<vmem>>, vector<2x1x193xbf16>
    %207 = vector.shape_cast %206 : vector<2x1x193xbf16> to vector<2x193xbf16>
    %c13_178 = arith.constant 13 : index
    %c0_179 = arith.constant 0 : index
    %c0_180 = arith.constant 0 : index
    %208 = vector.load %arg8[%c13_178, %c0_179, %c0_180] : memref<16x193x32xbf16, #tpu.memory_space<vmem>>, vector<1x193x32xbf16>
    %209 = vector.shape_cast %208 : vector<1x193x32xbf16> to vector<193x32xbf16>
    %cst_181 = arith.constant dense<0.000000e+00> : vector<2x32xf32>
    %210 = tpu.matmul %207, %209, %cst_181 {dimension_numbers = #tpu.dot_dimension_numbers<[1], [0], [0], [1], [0, 0, 1, 1], [], []>} : vector<2x193xbf16>, vector<193x32xbf16>, vector<2x32xf32> -> vector<2x32xf32>
    %211 = arith.addf %205, %210 : vector<2x32xf32>
    %c0_182 = arith.constant 0 : index
    %c14 = arith.constant 14 : index
    %c0_183 = arith.constant 0 : index
    %212 = vector.load %arg18[%c0_182, %c14, %c0_183] : memref<2x16x193xbf16, #tpu.memory_space<vmem>>, vector<2x1x193xbf16>
    %213 = vector.shape_cast %212 : vector<2x1x193xbf16> to vector<2x193xbf16>
    %c14_184 = arith.constant 14 : index
    %c0_185 = arith.constant 0 : index
    %c0_186 = arith.constant 0 : index
    %214 = vector.load %arg8[%c14_184, %c0_185, %c0_186] : memref<16x193x32xbf16, #tpu.memory_space<vmem>>, vector<1x193x32xbf16>
    %215 = vector.shape_cast %214 : vector<1x193x32xbf16> to vector<193x32xbf16>
    %cst_187 = arith.constant dense<0.000000e+00> : vector<2x32xf32>
    %216 = tpu.matmul %213, %215, %cst_187 {dimension_numbers = #tpu.dot_dimension_numbers<[1], [0], [0], [1], [0, 0, 1, 1], [], []>} : vector<2x193xbf16>, vector<193x32xbf16>, vector<2x32xf32> -> vector<2x32xf32>
    %217 = arith.addf %211, %216 : vector<2x32xf32>
    %c0_188 = arith.constant 0 : index
    %c15 = arith.constant 15 : index
    %c0_189 = arith.constant 0 : index
    %218 = vector.load %arg18[%c0_188, %c15, %c0_189] : memref<2x16x193xbf16, #tpu.memory_space<vmem>>, vector<2x1x193xbf16>
    %219 = vector.shape_cast %218 : vector<2x1x193xbf16> to vector<2x193xbf16>
    %c15_190 = arith.constant 15 : index
    %c0_191 = arith.constant 0 : index
    %c0_192 = arith.constant 0 : index
    %220 = vector.load %arg8[%c15_190, %c0_191, %c0_192] : memref<16x193x32xbf16, #tpu.memory_space<vmem>>, vector<1x193x32xbf16>
    %221 = vector.shape_cast %220 : vector<1x193x32xbf16> to vector<193x32xbf16>
    %cst_193 = arith.constant dense<0.000000e+00> : vector<2x32xf32>
    %222 = tpu.matmul %219, %221, %cst_193 {dimension_numbers = #tpu.dot_dimension_numbers<[1], [0], [0], [1], [0, 0, 1, 1], [], []>} : vector<2x193xbf16>, vector<193x32xbf16>, vector<2x32xf32> -> vector<2x32xf32>
    %223 = arith.addf %217, %222 : vector<2x32xf32>
    %c0_194 = arith.constant 0 : index
    %c0_195 = arith.constant 0 : index
    %224 = vector.load %arg9[%c0_194, %c0_195] : memref<1x32xf32, #tpu.memory_space<vmem>>, vector<1x32xf32>
    %225 = vector.broadcast %224 : vector<1x32xf32> to vector<2x32xf32>
    %226 = arith.addf %223, %225 : vector<2x32xf32>
    %cst_196 = arith.constant dense<0.000000e+00> : vector<2xf32>
    %227 = vector.multi_reduction <add>, %226, %cst_196 [1] : vector<2x32xf32> to vector<2xf32>
    %228 = vector.shape_cast %227 : vector<2xf32> to vector<2x1xf32>
    %cst_197 = arith.constant 3.200000e+01 : f32
    %229 = vector.broadcast %cst_197 : f32 to vector<2x1xf32>
    %230 = arith.divf %228, %229 : vector<2x1xf32>
    %231 = vector.broadcast %230 : vector<2x1xf32> to vector<2x32xf32>
    %232 = arith.subf %226, %231 : vector<2x32xf32>
    %233 = arith.mulf %232, %232 : vector<2x32xf32>
    %cst_198 = arith.constant dense<0.000000e+00> : vector<2xf32>
    %234 = vector.multi_reduction <add>, %233, %cst_198 [1] : vector<2x32xf32> to vector<2xf32>
    %235 = vector.shape_cast %234 : vector<2xf32> to vector<2x1xf32>
    %cst_199 = arith.constant 3.200000e+01 : f32
    %236 = vector.broadcast %cst_199 : f32 to vector<2x1xf32>
    %237 = arith.divf %235, %236 : vector<2x1xf32>
    %238 = vector.broadcast %230 : vector<2x1xf32> to vector<2x32xf32>
    %239 = arith.subf %226, %238 : vector<2x32xf32>
    %cst_200 = arith.constant 9.99999974E-6 : f32
    %240 = vector.broadcast %cst_200 : f32 to vector<2x1xf32>
    %241 = arith.addf %237, %240 : vector<2x1xf32>
    %242 = math.rsqrt %241 : vector<2x1xf32>
    %243 = vector.broadcast %242 : vector<2x1xf32> to vector<2x32xf32>
    %244 = arith.mulf %239, %243 : vector<2x32xf32>
    %c0_201 = arith.constant 0 : index
    %c0_202 = arith.constant 0 : index
    %245 = vector.load %arg10[%c0_201, %c0_202] : memref<1x32xf32, #tpu.memory_space<vmem>>, vector<1x32xf32>
    %246 = vector.broadcast %245 : vector<1x32xf32> to vector<2x32xf32>
    %247 = arith.mulf %244, %246 : vector<2x32xf32>
    %c0_203 = arith.constant 0 : index
    %c0_204 = arith.constant 0 : index
    %248 = vector.load %arg11[%c0_203, %c0_204] : memref<1x32xf32, #tpu.memory_space<vmem>>, vector<1x32xf32>
    %249 = vector.broadcast %248 : vector<1x32xf32> to vector<2x32xf32>
    %250 = arith.addf %247, %249 : vector<2x32xf32>
    %c0_205 = arith.constant 0 : index
    %c0_206 = arith.constant 0 : index
    %251 = vector.load %arg3[%c0_205, %c0_206] : memref<2x4xf32, #tpu.memory_space<vmem>>, vector<2x4xf32>
    %252 = tpu.concatenate %250, %251 in 1 : vector<2x32xf32>, vector<2x4xf32> -> vector<2x36xf32>
    %253 = arith.truncf %252 : vector<2x36xf32> to vector<2x36xbf16>
    %c0_207 = arith.constant 0 : index
    %c0_208 = arith.constant 0 : index
    %c0_209 = arith.constant 0 : index
    %254 = vector.load %arg12[%c0_207, %c0_208, %c0_209] : memref<2x36x32xbf16, #tpu.memory_space<vmem>>, vector<1x36x32xbf16>
    %255 = vector.shape_cast %254 : vector<1x36x32xbf16> to vector<36x32xbf16>
    %cst_210 = arith.constant dense<0.000000e+00> : vector<2x32xf32>
    %256 = tpu.matmul %253, %255, %cst_210 {dimension_numbers = #tpu.dot_dimension_numbers<[1], [0], [0], [1], [0, 0, 1, 1], [], []>} : vector<2x36xbf16>, vector<36x32xbf16>, vector<2x32xf32> -> vector<2x32xf32>
    %c0_211 = arith.constant 0 : index
    %c0_212 = arith.constant 0 : index
    %c0_213 = arith.constant 0 : index
    %257 = vector.load %arg13[%c0_211, %c0_212, %c0_213] : memref<2x1x32xf32, #tpu.memory_space<vmem>>, vector<1x1x32xf32>
    %258 = vector.shape_cast %257 : vector<1x1x32xf32> to vector<1x32xf32>
    %259 = vector.broadcast %258 : vector<1x32xf32> to vector<2x32xf32>
    %260 = arith.addf %256, %259 : vector<2x32xf32>
    %cst_214 = arith.constant 0.000000e+00 : f32
    %261 = vector.broadcast %cst_214 : f32 to vector<2x32xf32>
    %262 = arith.maximumf %260, %261 : vector<2x32xf32>
    %263 = arith.truncf %262 : vector<2x32xf32> to vector<2x32xbf16>
    %c0_215 = arith.constant 0 : index
    %c0_216 = arith.constant 0 : index
    %c0_217 = arith.constant 0 : index
    %264 = vector.load %arg14[%c0_215, %c0_216, %c0_217] : memref<2x32x32xbf16, #tpu.memory_space<vmem>>, vector<1x32x32xbf16>
    %265 = vector.shape_cast %264 : vector<1x32x32xbf16> to vector<32x32xbf16>
    %cst_218 = arith.constant dense<0.000000e+00> : vector<2x32xf32>
    %266 = tpu.matmul %263, %265, %cst_218 {dimension_numbers = #tpu.dot_dimension_numbers<[1], [0], [0], [1], [0, 0, 1, 1], [], []>} : vector<2x32xbf16>, vector<32x32xbf16>, vector<2x32xf32> -> vector<2x32xf32>
    %c0_219 = arith.constant 0 : index
    %c0_220 = arith.constant 0 : index
    %c0_221 = arith.constant 0 : index
    %267 = vector.load %arg15[%c0_219, %c0_220, %c0_221] : memref<2x1x32xf32, #tpu.memory_space<vmem>>, vector<1x1x32xf32>
    %268 = vector.shape_cast %267 : vector<1x1x32xf32> to vector<1x32xf32>
    %269 = vector.broadcast %268 : vector<1x32xf32> to vector<2x32xf32>
    %270 = arith.addf %266, %269 : vector<2x32xf32>
    %cst_222 = arith.constant 0.000000e+00 : f32
    %271 = vector.broadcast %cst_222 : f32 to vector<2x32xf32>
    %272 = arith.maximumf %270, %271 : vector<2x32xf32>
    %c0_223 = arith.constant 0 : index
    %c0_224 = arith.constant 0 : index
    %c0_225 = arith.constant 0 : index
    %273 = vector.load %arg16[%c0_223, %c0_224, %c0_225] : memref<2x1x32xf32, #tpu.memory_space<vmem>>, vector<1x1x32xf32>
    %274 = vector.shape_cast %273 : vector<1x1x32xf32> to vector<1x32xf32>
    %275 = vector.broadcast %274 : vector<1x32xf32> to vector<2x32xf32>
    %276 = arith.mulf %272, %275 : vector<2x32xf32>
    %cst_226 = arith.constant dense<0.000000e+00> : vector<2xf32>
    %277 = vector.multi_reduction <add>, %276, %cst_226 [1] : vector<2x32xf32> to vector<2xf32>
    %278 = vector.shape_cast %277 : vector<2xf32> to vector<2x1xf32>
    %c0_227 = arith.constant 0 : index
    %279 = memref.load %arg1[%c0_227] : memref<2xf32, #tpu.memory_space<smem>>
    %280 = vector.broadcast %279 : f32 to vector<2x1xf32>
    %281 = arith.addf %278, %280 : vector<2x1xf32>
    %c1_228 = arith.constant 1 : index
    %c0_229 = arith.constant 0 : index
    %c0_230 = arith.constant 0 : index
    %282 = vector.load %arg12[%c1_228, %c0_229, %c0_230] : memref<2x36x32xbf16, #tpu.memory_space<vmem>>, vector<1x36x32xbf16>
    %283 = vector.shape_cast %282 : vector<1x36x32xbf16> to vector<36x32xbf16>
    %cst_231 = arith.constant dense<0.000000e+00> : vector<2x32xf32>
    %284 = tpu.matmul %253, %283, %cst_231 {dimension_numbers = #tpu.dot_dimension_numbers<[1], [0], [0], [1], [0, 0, 1, 1], [], []>} : vector<2x36xbf16>, vector<36x32xbf16>, vector<2x32xf32> -> vector<2x32xf32>
    %c1_232 = arith.constant 1 : index
    %c0_233 = arith.constant 0 : index
    %c0_234 = arith.constant 0 : index
    %285 = vector.load %arg13[%c1_232, %c0_233, %c0_234] : memref<2x1x32xf32, #tpu.memory_space<vmem>>, vector<1x1x32xf32>
    %286 = vector.shape_cast %285 : vector<1x1x32xf32> to vector<1x32xf32>
    %287 = vector.broadcast %286 : vector<1x32xf32> to vector<2x32xf32>
    %288 = arith.addf %284, %287 : vector<2x32xf32>
    %cst_235 = arith.constant 0.000000e+00 : f32
    %289 = vector.broadcast %cst_235 : f32 to vector<2x32xf32>
    %290 = arith.maximumf %288, %289 : vector<2x32xf32>
    %291 = arith.truncf %290 : vector<2x32xf32> to vector<2x32xbf16>
    %c1_236 = arith.constant 1 : index
    %c0_237 = arith.constant 0 : index
    %c0_238 = arith.constant 0 : index
    %292 = vector.load %arg14[%c1_236, %c0_237, %c0_238] : memref<2x32x32xbf16, #tpu.memory_space<vmem>>, vector<1x32x32xbf16>
    %293 = vector.shape_cast %292 : vector<1x32x32xbf16> to vector<32x32xbf16>
    %cst_239 = arith.constant dense<0.000000e+00> : vector<2x32xf32>
    %294 = tpu.matmul %291, %293, %cst_239 {dimension_numbers = #tpu.dot_dimension_numbers<[1], [0], [0], [1], [0, 0, 1, 1], [], []>} : vector<2x32xbf16>, vector<32x32xbf16>, vector<2x32xf32> -> vector<2x32xf32>
    %c1_240 = arith.constant 1 : index
    %c0_241 = arith.constant 0 : index
    %c0_242 = arith.constant 0 : index
    %295 = vector.load %arg15[%c1_240, %c0_241, %c0_242] : memref<2x1x32xf32, #tpu.memory_space<vmem>>, vector<1x1x32xf32>
    %296 = vector.shape_cast %295 : vector<1x1x32xf32> to vector<1x32xf32>
    %297 = vector.broadcast %296 : vector<1x32xf32> to vector<2x32xf32>
    %298 = arith.addf %294, %297 : vector<2x32xf32>
    %cst_243 = arith.constant 0.000000e+00 : f32
    %299 = vector.broadcast %cst_243 : f32 to vector<2x32xf32>
    %300 = arith.maximumf %298, %299 : vector<2x32xf32>
    %c1_244 = arith.constant 1 : index
    %c0_245 = arith.constant 0 : index
    %c0_246 = arith.constant 0 : index
    %301 = vector.load %arg16[%c1_244, %c0_245, %c0_246] : memref<2x1x32xf32, #tpu.memory_space<vmem>>, vector<1x1x32xf32>
    %302 = vector.shape_cast %301 : vector<1x1x32xf32> to vector<1x32xf32>
    %303 = vector.broadcast %302 : vector<1x32xf32> to vector<2x32xf32>
    %304 = arith.mulf %300, %303 : vector<2x32xf32>
    %cst_247 = arith.constant dense<0.000000e+00> : vector<2xf32>
    %305 = vector.multi_reduction <add>, %304, %cst_247 [1] : vector<2x32xf32> to vector<2xf32>
    %306 = vector.shape_cast %305 : vector<2xf32> to vector<2x1xf32>
    %c1_248 = arith.constant 1 : index
    %307 = memref.load %arg1[%c1_248] : memref<2xf32, #tpu.memory_space<smem>>
    %308 = vector.broadcast %307 : f32 to vector<2x1xf32>
    %309 = arith.addf %306, %308 : vector<2x1xf32>
    %310 = tpu.concatenate %281, %309 in 1 : vector<2x1xf32>, vector<2x1xf32> -> vector<2x2xf32>
    %c0_249 = arith.constant 0 : index
    %c0_250 = arith.constant 0 : index
    %311 = vector.load %arg17[%c0_249, %c0_250] : memref<2x2xf32, #tpu.memory_space<vmem>>, vector<2x2xf32>
    tpu.vector_store %arg17[%c0_249, %c0_250], %310 {strides = array<i32>} : memref<2x2xf32, #tpu.memory_space<vmem>>, vector<2x2xf32>,
    return
  }
  func.func @transform_0(%arg0: i32) -> i32 {
    %c0_i32 = arith.constant 0 : i32
    %c0_i32_0 = arith.constant 0 : i32
    return %c0_i32 : i32
  }
  func.func @transform_1(%arg0: i32) -> (i32, i32, i32) {
    %c0_i32 = arith.constant 0 : i32
    %c0_i32_0 = arith.constant 0 : i32
    %c0_i32_1 = arith.constant 0 : i32
    return %arg0, %c0_i32, %c0_i32_0 : i32, i32, i32
  }
  func.func @transform_2(%arg0: i32) -> (i32, i32) {
    %c0_i32 = arith.constant 0 : i32
    %c0_i32_0 = arith.constant 0 : i32
    return %arg0, %c0_i32 : i32, i32
  }
  func.func @transform_3(%arg0: i32) -> (i32, i32) {
    %c0_i32 = arith.constant 0 : i32
    %c0_i32_0 = arith.constant 0 : i32
    %c0_i32_1 = arith.constant 0 : i32
    return %c0_i32, %c0_i32_0 : i32, i32
  }
  func.func @transform_4(%arg0: i32) -> (i32, i32) {
    %c0_i32 = arith.constant 0 : i32
    %c0_i32_0 = arith.constant 0 : i32
    %c0_i32_1 = arith.constant 0 : i32
    return %c0_i32, %c0_i32_0 : i32, i32
  }
  func.func @transform_5(%arg0: i32) -> (i32, i32, i32) {
    %c0_i32 = arith.constant 0 : i32
    %c0_i32_0 = arith.constant 0 : i32
    %c0_i32_1 = arith.constant 0 : i32
    %c0_i32_2 = arith.constant 0 : i32
    return %c0_i32, %c0_i32_0, %c0_i32_1 : i32, i32, i32
  }
  func.func @transform_6(%arg0: i32) -> (i32, i32) {
    %c0_i32 = arith.constant 0 : i32
    %c0_i32_0 = arith.constant 0 : i32
    %c0_i32_1 = arith.constant 0 : i32
    return %c0_i32, %c0_i32_0 : i32, i32
  }
  func.func @transform_7(%arg0: i32) -> (i32, i32, i32) {
    %c0_i32 = arith.constant 0 : i32
    %c0_i32_0 = arith.constant 0 : i32
    %c0_i32_1 = arith.constant 0 : i32
    %c0_i32_2 = arith.constant 0 : i32
    return %c0_i32, %c0_i32_0, %c0_i32_1 : i32, i32, i32
  }
  func.func @transform_8(%arg0: i32) -> (i32, i32) {
    %c0_i32 = arith.constant 0 : i32
    %c0_i32_0 = arith.constant 0 : i32
    %c0_i32_1 = arith.constant 0 : i32
    return %c0_i32, %c0_i32_0 : i32, i32
  }
  func.func @transform_9(%arg0: i32) -> (i32, i32) {
    %c0_i32 = arith.constant 0 : i32
    %c0_i32_0 = arith.constant 0 : i32
    %c0_i32_1 = arith.constant 0 : i32
    return %c0_i32, %c0_i32_0 : i32, i32
  }
  func.func @transform_10(%arg0: i32) -> (i32, i32) {
    %c0_i32 = arith.constant 0 : i32
    %c0_i32_0 = arith.constant 0 : i32
    %c0_i32_1 = arith.constant 0 : i32
    return %c0_i32, %c0_i32_0 : i32, i32
  }
  func.func @transform_11(%arg0: i32) -> (i32, i32, i32) {
    %c0_i32 = arith.constant 0 : i32
    %c0_i32_0 = arith.constant 0 : i32
    %c0_i32_1 = arith.constant 0 : i32
    %c0_i32_2 = arith.constant 0 : i32
    return %c0_i32, %c0_i32_0, %c0_i32_1 : i32, i32, i32
  }
  func.func @transform_12(%arg0: i32) -> (i32, i32, i32) {
    %c0_i32 = arith.constant 0 : i32
    %c0_i32_0 = arith.constant 0 : i32
    %c0_i32_1 = arith.constant 0 : i32
    %c0_i32_2 = arith.constant 0 : i32
    return %c0_i32, %c0_i32_0, %c0_i32_1 : i32, i32, i32
  }
  func.func @transform_13(%arg0: i32) -> (i32, i32, i32) {
    %c0_i32 = arith.constant 0 : i32
    %c0_i32_0 = arith.constant 0 : i32
    %c0_i32_1 = arith.constant 0 : i32
    %c0_i32_2 = arith.constant 0 : i32
    return %c0_i32, %c0_i32_0, %c0_i32_1 : i32, i32, i32
  }
  func.func @transform_14(%arg0: i32) -> (i32, i32, i32) {
    %c0_i32 = arith.constant 0 : i32
    %c0_i32_0 = arith.constant 0 : i32
    %c0_i32_1 = arith.constant 0 : i32
    %c0_i32_2 = arith.constant 0 : i32
    return %c0_i32, %c0_i32_0, %c0_i32_1 : i32, i32, i32
  }
  func.func @transform_15(%arg0: i32) -> (i32, i32, i32) {
    %c0_i32 = arith.constant 0 : i32
    %c0_i32_0 = arith.constant 0 : i32
    %c0_i32_1 = arith.constant 0 : i32
    %c0_i32_2 = arith.constant 0 : i32
    return %c0_i32, %c0_i32_0, %c0_i32_1 : i32, i32, i32
  }
  func.func @transform_16(%arg0: i32) -> (i32, i32) {
    %c0_i32 = arith.constant 0 : i32
    %c0_i32_0 = arith.constant 0 : i32
    return %arg0, %c0_i32 : i32, i32
  }
}

</mosaic_0001>

<bundles_post_ra>
// kernel: critic_forward_pallas.1
= control target key start
LH: loop header
LB: loop body
LE: loop exit
PB: predicated region body
PF: predicated region fallthrough
CT: control target
= control target key end

     0   :  { %s6784_s0 = inlined_call_operand.vmem [shape: f32[2], index: 0, kind: input, shape index: {}]   ;;  %s6785_s1 = inlined_call_operand.vmem [shape: bf16[2,27,225], index: 1, kind: input, shape index: {}]   ;;  %s6786_s2 = inlined_call_operand.vmem [shape: f32[2,4], index: 2, kind: input, shape index: {}]   ;;  %s6787_s3 = inlined_call_operand.vmem [shape: bf16[16,27], index: 3, kind: input, shape index: {}]   ;;  %s6788_s4 = inlined_call_operand.vmem [shape: f32[16,1], index: 4, kind: input, shape index: {}]   ;;  %s6789_s5 = inlined_call_operand.vmem [shape: bf16[9,16,16], index: 5, kind: input, shape index: {}]   ;;  %s6790_s6 = inlined_call_operand.vmem [shape: f32[16,1], index: 6, kind: input, shape index: {}]   ;;  %s6791_s7 = inlined_call_operand.vmem [shape: bf16[16,193,32], index: 7, kind: input, shape index: {}]   ;;  %s6792_s8 = inlined_call_operand.vmem [shape: f32[1,32], index: 8, kind: input, shape index: {}]   ;;  %s6793_s9 = inlined_call_operand.vmem [shape: f32[1,32], index: 9, kind: input, shape index: {}]   ;;  %s6794_s10 = inlined_call_operand.vmem [shape: f32[1,32], index: 10, kind: input, shape index: {}]   ;;  %s6795_s11 = inlined_call_operand.vmem [shape: bf16[2,36,32], index: 11, kind: input, shape index: {}]   ;;  %s6796_s12 = inlined_call_operand.vmem [shape: f32[2,1,32], index: 12, kind: input, shape index: {}]   ;;  %s6797_s13 = inlined_call_operand.vmem [shape: bf16[2,32,32], index: 13, kind: input, shape index: {}]   ;;  %s6798_s14 = inlined_call_operand.vmem [shape: f32[2,1,32], index: 14, kind: input, shape index: {}]   ;;  %s6799_s15 = inlined_call_operand.vmem [shape: f32[2,1,32], index: 15, kind: input, shape index: {}]   ;;  %s6800_s16 = inlined_call_operand.vmem [shape: f32[2,2], index: 16, kind: output, shape index: {}]  }
   0x1   :  { %6801 = sst [smem:[#allocation6_spill]] %s6784_s0 }
   0x2   :  { %21 = vsyncpa [#allocation4], 0  ;;  %s6802_s23 = sld [smem:[#allocation6_spill]] }
   0x8   :  { %s28_s24 = sshll.u32 %s6802_s23, 4  ;;  %s29_s24 = int_to_ptr.vmem [resolvable:$true] %s28_s24 }
   0x9   :  { %s5502_s25 = scalar_lea.vmem %s29_s24, 16  ;;  %p5507_p1 = scmp.lt.s32.totalorder %s29_s24, %s29_s24 }
   0xa   :  { %p5503_p0 = scmp.ne.s32.totalorder %s29_s24, %s5502_s25  ;;  %p5508_p2 = scmp.lt.s32.totalorder %s5502_s25, %s5502_s25 }
   0xc   :  { %p5509_p3 = por %p5508_p2, %p5507_p1 }
   0xe   :  { %p5510_p4 = pnand %p5509_p3, %p5503_p0 }
  0x10   :  { %5513 = shalt.err (!%p5510_p4)
}
  0x11   :  { %s5516_s26 = smov [#allocation3]  }
  0x12   :  { %31 = dma.vmem_to_smem %s29_s24, 16, %s5516_s26, [#allocation4]  }
  0x13   :  { %5514 = dma.done.wait [#allocation4], 16  }
  0x14   :  { %5515 = vsyncadd [#allocation4], 4294967280 }
  0x15   :  { %65 = sfence }
  0x16   :  { %v5251_v0 = vld [vmem:[%s6785_s1 + $0x4] ss:$8 sps:$4 sm:$0xff]   ;;  %vm114_vm0 = vcmask 1044480   ;;  %vm115_vm1 = vcmask 1045504   ;;  %v5253_v1 = vld [vmem:[%s6785_s1] ss:$8 sps:$4 sm:$0xff]  }
  0x17   :  { %124 = vmatprep.subr.bf16.mxu0 %v5251_v0  ;;  %v5254_v2 = vld [vmem:[%s6785_s1 + $0x14] ss:$8 sps:$4 sm:$0x3f]   ;;  %v5517_v3 = vmov 65535   ;;  %v5518_v7 = vmov 0   ;;  %v5257_v9 = vld [vmem:[%s6787_s3] sm:$0xff]  }
  0x18   :  { %v116_v4 = vsel %vm114_vm0, 4294967295, %v5517_v3  ;;  %125 = vmatpush1.bf16.msra.mxu0 %v5253_v1  ;;  %v5256_v6 = vld [vmem:[%s6785_s1 + $0x10] ss:$8 sps:$4 sm:$0x3f]   ;;  %156 = vmatprep.mubr.bf16.mxu0 %v5518_v7  ;;  %vm110_vm2 = vcmask 220160   ;;  %v69_v14 = vld [vmem:[%s6788_s4] sm:$0xff] }
  0x19   :  { %v117_v5 = vsel %vm115_vm1, %v116_v4, 0  ;;  %5249 = vset.pattern.permute.xlu0 %v5518_v7  ;;  %229 = vmatprep.mubr.bf16.mxu1 %v5518_v7  ;;  %v5258_v11 = vld [vmem:[%s6785_s1 + $0x20] ss:$8 sps:$4 sm:$0xff]   ;;  %v5260_v12 = vld [vmem:[%s6785_s1 + $0x24] ss:$8 sps:$4 sm:$0xff]   ;;  %s5521_s18 = smov 113  }
  0x1a   :  { %v122_v8 = vand.u32 %v5254_v2, %v117_v5  ;;  %v119_v10 = vand.u32 %v5256_v6, %v117_v5  ;;  %5250 = vset.pattern.permute.xlu1 %v5518_v7  ;;  %v5261_v13 = vld [vmem:[%s6785_s1 + $0x30] ss:$8 sps:$4 sm:$0x3f]   ;;  %v5263_v15 = vld [vmem:[%s6785_s1 + $0x34] ss:$8 sps:$4 sm:$0x3f]   ;;  %79 = vperm.xlu0 %5249, %v69_v14  }
  0x1b   :  { %v70_v16 = vld [vmem:[%s6788_s4 + $0x8] sm:$0xff]  ;;  %v803_v17 = vand.u32 %v5263_v15, %v117_v5  ;;  %v800_v18 = vand.u32 %v5261_v13, %v117_v5  ;;  %s5519_s1 = smov 127   ;;  %s5520_s4 = smov 126   ;;  %v71_v49 = vld [vmem:[%s6790_s6] sm:$0xff]  ;;  %vm189_vm3 = vcmask 1039360   ;;  %vm193_vm4 = vcmask 130048  }
  0x1c   :  { %126 = vmatprep.subr.bf16.mxu0 %v122_v8  ;;  %s5522_s19 = smov 112   ;;  %s5523_s20 = smov 111   ;;  %v72_v50 = vld [vmem:[%s6790_s6 + $0x8] sm:$0xff]  ;;  %v5266_v62 = vld [vmem:[%s6789_s5] sm:$0xff]   ;;  %vm303_vm5 = vcmask 1031168   ;;  %v5268_v6 = vld [vmem:[%s6789_s5 + $0x10] sm:$0xff]  }
  0x1d   :  { %127 = vmatpush1.bf16.msra.mxu0 %v119_v10  ;;  %s5524_s21 = smov 98   ;;  %s5525_s22 = smov 97   ;;  %v5264_v54 = vld [vmem:[%s6789_s5 + $0x8] sm:$0xff]   ;;  %v5267_v1 = vld [vmem:[%s6789_s5] sm:$0xff]   ;;  %vm369_vm6 = vcmask 924672   ;;  %v5269_v10 = vld [vmem:[%s6789_s5 + $0x10] sm:$0xff]  }
  0x1e   :  { %805 = vmatprep.subr.bf16.mxu0 %v5260_v12  ;;  %84 = vperm.xlu0 %5249, %v70_v16   ;;  %s5526_s23 = smov 96   ;;  %v5265_v58 = vld [vmem:[%s6789_s5 + $0x8] sm:$0xff]   ;;  %v5270_v15 = vld [vmem:[%s6789_s5 + $0x18] sm:$0xff]   ;;  %vm435_vm7 = vcmask 916480   ;;  %vm501_vm8 = vcmask 908288   ;;  %vm567_vm9 = vcmask 801792  }
  0x1f   :  { %vm633_vm10 = vcmask 793600   ;;  %vm699_vm11 = vcmask 785408   ;;  %vm1579_vm12 = vcmask 1040384   ;;  %vm774_vm13 = vcmask 531456   ;;  %s5527_s25 = smov 32   ;;  %s4233_s30 = sld [smem:[#allocation3]] }
  0x20   :  { %4408 = vmatmul.mubr.msk.bf16.vlgmr.msra.gmra.mrb[0].mxu0 %vm110_vm2, %v5257_v9  ;;  %vm1494_vm14 = vcmask 1041409   ;;  %vm4039_vm15 = vcmask 254976   ;;  %vm4109_vm0 = vcmask 1041408   ;;  %vm5529_vm1 = vmmov 0   ;;  %s5120_s0 = sld [smem:[#allocation3 + $0x1]] }
  0x21   :  { %806 = vmatpush1.bf16.msra.mxu0 %v5258_v11  ;;  %837 = vmatprep.mubr.bf16.mxu0 %v5518_v7 }
  0x22   :  { %807 = vmatprep.subr.bf16.mxu0 %v803_v17 }
  0x25   :  { %808 = vmatpush1.bf16.msra.mxu0 %v800_v18  ;;  %v5271_v18 = vld [vmem:[%s6789_s5 + $0x18] sm:$0xff]  }
  0x28   :  { %4451 = vmatmul.mubr.msk.bf16.vlgmr.msra.gmra.mrb[4].mxu0 %vm110_vm2, %v5257_v9  ;;  %vm4075_vm2 = vcmask 261120  }
  0x29   :  { %907 = vmatprep.mubr.bf16.mxu0 %v5518_v7 }
  0x99   :  { %v80_v19 = vpop.permute.xlu0 %79 }
  0x9d   :  { %v85_v23 = vpop.permute.xlu0 %84 }
  0xf3   :  { %v158_v20 = vpop.f32.mrb[0].mxu0 }
  0xf4   :  { %v159_v21 = vadd.f32 %v158_v20, %v80_v19  ;;  %v160_v22 = vpop.f32.mrb[1].mxu0 }
  0xf5   :  { %v161_v24 = vadd.f32 %v160_v22, %v80_v19  ;;  %v162_v25 = vpop.f32.mrb[2].mxu0 }
  0xf6   :  { %v163_v26 = vadd.f32 %v162_v25, %v85_v23  ;;  %v164_v27 = vpop.f32.mrb[3].mxu0  ;;  %v167_v29 = vmax.f32 %v159_v21, 0.0 }
  0xf7   :  { %v165_v28 = vadd.f32 %v164_v27, %v85_v23  ;;  %v168_v31 = vmax.f32 %v161_v24, 0.0 }
  0xf8   :  { %v169_v30 = vmax.f32 %v163_v26, 0.0  ;;  %v5273_v26 = vld [vmem:[%s6789_s5 + $0x20] sm:$0xff]  }
  0xf9   :  { %v170_v32 = vmax.f32 %v165_v28, 0.0 }
  0xfa   :  { %v5659_v33 = vpack.c.bf16 %v169_v30, %v167_v29 }
  0xfb   :  { %v5661_v34 = vpack.c.bf16 %v170_v32, %v168_v31  ;;  %v839_v35 = vpop.f32.mrb[4].mxu0  ;;  %v5274_v31 = vld [vmem:[%s6789_s5 + $0x28] sm:$0xff]  }
  0xfc   :  { %v840_v36 = vadd.f32 %v839_v35, %v80_v19  ;;  %v841_v37 = vpop.f32.mrb[5].mxu0  ;;  %185 = vrot.lane.b32.xlu1 %v5659_v33, %s5519_s1 }
  0xfd   :  { %v842_v38 = vadd.f32 %v841_v37, %v80_v19  ;;  %v843_v39 = vpop.f32.mrb[6].mxu0 }
  0xfe   :  { %v844_v40 = vadd.f32 %v843_v39, %v85_v23  ;;  %v845_v41 = vpop.f32.mrb[7].mxu0  ;;  %v848_v43 = vmax.f32 %v840_v36, 0.0  ;;  %v5276_v39 = vld [vmem:[%s6789_s5 + $0x30] sm:$0xff]  }
  0xff   :  { %v846_v42 = vadd.f32 %v845_v41, %v85_v23  ;;  %v849_v45 = vmax.f32 %v842_v38, 0.0  ;;  %v5272_v23 = vld [vmem:[%s6789_s5 + $0x20] sm:$0xff]  }
 0x100   :  { %v850_v44 = vmax.f32 %v844_v40, 0.0  ;;  %187 = vrot.lane.b32.xlu1 %v5661_v34, %s5519_s1 }
 0x101   :  { %v851_v46 = vmax.f32 %v846_v42, 0.0  ;;  %v5277_v42 = vld [vmem:[%s6789_s5 + $0x30] sm:$0xff]  }
 0x102   :  { %v5665_v47 = vpack.c.bf16 %v850_v44, %v848_v43 }
 0x103   :  { %v853_v48 = vpack.c.bf16 %v851_v46, %v849_v45 }
 0x104   :  { %865 = vrot.lane.b32.xlu0 %v5665_v47, %s5519_s1 }
 0x105   :  { %867 = vrot.lane.b32.xlu1 %v853_v48, %s5519_s1 }
 0x108   :  { %299 = vrot.lane.b32.xlu0 %v5659_v33, %s5520_s4 }
 0x109   :  { %301 = vrot.lane.b32.xlu1 %v5661_v34, %s5520_s4 }
 0x10c   :  { %976 = vrot.lane.b32.xlu0 %v5665_v47, %s5520_s4 }
 0x10d   :  { %978 = vrot.lane.b32.xlu1 %v853_v48, %s5520_s4 }
 0x110   :  { %365 = vrot.lane.b32.xlu0 %v5659_v33, %s5521_s18 }
 0x111   :  { %367 = vrot.lane.b32.xlu1 %v5661_v34, %s5521_s18 }
 0x114   :  { %1040 = vrot.lane.b32.xlu0 %v5665_v47, %s5521_s18 }
 0x115   :  { %1042 = vrot.lane.b32.xlu1 %v853_v48, %s5521_s18 }
 0x118   :  { %431 = vrot.lane.b32.xlu0 %v5659_v33, %s5522_s19 }
 0x119   :  { %433 = vrot.lane.b32.xlu1 %v5661_v34, %s5522_s19 }
 0x11c   :  { %1104 = vrot.lane.b32.xlu0 %v5665_v47, %s5522_s19 }
 0x11d   :  { %1106 = vrot.lane.b32.xlu1 %v853_v48, %s5522_s19 }
 0x120   :  { %497 = vrot.lane.b32.xlu0 %v5659_v33, %s5523_s20 }
 0x121   :  { %499 = vrot.lane.b32.xlu1 %v5661_v34, %s5523_s20 }
 0x124   :  { %1168 = vrot.lane.b32.xlu0 %v5665_v47, %s5523_s20 }
 0x125   :  { %1170 = vrot.lane.b32.xlu1 %v853_v48, %s5523_s20 }
 0x128   :  { %563 = vrot.lane.b32.xlu0 %v5659_v33, %s5524_s21 }
 0x129   :  { %565 = vrot.lane.b32.xlu1 %v5661_v34, %s5524_s21 }
 0x12c   :  { %1232 = vrot.lane.b32.xlu0 %v5665_v47, %s5524_s21 }
 0x12d   :  { %1234 = vrot.lane.b32.xlu1 %v853_v48, %s5524_s21 }
 0x130   :  { %629 = vrot.lane.b32.xlu0 %v5659_v33, %s5525_s22 }
 0x131   :  { %631 = vrot.lane.b32.xlu1 %v5661_v34, %s5525_s22 }
 0x134   :  { %1296 = vrot.lane.b32.xlu0 %v5665_v47, %s5525_s22 }
 0x135   :  { %1298 = vrot.lane.b32.xlu1 %v853_v48, %s5525_s22 }
 0x138   :  { %695 = vrot.lane.b32.xlu0 %v5659_v33, %s5526_s23 }
 0x139   :  { %697 = vrot.lane.b32.xlu1 %v5661_v34, %s5526_s23 }
 0x13c   :  { %1360 = vrot.lane.b32.xlu0 %v5665_v47, %s5526_s23 }
 0x13d   :  { %1362 = vrot.lane.b32.xlu1 %v853_v48, %s5526_s23 }
 0x140   :  { %755 = vperm.xlu0 %5249, %v71_v49   ;;  %v5279_v49 = vld [vmem:[%s6789_s5 + $0x38] sm:$0xff]  }
 0x141   :  { %760 = vperm.xlu1 %5250, %v72_v50  }
 0x16e   :  { %v186_v51 = vpop.permute.xlu1 %185 }
 0x172   :  { %v188_v52 = vpop.permute.xlu1 %187 }
 0x173   :  { %197 = vmatprep.subr.bf16.mxu1 %v188_v52  ;;  %v190_v53 = vsel %vm189_vm3, %v186_v51, %v188_v52  ;;  %v5280_v52 = vld [vmem:[%s6789_s5 + $0x40] sm:$0xff]  }
 0x174   :  { %198 = vmatpush1.bf16.msra.mxu1 %v190_v53  ;;  %v5282_v53 = vld [vmem:[%s6791_s7 + $0x64] sm:$0xff]  }
 0x175   :  { %248 = vmatprep.subr.bf16.mxu1 %v5661_v34  ;;  %v5275_v34 = vld [vmem:[%s6789_s5 + $0x28] sm:$0xff]  }
 0x176   :  { %v866_v55 = vpop.permute.xlu0 %865 }
 0x177   :  { %4412 = vmatmul.mubr.msk.bf16.vlgmr.msra.gmra.mrb[0].mxu1 %vm193_vm4, %v5264_v54  ;;  %v868_v56 = vpop.permute.xlu1 %867  ;;  %v5281_v54 = vld [vmem:[%s6789_s5 + $0x40] sm:$0xff]  }
 0x178   :  { %v869_v57 = vsel %vm189_vm3, %v866_v55, %v868_v56  ;;  %249 = vmatpush1.bf16.msra.mxu1 %v5659_v33  ;;  %875 = vmatprep.subr.bf16.mxu0 %v868_v56  ;;  %v5284_v55 = vld [vmem:[%s6791_s7 + $0x6c] sm:$0xff]   ;;  %v5283_v56 = vld [vmem:[%s6791_s7] sm:$0xff]   ;;  %vm4105_vm3 = vcmask 293888  }
 0x179   :  { %876 = vmatpush1.bf16.msra.mxu0 %v869_v57  ;;  %280 = vmatprep.mubr.bf16.mxu1 %v5518_v7  ;;  %v5286_v57 = vld [vmem:[%s6791_s7 + $0x74] sm:$0xff]  }
 0x17a   :  { %926 = vmatprep.subr.bf16.mxu0 %v853_v48  ;;  %v300_v60 = vpop.permute.xlu0 %299 }
 0x17b   :  { %v302_v59 = vpop.permute.xlu1 %301 }
 0x17c   :  { %310 = vmatprep.subr.bf16.mxu1 %v302_v59  ;;  %4455 = vmatmul.mubr.msk.bf16.vlgmr.msra.gmra.mrb[8].mxu0 %vm193_vm4, %v5265_v58  ;;  %v304_v63 = vsel %vm303_vm5, %v300_v60, %v302_v59  ;;  %v5285_v58 = vld [vmem:[%s6791_s7 + $0x8] sm:$0xff]   ;;  %v5288_v59 = vld [vmem:[%s6791_s7 + $0x7c] sm:$0xff]   ;;  %v5287_v60 = vld [vmem:[%s6791_s7 + $0x10] sm:$0xff]  }
 0x17d   :  { %927 = vmatpush1.bf16.msra.mxu0 %v5665_v47  ;;  %958 = vmatprep.mubr.bf16.mxu0 %v5518_v7  ;;  %v5278_v47 = vld [vmem:[%s6789_s5 + $0x38] sm:$0xff]  }
 0x17e   :  { %v977_v2 = vpop.permute.xlu0 %976 }
 0x17f   :  { %v979_v61 = vpop.permute.xlu1 %978 }
 0x180   :  { %986 = vmatprep.subr.bf16.mxu0 %v979_v61  ;;  %v980_v4 = vsel %vm303_vm5, %v977_v2, %v979_v61  ;;  %v5290_v61 = vld [vmem:[%s6791_s7 + $0x84] sm:$0xff]   ;;  %v5294_v2 = vld [vmem:[%s6791_s7 + $0x94] sm:$0xff]   ;;  %vm4396_vm5 = vcmask 9216  }
 0x182   :  { %v366_v5 = vpop.permute.xlu0 %365 }
 0x183   :  { %4414 = vmatmul.mubr.msk.bf16.vlgmr.msra.gmra.mrb[0].mxu1 %vm193_vm4, %v5266_v62  ;;  %v368_v0 = vpop.permute.xlu1 %367  ;;  %v5289_v62 = vld [vmem:[%s6791_s7 + $0x18] sm:$0xff]  }
 0x184   :  { %311 = vmatpush1.bf16.msra.mxu1 %v304_v63  ;;  %342 = vmatprep.mubr.bf16.mxu1 %v5518_v7  ;;  %v370_v8 = vsel %vm369_vm6, %v366_v5, %v368_v0  ;;  %v5292_v63 = vld [vmem:[%s6791_s7 + $0x8c] sm:$0xff]   ;;  %v5297_v5 = vld [vmem:[%s6791_s7 + $0x38] sm:$0xff]  }
 0x185   :  { %376 = vmatprep.subr.bf16.mxu1 %v368_v0  ;;  %v5291_v0 = vld [vmem:[%s6791_s7 + $0x20] sm:$0xff]  }
 0x186   :  { %v1041_v11 = vpop.permute.xlu0 %1040 }
 0x187   :  { %v1043_v3 = vpop.permute.xlu1 %1042 }
 0x188   :  { %4457 = vmatmul.mubr.msk.bf16.vlgmr.msra.gmra.mrb[8].mxu0 %vm193_vm4, %v5267_v1  ;;  %v1044_v12 = vsel %vm369_vm6, %v1041_v11, %v1043_v3  ;;  %v5293_v1 = vld [vmem:[%s6791_s7 + $0x28] sm:$0xff]   ;;  %v5302_v11 = vld [vmem:[%s6791_s7 + $0xb4] sm:$0xff]  }
 0x189   :  { %987 = vmatpush1.bf16.msra.mxu0 %v980_v4  ;;  %1018 = vmatprep.mubr.bf16.mxu0 %v5518_v7  ;;  %v5296_v4 = vld [vmem:[%s6791_s7 + $0x9c] sm:$0xff]  }
 0x18a   :  { %1050 = vmatprep.subr.bf16.mxu0 %v1043_v3  ;;  %v432_v14 = vpop.permute.xlu0 %431  ;;  %v5295_v3 = vld [vmem:[%s6791_s7 + $0x30] sm:$0xff]  }
 0x18b   :  { %v434_v9 = vpop.permute.xlu1 %433 }
 0x18c   :  { %v436_v16 = vsel %vm435_vm7, %v432_v14, %v434_v9  ;;  %v5306_v14 = vld [vmem:[%s6791_s7 + $0xc4] ss:$0 sps:$4 sm:$0x11]  }
 0x18e   :  { %v1105_v19 = vpop.permute.xlu0 %1104 }
 0x18f   :  { %4418 = vmatmul.mubr.msk.bf16.vlgmr.msra.gmra.mrb[0].mxu1 %vm193_vm4, %v5268_v6  ;;  %v1107_v13 = vpop.permute.xlu1 %1106  ;;  %v5298_v6 = vld [vmem:[%s6791_s7 + $0xa4] sm:$0xff]  }
 0x190   :  { %377 = vmatpush1.bf16.msra.mxu1 %v370_v8  ;;  %408 = vmatprep.mubr.bf16.mxu1 %v5518_v7  ;;  %v1108_v20 = vsel %vm435_vm7, %v1105_v19, %v1107_v13  ;;  %v5299_v8 = vld [vmem:[%s6791_s7 + $0x40] sm:$0xff]  }
 0x191   :  { %442 = vmatprep.subr.bf16.mxu1 %v434_v9  ;;  %v5300_v9 = vld [vmem:[%s6791_s7 + $0xac] sm:$0xff]  }
 0x192   :  { %v498_v22 = vpop.permute.xlu0 %497 }
 0x193   :  { %v500_v17 = vpop.permute.xlu1 %499 }
 0x194   :  { %4461 = vmatmul.mubr.msk.bf16.vlgmr.msra.gmra.mrb[8].mxu0 %vm193_vm4, %v5269_v10  ;;  %v502_v24 = vsel %vm501_vm8, %v498_v22, %v500_v17  ;;  %v5301_v10 = vld [vmem:[%s6791_s7 + $0x48] sm:$0xff]  }
 0x195   :  { %1051 = vmatpush1.bf16.msra.mxu0 %v1044_v12  ;;  %1082 = vmatprep.mubr.bf16.mxu0 %v5518_v7  ;;  %v5303_v12 = vld [vmem:[%s6791_s7 + $0x50] sm:$0xff]  }
 0x196   :  { %1114 = vmatprep.subr.bf16.mxu0 %v1107_v13  ;;  %v1169_v27 = vpop.permute.xlu0 %1168  ;;  %v5304_v13 = vld [vmem:[%s6791_s7 + $0xbc] sm:$0xff]  }
 0x197   :  { %v1171_v21 = vpop.permute.xlu1 %1170 }
 0x198   :  { %v1172_v28 = vsel %vm501_vm8, %v1169_v27, %v1171_v21 }
 0x19a   :  { %v564_v30 = vpop.permute.xlu0 %563 }
 0x19b   :  { %4422 = vmatmul.mubr.msk.bf16.vlgmr.msra.gmra.mrb[0].mxu1 %vm193_vm4, %v5270_v15  ;;  %v566_v25 = vpop.permute.xlu1 %565  ;;  %v5882_v15 = vsel %vm1579_vm12, 65535, %v5518_v7 }
 0x19c   :  { %443 = vmatpush1.bf16.msra.mxu1 %v436_v16  ;;  %474 = vmatprep.mubr.bf16.mxu1 %v5518_v7  ;;  %v568_v32 = vsel %vm567_vm9, %v564_v30, %v566_v25  ;;  %v5305_v16 = vld [vmem:[%s6791_s7 + $0x58] sm:$0xff]  }
 0x19d   :  { %508 = vmatprep.subr.bf16.mxu1 %v500_v17  ;;  %v5307_v17 = vld [vmem:[%s6791_s7 + $0x60] ss:$0 sps:$4 sm:$0x11]  }
 0x19e   :  { %v1233_v35 = vpop.permute.xlu0 %1232  ;;  %v1711_v19 = vand.u32 %v5307_v17, %v5882_v15 }
 0x19f   :  { %v1235_v29 = vpop.permute.xlu1 %1234 }
 0x1a0   :  { %4465 = vmatmul.mubr.msk.bf16.vlgmr.msra.gmra.mrb[8].mxu0 %vm193_vm4, %v5271_v18  ;;  %v1236_v36 = vsel %vm567_vm9, %v1233_v35, %v1235_v29  ;;  %v1583_v18 = vand.u32 %v5306_v14, %v5882_v15 }
 0x1a1   :  { %1115 = vmatpush1.bf16.msra.mxu0 %v1108_v20  ;;  %1146 = vmatprep.mubr.bf16.mxu0 %v5518_v7 }
 0x1a2   :  { %1178 = vmatprep.subr.bf16.mxu0 %v1171_v21  ;;  %v630_v38 = vpop.permute.xlu0 %629 }
 0x1a3   :  { %v632_v33 = vpop.permute.xlu1 %631 }
 0x1a4   :  { %v634_v40 = vsel %vm633_vm10, %v630_v38, %v632_v33 }
 0x1a6   :  { %v1297_v43 = vpop.permute.xlu0 %1296 }
 0x1a7   :  { %4426 = vmatmul.mubr.msk.bf16.vlgmr.msra.gmra.mrb[0].mxu1 %vm193_vm4, %v5272_v23  ;;  %v1299_v37 = vpop.permute.xlu1 %1298 }
 0x1a8   :  { %509 = vmatpush1.bf16.msra.mxu1 %v502_v24  ;;  %540 = vmatprep.mubr.bf16.mxu1 %v5518_v7  ;;  %v1300_v44 = vsel %vm633_vm10, %v1297_v43, %v1299_v37 }
 0x1a9   :  { %574 = vmatprep.subr.bf16.mxu1 %v566_v25 }
 0x1aa   :  { %v696_v46 = vpop.permute.xlu0 %695 }
 0x1ab   :  { %v698_v41 = vpop.permute.xlu1 %697 }
 0x1ac   :  { %4469 = vmatmul.mubr.msk.bf16.vlgmr.msra.gmra.mrb[8].mxu0 %vm193_vm4, %v5273_v26  ;;  %v700_v48 = vsel %vm699_vm11, %v696_v46, %v698_v41 }
 0x1ad   :  { %1179 = vmatpush1.bf16.msra.mxu0 %v1172_v28  ;;  %1210 = vmatprep.mubr.bf16.mxu0 %v5518_v7 }
 0x1ae   :  { %1242 = vmatprep.subr.bf16.mxu0 %v1235_v29  ;;  %v1361_v50 = vpop.permute.xlu0 %1360 }
 0x1af   :  { %v1363_v45 = vpop.permute.xlu1 %1362 }
 0x1b0   :  { %v1364_v51 = vsel %vm699_vm11, %v1361_v50, %v1363_v45 }
 0x1b3   :  { %4430 = vmatmul.mubr.msk.bf16.vlgmr.msra.gmra.mrb[0].mxu1 %vm193_vm4, %v5274_v31 }
 0x1b4   :  { %575 = vmatpush1.bf16.msra.mxu1 %v568_v32  ;;  %606 = vmatprep.mubr.bf16.mxu1 %v5518_v7 }
 0x1b5   :  { %640 = vmatprep.subr.bf16.mxu1 %v632_v33 }
 0x1b8   :  { %4473 = vmatmul.mubr.msk.bf16.vlgmr.msra.gmra.mrb[8].mxu0 %vm193_vm4, %v5275_v34 }
 0x1b9   :  { %1243 = vmatpush1.bf16.msra.mxu0 %v1236_v36  ;;  %1274 = vmatprep.mubr.bf16.mxu0 %v5518_v7 }
 0x1ba   :  { %1306 = vmatprep.subr.bf16.mxu0 %v1299_v37 }
 0x1bf   :  { %4434 = vmatmul.mubr.msk.bf16.vlgmr.msra.gmra.mrb[0].mxu1 %vm193_vm4, %v5276_v39  ;;  %v756_v20 = vpop.permute.xlu0 %755 }
 0x1c0   :  { %641 = vmatpush1.bf16.msra.mxu1 %v634_v40  ;;  %672 = vmatprep.mubr.bf16.mxu1 %v5518_v7  ;;  %v761_v22 = vpop.permute.xlu1 %760 }
 0x1c1   :  { %706 = vmatprep.subr.bf16.mxu1 %v698_v41 }
 0x1c4   :  { %4477 = vmatmul.mubr.msk.bf16.vlgmr.msra.gmra.mrb[8].mxu0 %vm193_vm4, %v5277_v42 }
 0x1c5   :  { %1307 = vmatpush1.bf16.msra.mxu0 %v1300_v44  ;;  %1338 = vmatprep.mubr.bf16.mxu0 %v5518_v7 }
 0x1c6   :  { %1370 = vmatprep.subr.bf16.mxu0 %v1363_v45 }
 0x1cb   :  { %4438 = vmatmul.mubr.msk.bf16.vlgmr.msra.gmra.mrb[0].mxu1 %vm193_vm4, %v5278_v47 }
 0x1cc   :  { %707 = vmatpush1.bf16.msra.mxu1 %v700_v48  ;;  %738 = vmatprep.mubr.bf16.mxu1 %v5518_v7 }
 0x1cd   :  { %1585 = vmatprep.subr.bf16.mxu1 %v5518_v7 }
 0x1d0   :  { %4481 = vmatmul.mubr.msk.bf16.vlgmr.msra.gmra.mrb[8].mxu0 %vm193_vm4, %v5279_v49 }
 0x1d1   :  { %1371 = vmatpush1.bf16.msra.mxu0 %v1364_v51  ;;  %1402 = vmatprep.mubr.bf16.mxu0 %v5518_v7 }
 0x1d2   :  { %1713 = vmatprep.subr.bf16.mxu0 %v5518_v7 }
 0x1d7   :  { %4442 = vmatmul.mubr.msk.bf16.vlgmr.msra.gmra.mrb[0].mxu1 %vm193_vm4, %v5280_v52 }
 0x1d8   :  { %1586 = vmatpush1.bf16.msra.mxu1 %v5282_v53 }
 0x1d9   :  { %1587 = vmatprep.subr.bf16.mxu1 %v5518_v7 }
 0x1dc   :  { %4485 = vmatmul.mubr.msk.bf16.vlgmr.msra.gmra.mrb[8].mxu0 %vm193_vm4, %v5281_v54  ;;  %1588 = vmatpush1.bf16.msra.mxu1 %v5284_v55  ;;  %vm4394_vm4 = vcmask 7168  }
 0x1dd   :  { %1714 = vmatpush1.bf16.msra.mxu0 %v5283_v56  ;;  %1589 = vmatprep.subr.bf16.mxu1 %v5518_v7 }
 0x1de   :  { %1715 = vmatprep.subr.bf16.mxu0 %v5518_v7 }
 0x1e0   :  { %1590 = vmatpush1.bf16.msra.mxu1 %v5286_v57 }
 0x1e1   :  { %1716 = vmatpush1.bf16.msra.mxu0 %v5285_v58  ;;  %1591 = vmatprep.subr.bf16.mxu1 %v5518_v7 }
 0x1e2   :  { %1717 = vmatprep.subr.bf16.mxu0 %v5518_v7 }
 0x1e4   :  { %1592 = vmatpush1.bf16.msra.mxu1 %v5288_v59 }
 0x1e5   :  { %1718 = vmatpush1.bf16.msra.mxu0 %v5287_v60  ;;  %1593 = vmatprep.subr.bf16.mxu1 %v5518_v7 }
 0x1e6   :  { %1719 = vmatprep.subr.bf16.mxu0 %v5518_v7 }
 0x1e8   :  { %1594 = vmatpush1.bf16.msra.mxu1 %v5290_v61 }
 0x1e9   :  { %1720 = vmatpush1.bf16.msra.mxu0 %v5289_v62  ;;  %1595 = vmatprep.subr.bf16.mxu1 %v5518_v7 }
 0x1ea   :  { %1721 = vmatprep.subr.bf16.mxu0 %v5518_v7 }
 0x1ec   :  { %1596 = vmatpush1.bf16.msra.mxu1 %v5292_v63 }
 0x1ed   :  { %1722 = vmatpush1.bf16.msra.mxu0 %v5291_v0  ;;  %1597 = vmatprep.subr.bf16.mxu1 %v5518_v7 }
 0x1ee   :  { %1723 = vmatprep.subr.bf16.mxu0 %v5518_v7 }
 0x1f0   :  { %1598 = vmatpush1.bf16.msra.mxu1 %v5294_v2 }
 0x1f1   :  { %1724 = vmatpush1.bf16.msra.mxu0 %v5293_v1  ;;  %1599 = vmatprep.subr.bf16.mxu1 %v5518_v7 }
 0x1f2   :  { %1725 = vmatprep.subr.bf16.mxu0 %v5518_v7 }
 0x1f4   :  { %1600 = vmatpush1.bf16.msra.mxu1 %v5296_v4 }
 0x1f5   :  { %1726 = vmatpush1.bf16.msra.mxu0 %v5295_v3  ;;  %1601 = vmatprep.subr.bf16.mxu1 %v5518_v7 }
 0x1f6   :  { %1727 = vmatprep.subr.bf16.mxu0 %v5518_v7 }
 0x1f8   :  { %1602 = vmatpush1.bf16.msra.mxu1 %v5298_v6 }
 0x1f9   :  { %1728 = vmatpush1.bf16.msra.mxu0 %v5297_v5  ;;  %1603 = vmatprep.subr.bf16.mxu1 %v5518_v7 }
 0x1fa   :  { %1729 = vmatprep.subr.bf16.mxu0 %v5518_v7 }
 0x1fc   :  { %1604 = vmatpush1.bf16.msra.mxu1 %v5300_v9 }
 0x1fd   :  { %1730 = vmatpush1.bf16.msra.mxu0 %v5299_v8  ;;  %1605 = vmatprep.subr.bf16.mxu1 %v5518_v7  ;;  %v5308_v8 = vld [vmem:[%s6791_s7 + $0xc8] sm:$0xff]  }
 0x1fe   :  { %1731 = vmatprep.subr.bf16.mxu0 %v5518_v7 }
 0x200   :  { %1606 = vmatpush1.bf16.msra.mxu1 %v5302_v11 }
 0x201   :  { %1732 = vmatpush1.bf16.msra.mxu0 %v5301_v10  ;;  %1607 = vmatprep.subr.bf16.mxu1 %v5518_v7 }
 0x202   :  { %1733 = vmatprep.subr.bf16.mxu0 %v5518_v7 }
 0x204   :  { %1608 = vmatpush1.bf16.msra.mxu1 %v5304_v13 }
 0x205   :  { %1734 = vmatpush1.bf16.msra.mxu0 %v5303_v12  ;;  %1609 = vmatprep.subr.bf16.mxu1 %v5518_v7 }
 0x206   :  { %1735 = vmatprep.subr.bf16.mxu0 %v5518_v7 }
 0x208   :  { %1610 = vmatpush1.bf16.msra.mxu1 %v1583_v18  ;;  %v5309_v18 = vld [vmem:[%s6791_s7 + $0x12c] sm:$0xff]  }
 0x209   :  { %1736 = vmatpush1.bf16.msra.mxu0 %v5305_v16  ;;  %1881 = vmatprep.subr.bf16.mxu1 %v5518_v7 }
 0x20a   :  { %1737 = vmatprep.subr.bf16.mxu0 %v5518_v7 }
 0x20d   :  { %1738 = vmatpush1.bf16.msra.mxu0 %v1711_v19 }
 0x20e   :  { %2038 = vmatprep.subr.bf16.mxu0 %v5518_v7 }
 0x2aa   :  { %v740_v21 = vpop.f32.mrb[0].mxu1 }
 0x2ab   :  { %v763_v23 = vadd.f32 %v756_v20, %v740_v21  ;;  %v742_v24 = vpop.f32.mrb[1].mxu1  ;;  %v5310_v21 = vld [vmem:[%s6791_s7 + $0xd0] sm:$0xff]  }
 0x2ac   :  { %v764_v25 = vadd.f32 %v756_v20, %v742_v24  ;;  %v744_v26 = vpop.f32.mrb[2].mxu1  ;;  %v5312_v24 = vld [vmem:[%s6791_s7 + $0xd8] sm:$0xff]  }
 0x2ad   :  { %v765_v27 = vadd.f32 %v761_v22, %v744_v26  ;;  %v746_v28 = vpop.f32.mrb[3].mxu1  ;;  %v767_v30 = vmax.f32 %v763_v23, 0.0  ;;  %v5311_v23 = vld [vmem:[%s6791_s7 + $0x134] sm:$0xff]   ;;  %v5314_v26 = vld [vmem:[%s6791_s7 + $0xe0] sm:$0xff]  }
 0x2ae   :  { %v766_v29 = vadd.f32 %v761_v22, %v746_v28  ;;  %v768_v33 = vmax.f32 %v764_v25, 0.0  ;;  %v5313_v25 = vld [vmem:[%s6791_s7 + $0x13c] sm:$0xff]   ;;  %v5316_v28 = vld [vmem:[%s6791_s7 + $0xe8] sm:$0xff]  }
 0x2af   :  { %v769_v31 = vmax.f32 %v765_v27, 0.0  ;;  %v1404_v32 = vpop.f32.mrb[8].mxu0  ;;  %v5315_v27 = vld [vmem:[%s6791_s7 + $0x144] sm:$0xff]  }
 0x2b0   :  { %v770_v34 = vmax.f32 %v766_v29, 0.0  ;;  %v1417_v35 = vadd.f32 %v1404_v32, %v756_v20  ;;  %v1406_v36 = vpop.f32.mrb[9].mxu0  ;;  %v5317_v29 = vld [vmem:[%s6791_s7 + $0x14c] sm:$0xff]   ;;  %v5320_v32 = vld [vmem:[%s6791_s7 + $0xf8] sm:$0xff]  }
 0x2b1   :  { %v771_v37 = vpack.c.bf16 %v769_v31, %v767_v30  ;;  %v1418_v38 = vadd.f32 %v1406_v36, %v756_v20  ;;  %v1408_v39 = vpop.f32.mrb[10].mxu0  ;;  %v5318_v30 = vld [vmem:[%s6791_s7 + $0xf0] sm:$0xff]   ;;  %v5324_v36 = vld [vmem:[%s6791_s7 + $0x108] sm:$0xff]  }
 0x2b2   :  { %v772_v40 = vpack.c.bf16 %v770_v34, %v768_v33  ;;  %v1419_v41 = vadd.f32 %v1408_v39, %v761_v22  ;;  %v1410_v42 = vpop.f32.mrb[11].mxu0  ;;  %v1421_v44 = vmax.f32 %v1417_v35, 0.0  ;;  %v5319_v31 = vld [vmem:[%s6791_s7 + $0x154] sm:$0xff]   ;;  %v5321_v33 = vld [vmem:[%s6791_s7 + $0x15c] sm:$0xff]   ;;  %v5323_v35 = vld [vmem:[%s6791_s7 + $0x164] sm:$0xff]  }
 0x2b3   :  { %773 = vst [vmem:[#allocation2] sm:$0xff] %v771_v37  ;;  %v1420_v43 = vadd.f32 %v1410_v42, %v761_v22  ;;  %v1422_v46 = vmax.f32 %v1418_v38, 0.0  ;;  %v5322_v34 = vld [vmem:[%s6791_s7 + $0x100] sm:$0xff]   ;;  %v5325_v37 = vld [vmem:[%s6791_s7 + $0x16c] sm:$0xff]   ;;  %v5327_v39 = vld [vmem:[%s6791_s7 + $0x174] sm:$0xff]  }
 0x2b4   :  { %775 = vst.msk [vmem:[#allocation2 + $0x8] sm:$0xff] %vm774_vm13, %v772_v40  ;;  %v1423_v45 = vmax.f32 %v1419_v41, 0.0  ;;  %v5326_v38 = vld [vmem:[%s6791_s7 + $0x110] sm:$0xff]   ;;  %v5328_v41 = vld [vmem:[%s6791_s7 + $0x118] sm:$0xff]  }
 0x2b5   :  { %v1424_v47 = vmax.f32 %v1420_v43, 0.0 }
 0x2b6   :  { %v1425_v48 = vpack.c.bf16 %v1423_v45, %v1421_v44  ;;  %v5329_v44 = vld [vmem:[%s6791_s7 + $0x17c] sm:$0xff]  }
 0x2b7   :  { %v1426_v49 = vpack.c.bf16 %v1424_v47, %v1422_v46 }
 0x2b8   :  { %1428 = vst [vmem:[#allocation2 + $0x10] sm:$0xff] %v1425_v48  ;;  %v5330_v48 = vld [vmem:[%s6791_s7 + $0x120] sm:$0xff]  }
 0x2b9   :  { %1429 = vst.msk [vmem:[#allocation2 + $0x18] sm:$0xff] %vm774_vm13, %v1426_v49  ;;  %v5332_v49 = vld [vmem:[%s6791_s7 + $0x128] ss:$0 sps:$4 sm:$0x11]  }
 0x2ba   :  { %v1430_v50 = vld [vmem:[#allocation2] sm:$0x1]  ;;  %v1753_v43 = vld [vmem:[#allocation2] sm:$0x2] }
 0x2bb   :  { %v1431_v51 = vld [vmem:[#allocation2 + $0x8] sm:$0x1]  ;;  %v1489_v52 = vunpack.c.l.b16 %v1430_v50  ;;  %v1754_v53 = vld [vmem:[#allocation2 + $0x8] sm:$0x2]  ;;  %v2080_v46 = vld [vmem:[#allocation2 + $0x8] sm:$0x4]  ;;  %v1787_v50 = vunpack.c.l.b16 %v1753_v43 }
 0x2bc   :  { %v1490_v54 = vunpack.c.l.b16 %v1431_v51  ;;  %v1788_v56 = vunpack.c.l.b16 %v1754_v53  ;;  %v2114_v51 = vunpack.c.l.b16 %v2080_v46  ;;  %v5333_v53 = vld [vmem:[%s6791_s7 + $0x18c] ss:$0 sps:$4 sm:$0x11]   ;;  %v5359_v43 = vld [vmem:[%s6791_s7 + $0x254] ss:$0 sps:$4 sm:$0x11]  }
 0x2bd   :  { %v1493_v59 = vrot.slane %v1489_v52, 1 }
 0x2be   :  { %v1496_v62 = vrot.slane %v1490_v54, 1  ;;  %v1794_v4 = vrot.slane %v1788_v56, 2  ;;  %v1951_v10 = vrot.slane %v1788_v56, 3  ;;  %v1879_v56 = vand.u32 %v5332_v49, %v5882_v15 }
 0x2bf   :  { %v1432_v55 = vld [vmem:[#allocation2 + $0x10] sm:$0x1]  ;;  %v1755_v40 = vld [vmem:[#allocation2 + $0x10] sm:$0x2] }
 0x2c0   :  { %v1433_v57 = vld [vmem:[#allocation2 + $0x18] sm:$0x1]  ;;  %v1491_v58 = vunpack.c.l.b16 %v1432_v55  ;;  %v1756_v60 = vld [vmem:[#allocation2 + $0x18] sm:$0x2]  ;;  %v2082_v42 = vld [vmem:[#allocation2 + $0x18] sm:$0x4]  ;;  %v1789_v45 = vunpack.c.l.b16 %v1755_v40 }
 0x2c1   :  { %v1492_v61 = vunpack.c.l.b16 %v1433_v57  ;;  %v1790_v63 = vunpack.c.l.b16 %v1756_v60  ;;  %v2116_v47 = vunpack.c.l.b16 %v2082_v42  ;;  %v1791_v57 = vrot.slane %v1787_v50, 2  ;;  %v5357_v42 = vld [vmem:[%s6791_s7 + $0x24c] sm:$0xff]  }
 0x2c2   :  { %v1495_v0 = vsel %vm1494_vm14, %v1491_v58, %v1493_v59  ;;  %v1625_v1 = vrot.slane %v1491_v58, 7  ;;  %v1949_v58 = vrot.slane %v1789_v45, 2  ;;  %v2120_v59 = vrot.slane %v2114_v51, 4 }
 0x2c3   :  { %v1497_v2 = vsel %vm1494_vm14, %v1492_v61, %v1496_v62  ;;  %v1627_v3 = vrot.slane %v1492_v61, 7  ;;  %v1795_v5 = vrot.slane %v1790_v63, 1  ;;  %v1952_v11 = vrot.slane %v1790_v63, 2 }
 0x2c4   :  { %v1499_v6 = vpack.c.b16 %v1497_v2, %v1497_v2  ;;  %v1626_v9 = vsel %vm1494_vm14, %v1625_v1, %v1489_v52  ;;  %v1498_v12 = vpack.c.b16 %v1495_v0, %v1495_v0  ;;  %v5331_v52 = vld [vmem:[%s6791_s7 + $0x184] sm:$0xff]   ;;  %v2121_v55 = vrot.slane %v2116_v47, 3  ;;  %v5334_v2 = vld [vmem:[%s6791_s7 + $0x190] sm:$0xff]  }
 0x2c5   :  { %v1628_v13 = vsel %vm1494_vm14, %v1627_v3, %v1490_v54  ;;  %v1796_v14 = vsel %vm1494_vm14, %v1795_v5, %v1794_v4  ;;  %v1953_v19 = vsel %vm1494_vm14, %v1952_v11, %v1951_v10  ;;  %v1629_v20 = vpack.c.b16 %v1626_v9, %v1626_v9  ;;  %v5336_v11 = vld [vmem:[%s6791_s7 + $0x198] sm:$0xff]  }
 0x2c6   :  { %4524 = vmatprep.mubr.msk.bf16.mxu1 %vm774_vm13, %v1499_v6  ;;  %v1630_v16 = vpack.c.b16 %v1628_v13, %v1628_v13  ;;  %v1798_v17 = vpack.c.b16 %v1796_v14, %v1796_v14  ;;  %v1955_v22 = vpack.c.b16 %v1953_v19, %v1953_v19  ;;  %v1792_v54 = vrot.slane %v1789_v45, 1  ;;  %v5338_v13 = vld [vmem:[%s6791_s7 + $0x1a0] sm:$0xff]   ;;  %v5343_v19 = vld [vmem:[%s6791_s7 + $0x214] sm:$0xff]  }
 0x2c7   :  { %1618 = vmatmul.mubr.bf16.vlgmr.msra.gmra.mrb[4].mxu1 %v1498_v12  ;;  %v2278_v60 = vrot.slane %v2116_v47, 4  ;;  %v2036_v61 = vand.u32 %v5333_v53, %v5882_v15  ;;  %v1948_v63 = vrot.slane %v1787_v50, 3  ;;  %v2122_v0 = vsel %vm1494_vm14, %v2121_v55, %v2120_v59  ;;  %v5337_v12 = vld [vmem:[%s6791_s7 + $0x1fc] sm:$0xff]   ;;  %v5339_v14 = vld [vmem:[%s6791_s7 + $0x204] sm:$0xff]  }
 0x2c8   :  { %1882 = vmatpush1.bf16.msra.mxu1 %v5308_v8  ;;  %4538 = vmatprep.mubr.msk.bf16.mxu0 %vm774_vm13, %v1630_v16  ;;  %v1793_v62 = vsel %vm1494_vm14, %v1792_v54, %v1791_v57  ;;  %v2277_v1 = vrot.slane %v2114_v51, 5  ;;  %v2124_v6 = vpack.c.b16 %v2122_v0, %v2122_v0  ;;  %v5335_v8 = vld [vmem:[%s6791_s7 + $0x1f4] sm:$0xff]   ;;  %v5340_v16 = vld [vmem:[%s6791_s7 + $0x1a8] sm:$0xff]   ;;  %v2362_v51 = vand.u32 %v5359_v43, %v5882_v15  ;;  %v5362_v0 = vld [vmem:[%s6791_s7 + $0x260] sm:$0xff]  }
 0x2c9   :  { %4577 = vmatprep.mubr.msk.bf16.mxu1 %vm774_vm13, %v1798_v17  ;;  %1746 = vmatmul.mubr.bf16.vlgmr.msra.gmra.mrb[12].mxu0 %v1629_v20  ;;  %v1950_v3 = vsel %vm1494_vm14, %v1949_v58, %v1948_v63  ;;  %v1797_v4 = vpack.c.b16 %v1793_v62, %v1793_v62  ;;  %v5341_v17 = vld [vmem:[%s6791_s7 + $0x20c] sm:$0xff]   ;;  %v5344_v20 = vld [vmem:[%s6791_s7 + $0x1b8] sm:$0xff]  }
 0x2ca   :  { %2039 = vmatpush1.bf16.msra.mxu0 %v5309_v18  ;;  %1883 = vmatprep.subr.bf16.mxu1 %v5518_v7  ;;  %v2279_v5 = vsel %vm1494_vm14, %v2278_v60, %v2277_v1  ;;  %v1954_v9 = vpack.c.b16 %v1950_v3, %v1950_v3  ;;  %v5342_v18 = vld [vmem:[%s6791_s7 + $0x1b0] sm:$0xff]   ;;  %v5363_v1 = vld [vmem:[%s6791_s7 + $0x2c4] sm:$0xff]  }
 0x2cb   :  { %4616 = vmatprep.mubr.msk.bf16.mxu0 %vm774_vm13, %v1955_v22  ;;  %2040 = vmatprep.subr.bf16.mxu0 %v5518_v7  ;;  %v2281_v10 = vpack.c.b16 %v2279_v5, %v2279_v5  ;;  %v5346_v22 = vld [vmem:[%s6791_s7 + $0x1c0] sm:$0xff]   ;;  %v5365_v3 = vld [vmem:[%s6791_s7 + $0x2cc] sm:$0xff]   ;;  %v5367_v5 = vld [vmem:[%s6791_s7 + $0x2d4] sm:$0xff]  }
 0x2cc   :  { %1884 = vmatpush1.bf16.msra.mxu1 %v5310_v21  ;;  %v5345_v21 = vld [vmem:[%s6791_s7 + $0x21c] sm:$0xff]  }
 0x2cd   :  { %1885 = vmatprep.subr.bf16.mxu1 %v5518_v7 }
 0x2ce   :  { %2041 = vmatpush1.bf16.msra.mxu0 %v5311_v23  ;;  %v5347_v23 = vld [vmem:[%s6791_s7 + $0x224] sm:$0xff]  }
 0x2cf   :  { %2042 = vmatprep.subr.bf16.mxu0 %v5518_v7 }
 0x2d0   :  { %1886 = vmatpush1.bf16.msra.mxu1 %v5312_v24  ;;  %v5348_v24 = vld [vmem:[%s6791_s7 + $0x1c8] sm:$0xff]  }
 0x2d1   :  { %1887 = vmatprep.subr.bf16.mxu1 %v5518_v7 }
 0x2d2   :  { %2043 = vmatpush1.bf16.msra.mxu0 %v5313_v25  ;;  %v5349_v25 = vld [vmem:[%s6791_s7 + $0x22c] sm:$0xff]  }
 0x2d3   :  { %2044 = vmatprep.subr.bf16.mxu0 %v5518_v7 }
 0x2d4   :  { %1888 = vmatpush1.bf16.msra.mxu1 %v5314_v26  ;;  %v5350_v26 = vld [vmem:[%s6791_s7 + $0x1d0] sm:$0xff]  }
 0x2d5   :  { %1889 = vmatprep.subr.bf16.mxu1 %v5518_v7 }
 0x2d6   :  { %2045 = vmatpush1.bf16.msra.mxu0 %v5315_v27  ;;  %v5351_v27 = vld [vmem:[%s6791_s7 + $0x234] sm:$0xff]  }
 0x2d7   :  { %2046 = vmatprep.subr.bf16.mxu0 %v5518_v7 }
 0x2d8   :  { %1890 = vmatpush1.bf16.msra.mxu1 %v5316_v28  ;;  %v5352_v28 = vld [vmem:[%s6791_s7 + $0x1d8] sm:$0xff]  }
 0x2d9   :  { %1891 = vmatprep.subr.bf16.mxu1 %v5518_v7 }
 0x2da   :  { %2047 = vmatpush1.bf16.msra.mxu0 %v5317_v29  ;;  %v5353_v29 = vld [vmem:[%s6791_s7 + $0x23c] sm:$0xff]  }
 0x2db   :  { %2048 = vmatprep.subr.bf16.mxu0 %v5518_v7 }
 0x2dc   :  { %1892 = vmatpush1.bf16.msra.mxu1 %v5318_v30  ;;  %v2081_v30 = vld [vmem:[#allocation2 + $0x10] sm:$0x4] }
 0x2dd   :  { %1893 = vmatprep.subr.bf16.mxu1 %v5518_v7 }
 0x2de   :  { %2049 = vmatpush1.bf16.msra.mxu0 %v5319_v31  ;;  %v5354_v31 = vld [vmem:[%s6791_s7 + $0x1e0] sm:$0xff]  }
 0x2df   :  { %2050 = vmatprep.subr.bf16.mxu0 %v5518_v7 }
 0x2e0   :  { %1894 = vmatpush1.bf16.msra.mxu1 %v5320_v32  ;;  %v2408_v32 = vld [vmem:[#allocation2 + $0x18] sm:$0x8] }
 0x2e1   :  { %1895 = vmatprep.subr.bf16.mxu1 %v5518_v7 }
 0x2e2   :  { %2051 = vmatpush1.bf16.msra.mxu0 %v5321_v33  ;;  %v2079_v33 = vld [vmem:[#allocation2] sm:$0x4] }
 0x2e3   :  { %2052 = vmatprep.subr.bf16.mxu0 %v5518_v7  ;;  %v2113_v40 = vunpack.c.l.b16 %v2079_v33 }
 0x2e4   :  { %1896 = vmatpush1.bf16.msra.mxu1 %v5322_v34  ;;  %v5355_v34 = vld [vmem:[%s6791_s7 + $0x244] sm:$0xff]  }
 0x2e5   :  { %1897 = vmatprep.subr.bf16.mxu1 %v5518_v7  ;;  %v2117_v47 = vrot.slane %v2113_v40, 4  ;;  %v2274_v53 = vrot.slane %v2113_v40, 5 }
 0x2e6   :  { %2053 = vmatpush1.bf16.msra.mxu0 %v5323_v35  ;;  %v2115_v35 = vunpack.c.l.b16 %v2081_v30  ;;  %v2732_v30 = vld [vmem:[#allocation2 + $0x8] sm:$0x10] }
 0x2e7   :  { %2054 = vmatprep.subr.bf16.mxu0 %v5518_v7 }
 0x2e8   :  { %1898 = vmatpush1.bf16.msra.mxu1 %v5324_v36  ;;  %v2406_v36 = vld [vmem:[#allocation2 + $0x8] sm:$0x8] }
 0x2e9   :  { %1899 = vmatprep.subr.bf16.mxu1 %v5518_v7 }
 0x2ea   :  { %2055 = vmatpush1.bf16.msra.mxu0 %v5325_v37  ;;  %v2442_v37 = vunpack.c.l.b16 %v2408_v32  ;;  %v5385_v32 = vld [vmem:[%s6791_s7 + $0x31c] ss:$0 sps:$4 sm:$0x11]  }
 0x2eb   :  { %2056 = vmatprep.subr.bf16.mxu0 %v5518_v7 }
 0x2ec   :  { %1900 = vmatpush1.bf16.msra.mxu1 %v5326_v38  ;;  %v5356_v38 = vld [vmem:[%s6791_s7 + $0x1e8] sm:$0xff]   ;;  %v2447_v45 = vrot.slane %v2442_v37, 5  ;;  %v2604_v50 = vrot.slane %v2442_v37, 6 }
 0x2ed   :  { %1901 = vmatprep.subr.bf16.mxu1 %v5518_v7 }
 0x2ee   :  { %2057 = vmatpush1.bf16.msra.mxu0 %v5327_v39  ;;  %v5358_v39 = vld [vmem:[%s6791_s7 + $0x1f0] ss:$0 sps:$4 sm:$0x11]  }
 0x2ef   :  { %2058 = vmatprep.subr.bf16.mxu0 %v5518_v7  ;;  %v2205_v46 = vand.u32 %v5358_v39, %v5882_v15  ;;  %v2688_v39 = vand.u32 %v5385_v32, %v5882_v15  ;;  %v5412_v32 = vld [vmem:[%s6791_s7 + $0x3e8] sm:$0xff]  }
 0x2f0   :  { %1902 = vmatpush1.bf16.msra.mxu1 %v5328_v41  ;;  %v2440_v41 = vunpack.c.l.b16 %v2406_v36 }
 0x2f1   :  { %1903 = vmatprep.subr.bf16.mxu1 %v5518_v7 }
 0x2f2   :  { %2059 = vmatpush1.bf16.msra.mxu0 %v5329_v44  ;;  %v2118_v44 = vrot.slane %v2115_v35, 3  ;;  %v2446_v49 = vrot.slane %v2440_v41, 6  ;;  %v2603_v55 = vrot.slane %v2440_v41, 7 }
 0x2f3   :  { %2060 = vmatprep.subr.bf16.mxu0 %v5518_v7 }
 0x2f4   :  { %1904 = vmatpush1.bf16.msra.mxu1 %v5330_v48  ;;  %v2275_v48 = vrot.slane %v2115_v35, 4  ;;  %v2448_v54 = vsel %vm1494_vm14, %v2447_v45, %v2446_v49  ;;  %v2605_v59 = vsel %vm1494_vm14, %v2604_v50, %v2603_v55  ;;  %v5387_v49 = vld [vmem:[%s6791_s7 + $0x384] sm:$0xff]   ;;  %v5391_v55 = vld [vmem:[%s6791_s7 + $0x394] sm:$0xff]  }
 0x2f5   :  { %1905 = vmatprep.subr.bf16.mxu1 %v5518_v7  ;;  %v2450_v60 = vpack.c.b16 %v2448_v54, %v2448_v54  ;;  %v2607_v63 = vpack.c.b16 %v2605_v59, %v2605_v59  ;;  %v5390_v54 = vld [vmem:[%s6791_s7 + $0x330] sm:$0xff]   ;;  %v5395_v59 = vld [vmem:[%s6791_s7 + $0x3a4] sm:$0xff]  }
 0x2f6   :  { %2061 = vmatpush1.bf16.msra.mxu0 %v5331_v52  ;;  %v2119_v52 = vsel %vm1494_vm14, %v2118_v44, %v2117_v47  ;;  %v2276_v57 = vsel %vm1494_vm14, %v2275_v48, %v2274_v53  ;;  %v5386_v44 = vld [vmem:[%s6791_s7 + $0x320] sm:$0xff]   ;;  %v5389_v53 = vld [vmem:[%s6791_s7 + $0x38c] sm:$0xff]  }
 0x2f7   :  { %2062 = vmatprep.subr.bf16.mxu0 %v5518_v7  ;;  %v2123_v58 = vpack.c.b16 %v2119_v52, %v2119_v52  ;;  %v2280_v62 = vpack.c.b16 %v2276_v57, %v2276_v57  ;;  %v5388_v52 = vld [vmem:[%s6791_s7 + $0x328] sm:$0xff]   ;;  %v5393_v57 = vld [vmem:[%s6791_s7 + $0x39c] sm:$0xff]  }
 0x2f8   :  { %1906 = vmatpush1.bf16.msra.mxu1 %v1879_v56  ;;  %v5360_v56 = vld [vmem:[%s6791_s7 + $0x258] sm:$0xff]  }
 0x2f9   :  { %2207 = vmatprep.subr.bf16.mxu1 %v5518_v7 }
 0x2fa   :  { %2063 = vmatpush1.bf16.msra.mxu0 %v2036_v61  ;;  %v5361_v61 = vld [vmem:[%s6791_s7 + $0x2bc] sm:$0xff]  }
 0x2fb   :  { %1914 = vmatmul.mubr.bf16.vlgmr.msra.gmra.mrb[8].mxu1 %v1797_v4  ;;  %2364 = vmatprep.subr.bf16.mxu0 %v5518_v7  ;;  %v5366_v4 = vld [vmem:[%s6791_s7 + $0x270] sm:$0xff]  }
 0x2fc   :  { %2208 = vmatpush1.bf16.msra.mxu1 %v5334_v2  ;;  %4655 = vmatprep.mubr.msk.bf16.mxu1 %vm774_vm13, %v2124_v6  ;;  %v5364_v2 = vld [vmem:[%s6791_s7 + $0x268] sm:$0xff]   ;;  %v5368_v6 = vld [vmem:[%s6791_s7 + $0x278] sm:$0xff]  }
 0x2fd   :  { %2071 = vmatmul.mubr.bf16.vlgmr.msra.gmra.mrb[16].mxu0 %v1954_v9  ;;  %2209 = vmatprep.subr.bf16.mxu1 %v5518_v7  ;;  %v5370_v9 = vld [vmem:[%s6791_s7 + $0x280] sm:$0xff]  }
 0x2fe   :  { %2365 = vmatpush1.bf16.msra.mxu0 %v5335_v8  ;;  %4694 = vmatprep.mubr.msk.bf16.mxu0 %vm774_vm13, %v2281_v10  ;;  %v5369_v8 = vld [vmem:[%s6791_s7 + $0x2dc] sm:$0xff]   ;;  %v5371_v10 = vld [vmem:[%s6791_s7 + $0x2e4] sm:$0xff]  }
 0x2ff   :  { %2366 = vmatprep.subr.bf16.mxu0 %v5518_v7 }
 0x300   :  { %2210 = vmatpush1.bf16.msra.mxu1 %v5336_v11  ;;  %v5372_v11 = vld [vmem:[%s6791_s7 + $0x288] sm:$0xff]  }
 0x301   :  { %2211 = vmatprep.subr.bf16.mxu1 %v5518_v7 }
 0x302   :  { %2367 = vmatpush1.bf16.msra.mxu0 %v5337_v12  ;;  %v5373_v12 = vld [vmem:[%s6791_s7 + $0x2ec] sm:$0xff]  }
 0x303   :  { %2368 = vmatprep.subr.bf16.mxu0 %v5518_v7 }
 0x304   :  { %2212 = vmatpush1.bf16.msra.mxu1 %v5338_v13  ;;  %v5374_v13 = vld [vmem:[%s6791_s7 + $0x290] sm:$0xff]  }
 0x305   :  { %2213 = vmatprep.subr.bf16.mxu1 %v5518_v7 }
 0x306   :  { %2369 = vmatpush1.bf16.msra.mxu0 %v5339_v14  ;;  %v5375_v14 = vld [vmem:[%s6791_s7 + $0x2f4] sm:$0xff]  }
 0x307   :  { %2370 = vmatprep.subr.bf16.mxu0 %v5518_v7 }
 0x308   :  { %2214 = vmatpush1.bf16.msra.mxu1 %v5340_v16  ;;  %v5376_v16 = vld [vmem:[%s6791_s7 + $0x298] sm:$0xff]  }
 0x309   :  { %2215 = vmatprep.subr.bf16.mxu1 %v5518_v7 }
 0x30a   :  { %2371 = vmatpush1.bf16.msra.mxu0 %v5341_v17  ;;  %v5377_v17 = vld [vmem:[%s6791_s7 + $0x2fc] sm:$0xff]  }
 0x30b   :  { %2372 = vmatprep.subr.bf16.mxu0 %v5518_v7 }
 0x30c   :  { %2216 = vmatpush1.bf16.msra.mxu1 %v5342_v18  ;;  %v5378_v18 = vld [vmem:[%s6791_s7 + $0x2a0] sm:$0xff]  }
 0x30d   :  { %2217 = vmatprep.subr.bf16.mxu1 %v5518_v7 }
 0x30e   :  { %2373 = vmatpush1.bf16.msra.mxu0 %v5343_v19  ;;  %v5379_v19 = vld [vmem:[%s6791_s7 + $0x304] sm:$0xff]  }
 0x30f   :  { %2374 = vmatprep.subr.bf16.mxu0 %v5518_v7 }
 0x310   :  { %2218 = vmatpush1.bf16.msra.mxu1 %v5344_v20  ;;  %v2407_v20 = vld [vmem:[#allocation2 + $0x10] sm:$0x8] }
 0x311   :  { %2219 = vmatprep.subr.bf16.mxu1 %v5518_v7 }
 0x312   :  { %2375 = vmatpush1.bf16.msra.mxu0 %v5345_v21  ;;  %v5380_v21 = vld [vmem:[%s6791_s7 + $0x2a8] sm:$0xff]  }
 0x313   :  { %2376 = vmatprep.subr.bf16.mxu0 %v5518_v7 }
 0x314   :  { %2220 = vmatpush1.bf16.msra.mxu1 %v5346_v22  ;;  %v2734_v22 = vld [vmem:[#allocation2 + $0x18] sm:$0x10] }
 0x315   :  { %2221 = vmatprep.subr.bf16.mxu1 %v5518_v7 }
 0x316   :  { %2377 = vmatpush1.bf16.msra.mxu0 %v5347_v23  ;;  %v2405_v23 = vld [vmem:[#allocation2] sm:$0x8] }
 0x317   :  { %2378 = vmatprep.subr.bf16.mxu0 %v5518_v7 }
 0x318   :  { %2222 = vmatpush1.bf16.msra.mxu1 %v5348_v24  ;;  %v5381_v24 = vld [vmem:[%s6791_s7 + $0x30c] sm:$0xff]  }
 0x319   :  { %2223 = vmatprep.subr.bf16.mxu1 %v5518_v7 }
 0x31a   :  { %2379 = vmatpush1.bf16.msra.mxu0 %v5349_v25  ;;  %v2441_v25 = vunpack.c.l.b16 %v2407_v20  ;;  %v5411_v20 = vld [vmem:[%s6791_s7 + $0x3e4] ss:$0 sps:$4 sm:$0x11]  }
 0x31b   :  { %2380 = vmatprep.subr.bf16.mxu0 %v5518_v7 }
 0x31c   :  { %2224 = vmatpush1.bf16.msra.mxu1 %v5350_v26  ;;  %v2768_v26 = vunpack.c.h.b16 %v2734_v22  ;;  %v2444_v33 = vrot.slane %v2441_v25, 5 }
 0x31d   :  { %2225 = vmatprep.subr.bf16.mxu1 %v5518_v7 }
 0x31e   :  { %2381 = vmatpush1.bf16.msra.mxu0 %v5351_v27  ;;  %v5382_v27 = vld [vmem:[%s6791_s7 + $0x2b0] sm:$0xff]   ;;  %v2771_v35 = vrot.slane %v2768_v26, 7 }
 0x31f   :  { %2382 = vmatprep.subr.bf16.mxu0 %v5518_v7 }
 0x320   :  { %2226 = vmatpush1.bf16.msra.mxu1 %v5352_v28  ;;  %v5384_v28 = vld [vmem:[%s6791_s7 + $0x2b8] ss:$0 sps:$4 sm:$0x11]  }
 0x321   :  { %2227 = vmatprep.subr.bf16.mxu1 %v5518_v7  ;;  %v2531_v36 = vand.u32 %v5384_v28, %v5882_v15 }
 0x322   :  { %2383 = vmatpush1.bf16.msra.mxu0 %v5353_v29  ;;  %v2439_v29 = vunpack.c.l.b16 %v2405_v23 }
 0x323   :  { %2384 = vmatprep.subr.bf16.mxu0 %v5518_v7 }
 0x324   :  { %2228 = vmatpush1.bf16.msra.mxu1 %v5354_v31  ;;  %v5383_v31 = vld [vmem:[%s6791_s7 + $0x314] sm:$0xff]   ;;  %v2443_v37 = vrot.slane %v2439_v29, 6  ;;  %v2600_v41 = vrot.slane %v2439_v29, 7 }
 0x325   :  { %2229 = vmatprep.subr.bf16.mxu1 %v5518_v7 }
 0x326   :  { %2385 = vmatpush1.bf16.msra.mxu0 %v5355_v34  ;;  %v2766_v34 = vunpack.c.h.b16 %v2732_v30  ;;  %v2445_v40 = vsel %vm1494_vm14, %v2444_v33, %v2443_v37  ;;  %v5413_v37 = vld [vmem:[%s6791_s7 + $0x44c] sm:$0xff]  }
 0x327   :  { %2386 = vmatprep.subr.bf16.mxu0 %v5518_v7 }
 0x328   :  { %2230 = vmatpush1.bf16.msra.mxu1 %v5356_v38  ;;  %v2601_v38 = vrot.slane %v2441_v25, 6  ;;  %v2926_v43 = vrot.slane %v2766_v34, 1 }
 0x329   :  { %2231 = vmatprep.subr.bf16.mxu1 %v5518_v7 }
 0x32a   :  { %2387 = vmatpush1.bf16.msra.mxu0 %v5357_v42  ;;  %v2772_v42 = vsel %vm1494_vm14, %v2771_v35, %v2766_v34  ;;  %v2602_v45 = vsel %vm1494_vm14, %v2601_v38, %v2600_v41  ;;  %v2927_v47 = vsel %vm1494_vm14, %v2768_v26, %v2926_v43 }
 0x32b   :  { %2388 = vmatprep.subr.bf16.mxu0 %v5518_v7  ;;  %v2774_v48 = vpack.c.b16 %v2772_v42, %v2772_v42  ;;  %v2606_v50 = vpack.c.b16 %v2602_v45, %v2602_v45  ;;  %v5415_v42 = vld [vmem:[%s6791_s7 + $0x454] sm:$0xff]  }
 0x32c   :  { %2232 = vmatpush1.bf16.msra.mxu1 %v2205_v46  ;;  %v2449_v46 = vpack.c.b16 %v2445_v40, %v2445_v40  ;;  %v5414_v40 = vld [vmem:[%s6791_s7 + $0x3f0] sm:$0xff]  }
 0x32d   :  { %2533 = vmatprep.subr.bf16.mxu1 %v5518_v7 }
 0x32e   :  { %2389 = vmatpush1.bf16.msra.mxu0 %v2362_v51  ;;  %v2929_v51 = vpack.c.b16 %v2927_v47, %v2927_v47 }
 0x32f   :  { %2240 = vmatmul.mubr.bf16.vlgmr.msra.gmra.mrb[12].mxu1 %v2123_v58  ;;  %2690 = vmatprep.subr.bf16.mxu0 %v5518_v7  ;;  %v5394_v58 = vld [vmem:[%s6791_s7 + $0x340] sm:$0xff]  }
 0x330   :  { %2534 = vmatpush1.bf16.msra.mxu1 %v5360_v56  ;;  %4733 = vmatprep.mubr.msk.bf16.mxu1 %vm774_vm13, %v2450_v60  ;;  %v5392_v56 = vld [vmem:[%s6791_s7 + $0x338] sm:$0xff]   ;;  %v5396_v60 = vld [vmem:[%s6791_s7 + $0x348] sm:$0xff]  }
 0x331   :  { %2397 = vmatmul.mubr.bf16.vlgmr.msra.gmra.mrb[20].mxu0 %v2280_v62  ;;  %2535 = vmatprep.subr.bf16.mxu1 %v5518_v7  ;;  %v5398_v62 = vld [vmem:[%s6791_s7 + $0x350] sm:$0xff]  }
 0x332   :  { %2691 = vmatpush1.bf16.msra.mxu0 %v5361_v61  ;;  %4772 = vmatprep.mubr.msk.bf16.mxu0 %vm774_vm13, %v2607_v63  ;;  %v5397_v61 = vld [vmem:[%s6791_s7 + $0x3ac] sm:$0xff]   ;;  %v5399_v63 = vld [vmem:[%s6791_s7 + $0x3b4] sm:$0xff]  }
 0x333   :  { %2692 = vmatprep.subr.bf16.mxu0 %v5518_v7 }
 0x334   :  { %2536 = vmatpush1.bf16.msra.mxu1 %v5362_v0  ;;  %v5400_v0 = vld [vmem:[%s6791_s7 + $0x358] sm:$0xff]  }
 0x335   :  { %2537 = vmatprep.subr.bf16.mxu1 %v5518_v7 }
 0x336   :  { %2693 = vmatpush1.bf16.msra.mxu0 %v5363_v1  ;;  %v5401_v1 = vld [vmem:[%s6791_s7 + $0x3bc] sm:$0xff]  }
 0x337   :  { %2694 = vmatprep.subr.bf16.mxu0 %v5518_v7 }
 0x338   :  { %2538 = vmatpush1.bf16.msra.mxu1 %v5364_v2  ;;  %v5402_v2 = vld [vmem:[%s6791_s7 + $0x360] sm:$0xff]  }
 0x339   :  { %2539 = vmatprep.subr.bf16.mxu1 %v5518_v7 }
 0x33a   :  { %2695 = vmatpush1.bf16.msra.mxu0 %v5365_v3  ;;  %v5403_v3 = vld [vmem:[%s6791_s7 + $0x3c4] sm:$0xff]  }
 0x33b   :  { %2696 = vmatprep.subr.bf16.mxu0 %v5518_v7 }
 0x33c   :  { %2540 = vmatpush1.bf16.msra.mxu1 %v5366_v4  ;;  %v5404_v4 = vld [vmem:[%s6791_s7 + $0x368] sm:$0xff]  }
 0x33d   :  { %2541 = vmatprep.subr.bf16.mxu1 %v5518_v7 }
 0x33e   :  { %2697 = vmatpush1.bf16.msra.mxu0 %v5367_v5  ;;  %v5405_v5 = vld [vmem:[%s6791_s7 + $0x3cc] sm:$0xff]  }
 0x33f   :  { %2698 = vmatprep.subr.bf16.mxu0 %v5518_v7 }
 0x340   :  { %2542 = vmatpush1.bf16.msra.mxu1 %v5368_v6  ;;  %v2733_v6 = vld [vmem:[#allocation2 + $0x10] sm:$0x10] }
 0x341   :  { %2543 = vmatprep.subr.bf16.mxu1 %v5518_v7 }
 0x342   :  { %2699 = vmatpush1.bf16.msra.mxu0 %v5369_v8  ;;  %v5406_v8 = vld [vmem:[%s6791_s7 + $0x370] sm:$0xff]  }
 0x343   :  { %2700 = vmatprep.subr.bf16.mxu0 %v5518_v7 }
 0x344   :  { %2544 = vmatpush1.bf16.msra.mxu1 %v5370_v9  ;;  %v3056_v9 = vld [vmem:[#allocation2 + $0x18] sm:$0x20] }
 0x345   :  { %2545 = vmatprep.subr.bf16.mxu1 %v5518_v7 }
 0x346   :  { %2701 = vmatpush1.bf16.msra.mxu0 %v5371_v10  ;;  %v5407_v10 = vld [vmem:[%s6791_s7 + $0x3d4] sm:$0xff]  }
 0x347   :  { %2702 = vmatprep.subr.bf16.mxu0 %v5518_v7 }
 0x348   :  { %2546 = vmatpush1.bf16.msra.mxu1 %v5372_v11  ;;  %v2767_v11 = vunpack.c.h.b16 %v2733_v6  ;;  %v3053_v6 = vld [vmem:[#allocation2] sm:$0x20] }
 0x349   :  { %2547 = vmatprep.subr.bf16.mxu1 %v5518_v7 }
 0x34a   :  { %2703 = vmatpush1.bf16.msra.mxu0 %v5373_v12  ;;  %v3054_v12 = vld [vmem:[#allocation2 + $0x8] sm:$0x20]  ;;  %v2769_v22 = vrot.slane %v2767_v11, 7 }
 0x34b   :  { %2704 = vmatprep.subr.bf16.mxu0 %v5518_v7 }
 0x34c   :  { %2548 = vmatpush1.bf16.msra.mxu1 %v5374_v13  ;;  %v2731_v13 = vld [vmem:[#allocation2] sm:$0x10] }
 0x34d   :  { %2549 = vmatprep.subr.bf16.mxu1 %v5518_v7 }
 0x34e   :  { %2705 = vmatpush1.bf16.msra.mxu0 %v5375_v14  ;;  %v3090_v14 = vunpack.c.h.b16 %v3056_v9 }
 0x34f   :  { %2706 = vmatprep.subr.bf16.mxu0 %v5518_v7 }
 0x350   :  { %2550 = vmatpush1.bf16.msra.mxu1 %v5376_v16  ;;  %v5408_v16 = vld [vmem:[%s6791_s7 + $0x378] sm:$0xff]   ;;  %v3095_v23 = vrot.slane %v3090_v14, 1  ;;  %v3252_v26 = vrot.slane %v3090_v14, 2  ;;  %v3087_v14 = vunpack.c.h.b16 %v3053_v6  ;;  %v3379_v6 = vld [vmem:[#allocation2] sm:$0x40] }
 0x351   :  { %2551 = vmatprep.subr.bf16.mxu1 %v5518_v7 }
 0x352   :  { %2707 = vmatpush1.bf16.msra.mxu0 %v5377_v17  ;;  %v5410_v17 = vld [vmem:[%s6791_s7 + $0x380] ss:$0 sps:$4 sm:$0x11]  }
 0x353   :  { %2708 = vmatprep.subr.bf16.mxu0 %v5518_v7 }
 0x354   :  { %2552 = vmatpush1.bf16.msra.mxu1 %v5378_v18  ;;  %v3088_v18 = vunpack.c.h.b16 %v3054_v12  ;;  %v5434_v12 = vld [vmem:[%s6791_s7 + $0x440] sm:$0xff]  }
 0x355   :  { %2553 = vmatprep.subr.bf16.mxu1 %v5518_v7 }
 0x356   :  { %2709 = vmatpush1.bf16.msra.mxu0 %v5379_v19  ;;  %v5409_v19 = vld [vmem:[%s6791_s7 + $0x3dc] sm:$0xff]   ;;  %v3094_v25 = vrot.slane %v3088_v18, 2 }
 0x357   :  { %2710 = vmatprep.subr.bf16.mxu0 %v5518_v7 }
 0x358   :  { %2554 = vmatpush1.bf16.msra.mxu1 %v5380_v21  ;;  %v2765_v21 = vunpack.c.h.b16 %v2731_v13  ;;  %v3096_v30 = vsel %vm1494_vm14, %v3095_v23, %v3094_v25  ;;  %v5436_v13 = vld [vmem:[%s6791_s7 + $0x448] ss:$0 sps:$4 sm:$0x11]  }
 0x359   :  { %2555 = vmatprep.subr.bf16.mxu1 %v5518_v7 }
 0x35a   :  { %2711 = vmatpush1.bf16.msra.mxu0 %v5381_v24  ;;  %v2855_v24 = vand.u32 %v5410_v17, %v5882_v15  ;;  %v2770_v28 = vsel %vm1494_vm14, %v2769_v22, %v2765_v21  ;;  %v2924_v29 = vrot.slane %v2765_v21, 1  ;;  %v5435_v17 = vld [vmem:[%s6791_s7 + $0x4a4] sm:$0xff]   ;;  %v3179_v21 = vand.u32 %v5436_v13, %v5882_v15  ;;  %v5462_v13 = vld [vmem:[%s6791_s7 + $0x510] ss:$0 sps:$4 sm:$0x11]  }
 0x35b   :  { %2712 = vmatprep.subr.bf16.mxu0 %v5518_v7  ;;  %v2773_v34 = vpack.c.b16 %v2770_v28, %v2770_v28  ;;  %v3091_v22 = vrot.slane %v3087_v14, 2  ;;  %v3248_v28 = vrot.slane %v3087_v14, 3  ;;  %v3413_v14 = vunpack.c.h.b16 %v3379_v6  ;;  %v5485_v6 = vld [vmem:[%s6791_s7 + $0x62c] sm:$0xff]  }
 0x35c   :  { %2556 = vmatpush1.bf16.msra.mxu1 %v5382_v27  ;;  %v3010_v27 = vand.u32 %v5411_v20, %v5882_v15  ;;  %v2925_v33 = vsel %vm1494_vm14, %v2767_v11, %v2924_v29 }
 0x35d   :  { %2557 = vmatprep.subr.bf16.mxu1 %v5518_v7  ;;  %v2928_v38 = vpack.c.b16 %v2925_v33, %v2925_v33 }
 0x35e   :  { %2713 = vmatpush1.bf16.msra.mxu0 %v5383_v31  ;;  %v3251_v31 = vrot.slane %v3088_v18, 3  ;;  %v5437_v18 = vld [vmem:[%s6791_s7 + $0x4ac] ss:$0 sps:$4 sm:$0x11]  }
 0x35f   :  { %2714 = vmatprep.subr.bf16.mxu0 %v5518_v7 }
 0x360   :  { %2558 = vmatpush1.bf16.msra.mxu1 %v2531_v36  ;;  %v3253_v35 = vsel %vm1494_vm14, %v3252_v26, %v3251_v31  ;;  %v3098_v36 = vpack.c.b16 %v3096_v30, %v3096_v30  ;;  %v3336_v26 = vand.u32 %v5437_v18, %v5882_v15  ;;  %v5438_v31 = vld [vmem:[%s6791_s7 + $0x4b0] sm:$0xff]  }
 0x361   :  { %2857 = vmatprep.subr.bf16.mxu1 %v5518_v7  ;;  %v5463_v18 = vld [vmem:[%s6791_s7 + $0x574] ss:$0 sps:$4 sm:$0x11]  }
 0x362   :  { %2715 = vmatpush1.bf16.msra.mxu0 %v2688_v39  ;;  %v3255_v39 = vpack.c.b16 %v3253_v35, %v3253_v35 }
 0x363   :  { %2566 = vmatmul.mubr.bf16.vlgmr.msra.gmra.mrb[16].mxu1 %v2449_v46  ;;  %3012 = vmatprep.subr.bf16.mxu0 %v5518_v7  ;;  %v5416_v46 = vld [vmem:[%s6791_s7 + $0x3f8] sm:$0xff]  }
 0x364   :  { %2858 = vmatpush1.bf16.msra.mxu1 %v5386_v44  ;;  %4811 = vmatprep.mubr.msk.bf16.mxu1 %vm774_vm13, %v2774_v48 }
 0x365   :  { %2723 = vmatmul.mubr.bf16.vlgmr.msra.gmra.mrb[24].mxu0 %v2606_v50  ;;  %2859 = vmatprep.subr.bf16.mxu1 %v5518_v7 }
 0x366   :  { %3013 = vmatpush1.bf16.msra.mxu0 %v5387_v49  ;;  %4850 = vmatprep.mubr.msk.bf16.mxu0 %vm774_vm13, %v2929_v51  ;;  %v5417_v51 = vld [vmem:[%s6791_s7 + $0x45c] sm:$0xff]  }
 0x367   :  { %3014 = vmatprep.subr.bf16.mxu0 %v5518_v7 }
 0x368   :  { %2860 = vmatpush1.bf16.msra.mxu1 %v5388_v52 }
 0x369   :  { %2861 = vmatprep.subr.bf16.mxu1 %v5518_v7 }
 0x36a   :  { %3015 = vmatpush1.bf16.msra.mxu0 %v5389_v53  ;;  %v5418_v53 = vld [vmem:[%s6791_s7 + $0x400] sm:$0xff]  }
 0x36b   :  { %3016 = vmatprep.subr.bf16.mxu0 %v5518_v7 }
 0x36c   :  { %2862 = vmatpush1.bf16.msra.mxu1 %v5390_v54  ;;  %v5419_v54 = vld [vmem:[%s6791_s7 + $0x464] sm:$0xff]  }
 0x36d   :  { %2863 = vmatprep.subr.bf16.mxu1 %v5518_v7 }
 0x36e   :  { %3017 = vmatpush1.bf16.msra.mxu0 %v5391_v55  ;;  %v5420_v55 = vld [vmem:[%s6791_s7 + $0x408] sm:$0xff]  }
 0x36f   :  { %3018 = vmatprep.subr.bf16.mxu0 %v5518_v7 }
 0x370   :  { %2864 = vmatpush1.bf16.msra.mxu1 %v5392_v56  ;;  %v5421_v56 = vld [vmem:[%s6791_s7 + $0x46c] sm:$0xff]  }
 0x371   :  { %2865 = vmatprep.subr.bf16.mxu1 %v5518_v7 }
 0x372   :  { %3019 = vmatpush1.bf16.msra.mxu0 %v5393_v57  ;;  %v5422_v57 = vld [vmem:[%s6791_s7 + $0x410] sm:$0xff]  }
 0x373   :  { %3020 = vmatprep.subr.bf16.mxu0 %v5518_v7 }
 0x374   :  { %2866 = vmatpush1.bf16.msra.mxu1 %v5394_v58  ;;  %v5423_v58 = vld [vmem:[%s6791_s7 + $0x474] sm:$0xff]  }
 0x375   :  { %2867 = vmatprep.subr.bf16.mxu1 %v5518_v7 }
 0x376   :  { %3021 = vmatpush1.bf16.msra.mxu0 %v5395_v59  ;;  %v5424_v59 = vld [vmem:[%s6791_s7 + $0x418] sm:$0xff]  }
 0x377   :  { %3022 = vmatprep.subr.bf16.mxu0 %v5518_v7 }
 0x378   :  { %2868 = vmatpush1.bf16.msra.mxu1 %v5396_v60  ;;  %v5425_v60 = vld [vmem:[%s6791_s7 + $0x47c] sm:$0xff]  }
 0x379   :  { %2869 = vmatprep.subr.bf16.mxu1 %v5518_v7 }
 0x37a   :  { %3023 = vmatpush1.bf16.msra.mxu0 %v5397_v61  ;;  %v5426_v61 = vld [vmem:[%s6791_s7 + $0x420] sm:$0xff]  }
 0x37b   :  { %3024 = vmatprep.subr.bf16.mxu0 %v5518_v7 }
 0x37c   :  { %2870 = vmatpush1.bf16.msra.mxu1 %v5398_v62  ;;  %v5427_v62 = vld [vmem:[%s6791_s7 + $0x484] sm:$0xff]  }
 0x37d   :  { %2871 = vmatprep.subr.bf16.mxu1 %v5518_v7 }
 0x37e   :  { %3025 = vmatpush1.bf16.msra.mxu0 %v5399_v63  ;;  %v5428_v63 = vld [vmem:[%s6791_s7 + $0x428] sm:$0xff]  }
 0x37f   :  { %3026 = vmatprep.subr.bf16.mxu0 %v5518_v7 }
 0x380   :  { %2872 = vmatpush1.bf16.msra.mxu1 %v5400_v0  ;;  %v5429_v0 = vld [vmem:[%s6791_s7 + $0x48c] sm:$0xff]  }
 0x381   :  { %2873 = vmatprep.subr.bf16.mxu1 %v5518_v7 }
 0x382   :  { %3027 = vmatpush1.bf16.msra.mxu0 %v5401_v1  ;;  %v5430_v1 = vld [vmem:[%s6791_s7 + $0x430] sm:$0xff]  }
 0x383   :  { %3028 = vmatprep.subr.bf16.mxu0 %v5518_v7 }
 0x384   :  { %2874 = vmatpush1.bf16.msra.mxu1 %v5402_v2  ;;  %v5431_v2 = vld [vmem:[%s6791_s7 + $0x494] sm:$0xff]  }
 0x385   :  { %2875 = vmatprep.subr.bf16.mxu1 %v5518_v7 }
 0x386   :  { %3029 = vmatpush1.bf16.msra.mxu0 %v5403_v3  ;;  %v3055_v3 = vld [vmem:[#allocation2 + $0x10] sm:$0x20] }
 0x387   :  { %3030 = vmatprep.subr.bf16.mxu0 %v5518_v7  ;;  %v3089_v9 = vunpack.c.h.b16 %v3055_v3  ;;  %v3381_v3 = vld [vmem:[#allocation2 + $0x10] sm:$0x40] }
 0x388   :  { %2876 = vmatpush1.bf16.msra.mxu1 %v5404_v4  ;;  %v5432_v4 = vld [vmem:[%s6791_s7 + $0x438] sm:$0xff]  }
 0x389   :  { %2877 = vmatprep.subr.bf16.mxu1 %v5518_v7  ;;  %v3249_v23 = vrot.slane %v3089_v9, 2 }
 0x38a   :  { %3031 = vmatpush1.bf16.msra.mxu0 %v5405_v5  ;;  %v3382_v5 = vld [vmem:[#allocation2 + $0x18] sm:$0x40] }
 0x38b   :  { %3032 = vmatprep.subr.bf16.mxu0 %v5518_v7  ;;  %v3416_v11 = vunpack.c.h.b16 %v3382_v5  ;;  %v3708_v5 = vld [vmem:[#allocation2 + $0x18] sm:$0x80] }
 0x38c   :  { %2878 = vmatpush1.bf16.msra.mxu1 %v5406_v8  ;;  %v5433_v8 = vld [vmem:[%s6791_s7 + $0x49c] sm:$0xff]  }
 0x38d   :  { %2879 = vmatprep.subr.bf16.mxu1 %v5518_v7  ;;  %v3421_v20 = vrot.slane %v3416_v11, 3  ;;  %v3578_v25 = vrot.slane %v3416_v11, 4  ;;  %v3742_v11 = vunpack.c.h.b16 %v3708_v5  ;;  %v3705_v5 = vld [vmem:[#allocation2] sm:$0x80] }
 0x38e   :  { %3033 = vmatpush1.bf16.msra.mxu0 %v5407_v10  ;;  %v3380_v10 = vld [vmem:[#allocation2 + $0x8] sm:$0x40] }
 0x38f   :  { %3034 = vmatprep.subr.bf16.mxu0 %v5518_v7 }
 0x390   :  { %2880 = vmatpush1.bf16.msra.mxu1 %v5408_v16  ;;  %v3414_v16 = vunpack.c.h.b16 %v3380_v10  ;;  %v3706_v10 = vld [vmem:[#allocation2 + $0x8] sm:$0x80] }
 0x391   :  { %2881 = vmatprep.subr.bf16.mxu1 %v5518_v7 }
 0x392   :  { %3035 = vmatpush1.bf16.msra.mxu0 %v5409_v19  ;;  %v3092_v19 = vrot.slane %v3089_v9, 1  ;;  %v3577_v30 = vrot.slane %v3414_v16, 5  ;;  %v3415_v9 = vunpack.c.h.b16 %v3381_v3  ;;  %v3707_v3 = vld [vmem:[#allocation2 + $0x10] sm:$0x80] }
 0x393   :  { %3036 = vmatprep.subr.bf16.mxu0 %v5518_v7 }
 0x394   :  { %2882 = vmatpush1.bf16.msra.mxu1 %v2855_v24  ;;  %v3420_v24 = vrot.slane %v3414_v16, 4  ;;  %v3740_v16 = vunpack.c.h.b16 %v3706_v10  ;;  %v5488_v10 = vld [vmem:[%s6791_s7 + $0x5d8] ss:$0 sps:$4 sm:$0x11]  }
 0x395   :  { %3181 = vmatprep.subr.bf16.mxu1 %v5518_v7 }
 0x396   :  { %3037 = vmatpush1.bf16.msra.mxu0 %v3010_v27  ;;  %v3093_v27 = vsel %vm1494_vm14, %v3092_v19, %v3091_v22  ;;  %v3422_v29 = vsel %vm1494_vm14, %v3421_v20, %v3420_v24  ;;  %v3418_v19 = vrot.slane %v3415_v9, 3  ;;  %v3747_v20 = vrot.slane %v3742_v11, 5 }
 0x397   :  { %2890 = vmatmul.mubr.bf16.vlgmr.msra.gmra.mrb[20].mxu1 %v2773_v34  ;;  %3338 = vmatprep.subr.bf16.mxu0 %v5518_v7  ;;  %v3097_v33 = vpack.c.b16 %v3093_v27, %v3093_v27  ;;  %v3579_v34 = vsel %vm1494_vm14, %v3578_v25, %v3577_v30  ;;  %v3424_v35 = vpack.c.b16 %v3422_v29, %v3422_v29  ;;  %v3417_v22 = vrot.slane %v3413_v14, 4 }
 0x398   :  { %3182 = vmatpush1.bf16.msra.mxu1 %v5412_v32  ;;  %4889 = vmatprep.mubr.msk.bf16.mxu1 %vm774_vm13, %v3098_v36  ;;  %v3250_v32 = vsel %vm1494_vm14, %v3249_v23, %v3248_v28  ;;  %v5439_v36 = vld [vmem:[%s6791_s7 + $0x514] sm:$0xff]   ;;  %v3575_v23 = vrot.slane %v3415_v9, 4  ;;  %v3746_v24 = vrot.slane %v3740_v16, 6  ;;  %v3904_v25 = vrot.slane %v3742_v11, 6 }
 0x399   :  { %3045 = vmatmul.mubr.bf16.vlgmr.msra.gmra.mrb[28].mxu0 %v2928_v38  ;;  %3183 = vmatprep.subr.bf16.mxu1 %v5518_v7  ;;  %v3581_v38 = vpack.c.b16 %v3579_v34, %v3579_v34  ;;  %v3419_v27 = vsel %vm1494_vm14, %v3418_v19, %v3417_v22  ;;  %v3574_v28 = vrot.slane %v3413_v14, 5  ;;  %v3903_v30 = vrot.slane %v3740_v16, 7  ;;  %v5486_v9 = vld [vmem:[%s6791_s7 + $0x5d0] sm:$0xff]  }
 0x39a   :  { %3339 = vmatpush1.bf16.msra.mxu0 %v5413_v37  ;;  %4928 = vmatprep.mubr.msk.bf16.mxu0 %vm774_vm13, %v3255_v39  ;;  %v1619_v41 = vpop.f32.mrb[4].mxu1  ;;  %v3254_v37 = vpack.c.b16 %v3250_v32, %v3250_v32  ;;  %v5440_v39 = vld [vmem:[%s6791_s7 + $0x4b8] sm:$0xff]   ;;  %v3748_v29 = vsel %vm1494_vm14, %v3747_v20, %v3746_v24  ;;  %v3739_v11 = vunpack.c.h.b16 %v3705_v5  ;;  %v3831_v16 = vand.u32 %v5488_v10, %v5882_v15 }
 0x39b   :  { %v1621_v43 = vpop.f32.mrb[5].mxu1  ;;  %3340 = vmatprep.subr.bf16.mxu0 %v5518_v7  ;;  %v3576_v32 = vsel %vm1494_vm14, %v3575_v23, %v3574_v28  ;;  %v3905_v34 = vsel %vm1494_vm14, %v3904_v25, %v3903_v30 }
 0x39c   :  { %3184 = vmatpush1.bf16.msra.mxu1 %v5414_v40  ;;  %v1622_v44 = vpop.f32.mrb[6].mxu1  ;;  %v1747_v45 = vpop.f32.mrb[12].mxu0 }
 0x39d   :  { %v6374_v47 = vadd.f32 %v1747_v45, %v1619_v41  ;;  %v1623_v48 = vpop.f32.mrb[7].mxu1  ;;  %v1749_v49 = vpop.f32.mrb[13].mxu0  ;;  %3185 = vmatprep.subr.bf16.mxu1 %v5518_v7  ;;  %v5441_v41 = vld [vmem:[%s6791_s7 + $0x51c] sm:$0xff]  }
 0x39e   :  { %3341 = vmatpush1.bf16.msra.mxu0 %v5415_v42  ;;  %v1750_v50 = vpop.f32.mrb[14].mxu0 }
 0x39f   :  { %v1751_v52 = vpop.f32.mrb[15].mxu0  ;;  %3342 = vmatprep.subr.bf16.mxu0 %v5518_v7 }
 0x3a0   :  { %3186 = vmatpush1.bf16.msra.mxu1 %v5416_v46  ;;  %v5442_v46 = vld [vmem:[%s6791_s7 + $0x4c0] sm:$0xff]  }
 0x3a1   :  { %3187 = vmatprep.subr.bf16.mxu1 %v5518_v7 }
 0x3a2   :  { %3343 = vmatpush1.bf16.msra.mxu0 %v5417_v51 }
 0x3a3   :  { %3344 = vmatprep.subr.bf16.mxu0 %v5518_v7 }
 0x3a4   :  { %3188 = vmatpush1.bf16.msra.mxu1 %v5418_v53  ;;  %v5444_v53 = vld [vmem:[%s6791_s7 + $0x4c8] sm:$0xff]  }
 0x3a5   :  { %3189 = vmatprep.subr.bf16.mxu1 %v5518_v7 }
 0x3a6   :  { %3345 = vmatpush1.bf16.msra.mxu0 %v5419_v54  ;;  %v5445_v54 = vld [vmem:[%s6791_s7 + $0x52c] sm:$0xff]  }
 0x3a7   :  { %3346 = vmatprep.subr.bf16.mxu0 %v5518_v7 }
 0x3a8   :  { %3190 = vmatpush1.bf16.msra.mxu1 %v5420_v55  ;;  %v5446_v55 = vld [vmem:[%s6791_s7 + $0x4d0] sm:$0xff]  }
 0x3a9   :  { %3191 = vmatprep.subr.bf16.mxu1 %v5518_v7 }
 0x3aa   :  { %3347 = vmatpush1.bf16.msra.mxu0 %v5421_v56  ;;  %v5447_v56 = vld [vmem:[%s6791_s7 + $0x534] sm:$0xff]  }
 0x3ab   :  { %3348 = vmatprep.subr.bf16.mxu0 %v5518_v7 }
 0x3ac   :  { %3192 = vmatpush1.bf16.msra.mxu1 %v5422_v57  ;;  %v5448_v57 = vld [vmem:[%s6791_s7 + $0x4d8] sm:$0xff]  }
 0x3ad   :  { %3193 = vmatprep.subr.bf16.mxu1 %v5518_v7 }
 0x3ae   :  { %3349 = vmatpush1.bf16.msra.mxu0 %v5423_v58  ;;  %v5449_v58 = vld [vmem:[%s6791_s7 + $0x53c] sm:$0xff]  }
 0x3af   :  { %3350 = vmatprep.subr.bf16.mxu0 %v5518_v7 }
 0x3b0   :  { %3194 = vmatpush1.bf16.msra.mxu1 %v5424_v59  ;;  %v5450_v59 = vld [vmem:[%s6791_s7 + $0x4e0] sm:$0xff]  }
 0x3b1   :  { %3195 = vmatprep.subr.bf16.mxu1 %v5518_v7 }
 0x3b2   :  { %3351 = vmatpush1.bf16.msra.mxu0 %v5425_v60  ;;  %v5451_v60 = vld [vmem:[%s6791_s7 + $0x544] sm:$0xff]  }
 0x3b3   :  { %3352 = vmatprep.subr.bf16.mxu0 %v5518_v7 }
 0x3b4   :  { %3196 = vmatpush1.bf16.msra.mxu1 %v5426_v61  ;;  %v5452_v61 = vld [vmem:[%s6791_s7 + $0x4e8] sm:$0xff]  }
 0x3b5   :  { %3197 = vmatprep.subr.bf16.mxu1 %v5518_v7 }
 0x3b6   :  { %3353 = vmatpush1.bf16.msra.mxu0 %v5427_v62  ;;  %v5453_v62 = vld [vmem:[%s6791_s7 + $0x54c] sm:$0xff]  }
 0x3b7   :  { %3354 = vmatprep.subr.bf16.mxu0 %v5518_v7 }
 0x3b8   :  { %3198 = vmatpush1.bf16.msra.mxu1 %v5428_v63  ;;  %v5454_v63 = vld [vmem:[%s6791_s7 + $0x4f0] sm:$0xff]  }
 0x3b9   :  { %3199 = vmatprep.subr.bf16.mxu1 %v5518_v7 }
 0x3ba   :  { %3355 = vmatpush1.bf16.msra.mxu0 %v5429_v0  ;;  %v5455_v0 = vld [vmem:[%s6791_s7 + $0x554] sm:$0xff]  }
 0x3bb   :  { %3356 = vmatprep.subr.bf16.mxu0 %v5518_v7 }
 0x3bc   :  { %3200 = vmatpush1.bf16.msra.mxu1 %v5430_v1  ;;  %v5456_v1 = vld [vmem:[%s6791_s7 + $0x4f8] sm:$0xff]  }
 0x3bd   :  { %3201 = vmatprep.subr.bf16.mxu1 %v5518_v7 }
 0x3be   :  { %3357 = vmatpush1.bf16.msra.mxu0 %v5431_v2  ;;  %v5457_v2 = vld [vmem:[%s6791_s7 + $0x55c] sm:$0xff]  }
 0x3bf   :  { %3358 = vmatprep.subr.bf16.mxu0 %v5518_v7 }
 0x3c0   :  { %3202 = vmatpush1.bf16.msra.mxu1 %v5432_v4  ;;  %v5458_v4 = vld [vmem:[%s6791_s7 + $0x500] sm:$0xff]  }
 0x3c1   :  { %3203 = vmatprep.subr.bf16.mxu1 %v5518_v7 }
 0x3c2   :  { %3359 = vmatpush1.bf16.msra.mxu0 %v5433_v8  ;;  %v5459_v8 = vld [vmem:[%s6791_s7 + $0x564] sm:$0xff]  }
 0x3c3   :  { %3360 = vmatprep.subr.bf16.mxu0 %v5518_v7 }
 0x3c4   :  { %3204 = vmatpush1.bf16.msra.mxu1 %v5434_v12  ;;  %v5460_v12 = vld [vmem:[%s6791_s7 + $0x508] sm:$0xff]  }
 0x3c5   :  { %3205 = vmatprep.subr.bf16.mxu1 %v5518_v7 }
 0x3c6   :  { %3361 = vmatpush1.bf16.msra.mxu0 %v5435_v17  ;;  %v5461_v17 = vld [vmem:[%s6791_s7 + $0x56c] sm:$0xff]  }
 0x3c7   :  { %3362 = vmatprep.subr.bf16.mxu0 %v5518_v7 }
 0x3c8   :  { %3206 = vmatpush1.bf16.msra.mxu1 %v3179_v21  ;;  %v3505_v21 = vand.u32 %v5462_v13, %v5882_v15  ;;  %v5489_v13 = vld [vmem:[%s6791_s7 + $0x63c] ss:$0 sps:$4 sm:$0x11]  }
 0x3c9   :  { %3507 = vmatprep.subr.bf16.mxu1 %v5518_v7  ;;  %v3988_v19 = vand.u32 %v5489_v13, %v5882_v15  ;;  %v4070_v13 = vld [vmem:[%s6786_s2] sm:$0x3] }
 0x3ca   :  { %3363 = vmatpush1.bf16.msra.mxu0 %v3336_v26  ;;  %v3662_v26 = vand.u32 %v5463_v18, %v5882_v15 }
 0x3cb   :  { %3214 = vmatmul.mubr.bf16.vlgmr.msra.gmra.mrb[24].mxu1 %v3097_v33  ;;  %3664 = vmatprep.subr.bf16.mxu0 %v5518_v7  ;;  %v3423_v33 = vpack.c.b16 %v3419_v27, %v3419_v27 }
 0x3cc   :  { %3508 = vmatpush1.bf16.msra.mxu1 %v5438_v31  ;;  %4967 = vmatprep.mubr.msk.bf16.mxu1 %vm774_vm13, %v3424_v35  ;;  %v5464_v31 = vld [vmem:[%s6791_s7 + $0x578] sm:$0xff]   ;;  %v3750_v35 = vpack.c.b16 %v3748_v29, %v3748_v29 }
 0x3cd   :  { %3371 = vmatmul.mubr.bf16.vlgmr.msra.gmra.mrb[32].mxu0 %v3254_v37  ;;  %3509 = vmatprep.subr.bf16.mxu1 %v5518_v7  ;;  %v3580_v37 = vpack.c.b16 %v3576_v32, %v3576_v32 }
 0x3ce   :  { %v1915_v40 = vpop.f32.mrb[8].mxu1  ;;  %3665 = vmatpush1.bf16.msra.mxu0 %v5439_v36  ;;  %5006 = vmatprep.mubr.msk.bf16.mxu0 %vm774_vm13, %v3581_v38  ;;  %v5465_v36 = vld [vmem:[%s6791_s7 + $0x5dc] sm:$0xff]   ;;  %v3907_v38 = vpack.c.b16 %v3905_v34, %v3905_v34 }
 0x3cf   :  { %v1921_v42 = vadd.f32 %v1915_v40, %v6374_v47  ;;  %v1917_v43 = vpop.f32.mrb[9].mxu1  ;;  %3666 = vmatprep.subr.bf16.mxu0 %v5518_v7  ;;  %v5443_v47 = vld [vmem:[%s6791_s7 + $0x524] sm:$0xff]  }
 0x3d0   :  { %v1918_v44 = vpop.f32.mrb[10].mxu1  ;;  %v2072_v45 = vpop.f32.mrb[16].mxu0  ;;  %3510 = vmatpush1.bf16.msra.mxu1 %v5440_v39  ;;  %v5466_v39 = vld [vmem:[%s6791_s7 + $0x580] sm:$0xff]  }
 0x3d1   :  { %v6489_v48 = vadd.f32 %v2072_v45, %v1921_v42  ;;  %v1919_v49 = vpop.f32.mrb[11].mxu1  ;;  %v2074_v50 = vpop.f32.mrb[17].mxu0  ;;  %3511 = vmatprep.subr.bf16.mxu1 %v5518_v7 }
 0x3d2   :  { %v2075_v51 = vpop.f32.mrb[18].mxu0  ;;  %3667 = vmatpush1.bf16.msra.mxu0 %v5441_v41  ;;  %v5467_v41 = vld [vmem:[%s6791_s7 + $0x5e4] sm:$0xff]  }
 0x3d3   :  { %v2076_v52 = vpop.f32.mrb[19].mxu0  ;;  %3668 = vmatprep.subr.bf16.mxu0 %v5518_v7 }
 0x3d4   :  { %3512 = vmatpush1.bf16.msra.mxu1 %v5442_v46  ;;  %v5468_v46 = vld [vmem:[%s6791_s7 + $0x588] sm:$0xff]  }
 0x3d5   :  { %3513 = vmatprep.subr.bf16.mxu1 %v5518_v7 }
 0x3d6   :  { %3669 = vmatpush1.bf16.msra.mxu0 %v5443_v47 }
 0x3d7   :  { %3670 = vmatprep.subr.bf16.mxu0 %v5518_v7 }
 0x3d8   :  { %3514 = vmatpush1.bf16.msra.mxu1 %v5444_v53  ;;  %v5470_v53 = vld [vmem:[%s6791_s7 + $0x590] sm:$0xff]  }
 0x3d9   :  { %3515 = vmatprep.subr.bf16.mxu1 %v5518_v7 }
 0x3da   :  { %3671 = vmatpush1.bf16.msra.mxu0 %v5445_v54  ;;  %v5471_v54 = vld [vmem:[%s6791_s7 + $0x5f4] sm:$0xff]  }
 0x3db   :  { %3672 = vmatprep.subr.bf16.mxu0 %v5518_v7 }
 0x3dc   :  { %3516 = vmatpush1.bf16.msra.mxu1 %v5446_v55  ;;  %v5472_v55 = vld [vmem:[%s6791_s7 + $0x598] sm:$0xff]  }
 0x3dd   :  { %3517 = vmatprep.subr.bf16.mxu1 %v5518_v7 }
 0x3de   :  { %3673 = vmatpush1.bf16.msra.mxu0 %v5447_v56  ;;  %v5473_v56 = vld [vmem:[%s6791_s7 + $0x5fc] sm:$0xff]  }
 0x3df   :  { %3674 = vmatprep.subr.bf16.mxu0 %v5518_v7 }
 0x3e0   :  { %3518 = vmatpush1.bf16.msra.mxu1 %v5448_v57  ;;  %v5474_v57 = vld [vmem:[%s6791_s7 + $0x5a0] sm:$0xff]  }
 0x3e1   :  { %3519 = vmatprep.subr.bf16.mxu1 %v5518_v7 }
 0x3e2   :  { %3675 = vmatpush1.bf16.msra.mxu0 %v5449_v58  ;;  %v5475_v58 = vld [vmem:[%s6791_s7 + $0x604] sm:$0xff]  }
 0x3e3   :  { %3676 = vmatprep.subr.bf16.mxu0 %v5518_v7 }
 0x3e4   :  { %3520 = vmatpush1.bf16.msra.mxu1 %v5450_v59  ;;  %v5476_v59 = vld [vmem:[%s6791_s7 + $0x5a8] sm:$0xff]  }
 0x3e5   :  { %3521 = vmatprep.subr.bf16.mxu1 %v5518_v7 }
 0x3e6   :  { %3677 = vmatpush1.bf16.msra.mxu0 %v5451_v60  ;;  %v5477_v60 = vld [vmem:[%s6791_s7 + $0x60c] sm:$0xff]  }
 0x3e7   :  { %3678 = vmatprep.subr.bf16.mxu0 %v5518_v7 }
 0x3e8   :  { %3522 = vmatpush1.bf16.msra.mxu1 %v5452_v61  ;;  %v5478_v61 = vld [vmem:[%s6791_s7 + $0x5b0] sm:$0xff]  }
 0x3e9   :  { %3523 = vmatprep.subr.bf16.mxu1 %v5518_v7 }
 0x3ea   :  { %3679 = vmatpush1.bf16.msra.mxu0 %v5453_v62  ;;  %v5479_v62 = vld [vmem:[%s6791_s7 + $0x614] sm:$0xff]  }
 0x3eb   :  { %3680 = vmatprep.subr.bf16.mxu0 %v5518_v7 }
 0x3ec   :  { %3524 = vmatpush1.bf16.msra.mxu1 %v5454_v63  ;;  %v5480_v63 = vld [vmem:[%s6791_s7 + $0x5b8] sm:$0xff]  }
 0x3ed   :  { %3525 = vmatprep.subr.bf16.mxu1 %v5518_v7 }
 0x3ee   :  { %3681 = vmatpush1.bf16.msra.mxu0 %v5455_v0  ;;  %v5481_v0 = vld [vmem:[%s6791_s7 + $0x61c] sm:$0xff]  }
 0x3ef   :  { %3682 = vmatprep.subr.bf16.mxu0 %v5518_v7 }
 0x3f0   :  { %3526 = vmatpush1.bf16.msra.mxu1 %v5456_v1  ;;  %v5482_v1 = vld [vmem:[%s6791_s7 + $0x5c0] sm:$0xff]  }
 0x3f1   :  { %3527 = vmatprep.subr.bf16.mxu1 %v5518_v7 }
 0x3f2   :  { %3683 = vmatpush1.bf16.msra.mxu0 %v5457_v2  ;;  %v5483_v2 = vld [vmem:[%s6791_s7 + $0x624] sm:$0xff]  }
 0x3f3   :  { %3684 = vmatprep.subr.bf16.mxu0 %v5518_v7 }
 0x3f4   :  { %3528 = vmatpush1.bf16.msra.mxu1 %v5458_v4  ;;  %v5484_v4 = vld [vmem:[%s6791_s7 + $0x5c8] sm:$0xff]  }
 0x3f5   :  { %3529 = vmatprep.subr.bf16.mxu1 %v5518_v7 }
 0x3f6   :  { %3685 = vmatpush1.bf16.msra.mxu0 %v5459_v8  ;;  %v3741_v8 = vunpack.c.h.b16 %v3707_v3 }
 0x3f7   :  { %3686 = vmatprep.subr.bf16.mxu0 %v5518_v7 }
 0x3f8   :  { %3530 = vmatpush1.bf16.msra.mxu1 %v5460_v12  ;;  %v5487_v12 = vld [vmem:[%s6791_s7 + $0x634] sm:$0xff]   ;;  %v3744_v14 = vrot.slane %v3741_v8, 5  ;;  %v3901_v18 = vrot.slane %v3741_v8, 6 }
 0x3f9   :  { %3531 = vmatprep.subr.bf16.mxu1 %v5518_v7 }
 0x3fa   :  { %3687 = vmatpush1.bf16.msra.mxu0 %v5461_v17  ;;  %v3743_v17 = vrot.slane %v3739_v11, 6 }
 0x3fb   :  { %3688 = vmatprep.subr.bf16.mxu0 %v5518_v7 }
 0x3fc   :  { %3532 = vmatpush1.bf16.msra.mxu1 %v3505_v21  ;;  %v3745_v20 = vsel %vm1494_vm14, %v3744_v14, %v3743_v17  ;;  %v3900_v21 = vrot.slane %v3739_v11, 7 }
 0x3fd   :  { %3833 = vmatprep.subr.bf16.mxu1 %v5518_v7  ;;  %v3749_v23 = vpack.c.b16 %v3745_v20, %v3745_v20  ;;  %v5490_v20 = vld [vmem:[%s6795_s11] sm:$0xff]  }
 0x3fe   :  { %3689 = vmatpush1.bf16.msra.mxu0 %v3662_v26  ;;  %v3902_v22 = vsel %vm1494_vm14, %v3901_v18, %v3900_v21  ;;  %v5491_v21 = vld [vmem:[%s6795_s11 + $0x14] sm:$0xff]  }
 0x3ff   :  { %3540 = vmatmul.mubr.bf16.vlgmr.msra.gmra.mrb[28].mxu1 %v3423_v33  ;;  %3990 = vmatprep.subr.bf16.mxu0 %v5518_v7  ;;  %v3906_v24 = vpack.c.b16 %v3902_v22, %v3902_v22  ;;  %v5528_v22 = vmov 0.0  }
 0x400   :  { %3834 = vmatpush1.bf16.msra.mxu1 %v5464_v31  ;;  %5045 = vmatprep.mubr.msk.bf16.mxu1 %vm774_vm13, %v3750_v35 }
 0x401   :  { %3697 = vmatmul.mubr.bf16.vlgmr.msra.gmra.mrb[36].mxu0 %v3580_v37  ;;  %3835 = vmatprep.subr.bf16.mxu1 %v5518_v7 }
 0x402   :  { %v2241_v40 = vpop.f32.mrb[12].mxu1  ;;  %3991 = vmatpush1.bf16.msra.mxu0 %v5465_v36  ;;  %5084 = vmatprep.mubr.msk.bf16.mxu0 %vm774_vm13, %v3907_v38 }
 0x403   :  { %v2247_v42 = vadd.f32 %v2241_v40, %v6489_v48  ;;  %v2243_v43 = vpop.f32.mrb[13].mxu1  ;;  %3992 = vmatprep.subr.bf16.mxu0 %v5518_v7  ;;  %v5469_v48 = vld [vmem:[%s6791_s7 + $0x5ec] sm:$0xff]  }
 0x404   :  { %v2244_v44 = vpop.f32.mrb[14].mxu1  ;;  %v2398_v45 = vpop.f32.mrb[20].mxu0  ;;  %3836 = vmatpush1.bf16.msra.mxu1 %v5466_v39 }
 0x405   :  { %v6604_v49 = vadd.f32 %v2398_v45, %v2247_v42  ;;  %v2245_v50 = vpop.f32.mrb[15].mxu1  ;;  %v2400_v51 = vpop.f32.mrb[21].mxu0  ;;  %3837 = vmatprep.subr.bf16.mxu1 %v5518_v7 }
 0x406   :  { %v2401_v47 = vpop.f32.mrb[22].mxu0  ;;  %3993 = vmatpush1.bf16.msra.mxu0 %v5467_v41 }
 0x407   :  { %v2402_v52 = vpop.f32.mrb[23].mxu0  ;;  %3994 = vmatprep.subr.bf16.mxu0 %v5518_v7 }
 0x408   :  { %3838 = vmatpush1.bf16.msra.mxu1 %v5468_v46 }
 0x409   :  { %3839 = vmatprep.subr.bf16.mxu1 %v5518_v7 }
 0x40a   :  { %3995 = vmatpush1.bf16.msra.mxu0 %v5469_v48 }
 0x40b   :  { %3996 = vmatprep.subr.bf16.mxu0 %v5518_v7 }
 0x40c   :  { %3840 = vmatpush1.bf16.msra.mxu1 %v5470_v53 }
 0x40d   :  { %3841 = vmatprep.subr.bf16.mxu1 %v5518_v7 }
 0x40e   :  { %3997 = vmatpush1.bf16.msra.mxu0 %v5471_v54 }
 0x40f   :  { %3998 = vmatprep.subr.bf16.mxu0 %v5518_v7 }
 0x410   :  { %3842 = vmatpush1.bf16.msra.mxu1 %v5472_v55 }
 0x411   :  { %3843 = vmatprep.subr.bf16.mxu1 %v5518_v7 }
 0x412   :  { %3999 = vmatpush1.bf16.msra.mxu0 %v5473_v56 }
 0x413   :  { %4000 = vmatprep.subr.bf16.mxu0 %v5518_v7 }
 0x414   :  { %3844 = vmatpush1.bf16.msra.mxu1 %v5474_v57 }
 0x415   :  { %3845 = vmatprep.subr.bf16.mxu1 %v5518_v7 }
 0x416   :  { %4001 = vmatpush1.bf16.msra.mxu0 %v5475_v58 }
 0x417   :  { %4002 = vmatprep.subr.bf16.mxu0 %v5518_v7 }
 0x418   :  { %3846 = vmatpush1.bf16.msra.mxu1 %v5476_v59 }
 0x419   :  { %3847 = vmatprep.subr.bf16.mxu1 %v5518_v7 }
 0x41a   :  { %4003 = vmatpush1.bf16.msra.mxu0 %v5477_v60 }
 0x41b   :  { %4004 = vmatprep.subr.bf16.mxu0 %v5518_v7 }
 0x41c   :  { %3848 = vmatpush1.bf16.msra.mxu1 %v5478_v61 }
 0x41d   :  { %3849 = vmatprep.subr.bf16.mxu1 %v5518_v7 }
 0x41e   :  { %4005 = vmatpush1.bf16.msra.mxu0 %v5479_v62 }
 0x41f   :  { %4006 = vmatprep.subr.bf16.mxu0 %v5518_v7 }
 0x420   :  { %3850 = vmatpush1.bf16.msra.mxu1 %v5480_v63 }
 0x421   :  { %3851 = vmatprep.subr.bf16.mxu1 %v5518_v7 }
 0x422   :  { %4007 = vmatpush1.bf16.msra.mxu0 %v5481_v0 }
 0x423   :  { %4008 = vmatprep.subr.bf16.mxu0 %v5518_v7 }
 0x424   :  { %3852 = vmatpush1.bf16.msra.mxu1 %v5482_v1 }
 0x425   :  { %3853 = vmatprep.subr.bf16.mxu1 %v5518_v7 }
 0x426   :  { %4009 = vmatpush1.bf16.msra.mxu0 %v5483_v2 }
 0x427   :  { %4010 = vmatprep.subr.bf16.mxu0 %v5518_v7 }
 0x428   :  { %3854 = vmatpush1.bf16.msra.mxu1 %v5484_v4  ;;  %v5085_v4 = vld [vmem:[%s6792_s8] ss:$0 sm:$0xff] }
 0x429   :  { %3855 = vmatprep.subr.bf16.mxu1 %v5518_v7 }
 0x42a   :  { %4011 = vmatpush1.bf16.msra.mxu0 %v5485_v6 }
 0x42b   :  { %4012 = vmatprep.subr.bf16.mxu0 %v5518_v7 }
 0x42c   :  { %3856 = vmatpush1.bf16.msra.mxu1 %v5486_v9 }
 0x42d   :  { %3857 = vmatprep.subr.bf16.mxu1 %v5518_v7 }
 0x42e   :  { %4013 = vmatpush1.bf16.msra.mxu0 %v5487_v12 }
 0x42f   :  { %4014 = vmatprep.subr.bf16.mxu0 %v5518_v7 }
 0x430   :  { %3858 = vmatpush1.bf16.msra.mxu1 %v3831_v16 }
 0x431   :  { %5135 = vmatprep.subr.bf16.mxu1 %v5528_v22 }
 0x432   :  { %4015 = vmatpush1.bf16.msra.mxu0 %v3988_v19 }
 0x433   :  { %3866 = vmatmul.mubr.bf16.vlgmr.msra.gmra.mrb[32].mxu1 %v3749_v23  ;;  %5153 = vmatprep.subr.bf16.mxu0 %v5528_v22  ;;  %v5492_v23 = vld [vmem:[%s6795_s11 + $0x8] sm:$0xff]  }
 0x434   :  { %5136 = vmatpush3.bf16.msra.mxu1 %v5490_v20  ;;  %5141 = vmatprep.mubr.msk.bf16.mxu1 %vm5529_vm1, %v5528_v22 }
 0x435   :  { %4023 = vmatmul.mubr.bf16.vlgmr.msra.gmra.mrb[40].mxu0 %v3906_v24  ;;  %v5493_v24 = vld [vmem:[%s6795_s11 + $0x1c] sm:$0xff]   ;;  %5137 = vmatprep.subr.bf16.mxu1 %v5528_v22 }
 0x436   :  { %v2567_v25 = vpop.f32.mrb[16].mxu1  ;;  %5154 = vmatpush3.bf16.msra.mxu0 %v5491_v21  ;;  %5159 = vmatprep.mubr.msk.bf16.mxu0 %vm5529_vm1, %v5528_v22 }
 0x437   :  { %v2573_v26 = vadd.f32 %v2567_v25, %v6604_v49  ;;  %v2569_v27 = vpop.f32.mrb[17].mxu1  ;;  %5155 = vmatprep.subr.bf16.mxu0 %v5528_v22  ;;  %v5494_v25 = vld [vmem:[%s6795_s11 + $0x10] ss:$0 sps:$4 sm:$0x33]  }
 0x438   :  { %v2570_v28 = vpop.f32.mrb[18].mxu1  ;;  %v2724_v29 = vpop.f32.mrb[24].mxu0  ;;  %5138 = vmatpush3.bf16.msra.mxu1 %v5492_v23  ;;  %v4111_v27 = vsel %vm4109_vm0, %v5494_v25, 0 }
 0x439   :  { %v2730_v15 = vadd.f32 %v2724_v29, %v2573_v26  ;;  %v2571_v30 = vpop.f32.mrb[19].mxu1  ;;  %v2726_v31 = vpop.f32.mrb[25].mxu0  ;;  %5139 = vmatprep.subr.bf16.mxu1 %v5528_v22  ;;  %v5495_v26 = vld [vmem:[%s6795_s11 + $0x24] ss:$0 sps:$4 sm:$0x33]  }
 0x43a   :  { %v2727_v32 = vpop.f32.mrb[26].mxu0  ;;  %5156 = vmatpush3.bf16.msra.mxu0 %v5493_v24  ;;  %v4266_v28 = vsel %vm4109_vm0, %v5495_v26, 0 }
 0x43b   :  { %v2728_v33 = vpop.f32.mrb[27].mxu0  ;;  %5157 = vmatprep.subr.bf16.mxu0 %v5528_v22  ;;  %v5086_v32 = vld [vmem:[%s6793_s9] ss:$0 sm:$0xff] }
 0x43c   :  { %5140 = vmatpush3.bf16.msra.mxu1 %v4111_v27 }
 0x43d   :  { %5145 = vmatprep.subr.bf16.mxu1 %v5528_v22 }
 0x43e   :  { %5158 = vmatpush3.bf16.msra.mxu0 %v4266_v28 }
 0x46a   :  { %v2891_v7 = vpop.f32.mrb[20].mxu1 }
 0x46b   :  { %v2897_v34 = vadd.f32 %v2891_v7, %v2730_v15  ;;  %v2893_v35 = vpop.f32.mrb[21].mxu1  ;;  %v5087_v7 = vld [vmem:[%s6794_s10] ss:$0 sm:$0xff] }
 0x46c   :  { %v2894_v36 = vpop.f32.mrb[22].mxu1  ;;  %v3046_v37 = vpop.f32.mrb[28].mxu0 }
 0x46d   :  { %v3052_v38 = vadd.f32 %v3046_v37, %v2897_v34  ;;  %v2895_v39 = vpop.f32.mrb[23].mxu1  ;;  %v3048_v40 = vpop.f32.mrb[29].mxu0 }
 0x46e   :  { %v3049_v41 = vpop.f32.mrb[30].mxu0  ;;  %v5496_v39 = vld [vmem:[%s6797_s13] sm:$0xff]   ;;  %v5497_v40 = vld [vmem:[%s6797_s13 + $0x8] sm:$0xff]  }
 0x46f   :  { %v3050_v42 = vpop.f32.mrb[31].mxu0  ;;  %v5088_v41 = vld [vmem:[%s6796_s12] ss:$0 sm:$0xff] }
 0x49e   :  { %v3215_v43 = vpop.f32.mrb[24].mxu1 }
 0x49f   :  { %v3221_v44 = vadd.f32 %v3215_v43, %v3052_v38  ;;  %v3217_v45 = vpop.f32.mrb[25].mxu1 }
 0x4a0   :  { %v3218_v46 = vpop.f32.mrb[26].mxu1  ;;  %v3372_v49 = vpop.f32.mrb[32].mxu0 }
 0x4a1   :  { %v3378_v50 = vadd.f32 %v3372_v49, %v3221_v44  ;;  %v3219_v51 = vpop.f32.mrb[27].mxu1  ;;  %v3374_v47 = vpop.f32.mrb[33].mxu0  ;;  %v5104_v49 = vld [vmem:[%s6796_s12 + $0x1] ss:$0 sm:$0xff] }
 0x4a2   :  { %v3375_v48 = vpop.f32.mrb[34].mxu0 }
 0x4a3   :  { %v3376_v52 = vpop.f32.mrb[35].mxu0 }
 0x4d2   :  { %v3541_v53 = vpop.f32.mrb[28].mxu1 }
 0x4d3   :  { %v3547_v54 = vadd.f32 %v3541_v53, %v3378_v50  ;;  %v3543_v55 = vpop.f32.mrb[29].mxu1  ;;  %v5498_v53 = vld [vmem:[%s6797_s13 + $0x10] sm:$0xff]  }
 0x4d4   :  { %v3544_v56 = vpop.f32.mrb[30].mxu1  ;;  %v3698_v57 = vpop.f32.mrb[36].mxu0 }
 0x4d5   :  { %v3704_v58 = vadd.f32 %v3698_v57, %v3547_v54  ;;  %v3545_v59 = vpop.f32.mrb[31].mxu1  ;;  %v3700_v60 = vpop.f32.mrb[37].mxu0  ;;  %v5499_v56 = vld [vmem:[%s6797_s13 + $0x18] sm:$0xff]  }
 0x4d6   :  { %v3701_v61 = vpop.f32.mrb[38].mxu0  ;;  %v5093_v59 = vld [vmem:[%s6798_s14] ss:$0 sm:$0xff] }
 0x4d7   :  { %v3702_v62 = vpop.f32.mrb[39].mxu0 }
 0x506   :  { %v3867_v63 = vpop.f32.mrb[32].mxu1 }
 0x507   :  { %v3873_v0 = vadd.f32 %v3867_v63, %v3704_v58  ;;  %v3869_v1 = vpop.f32.mrb[33].mxu1 }
 0x508   :  { %v3870_v2 = vpop.f32.mrb[34].mxu1  ;;  %v4024_v3 = vpop.f32.mrb[40].mxu0 }
 0x509   :  { %v4030_v5 = vadd.f32 %v4024_v3, %v3873_v0  ;;  %v3871_v6 = vpop.f32.mrb[35].mxu1  ;;  %v4026_v8 = vpop.f32.mrb[41].mxu0  ;;  %v5097_v0 = vld [vmem:[%s6799_s15] ss:$0 sm:$0xff] }
 0x50a   :  { %v4027_v9 = vpop.f32.mrb[42].mxu0 }
 0x50b   :  { %v4028_v10 = vpop.f32.mrb[43].mxu0  ;;  %v4038_v11 = vadd.f32 %v5085_v4, %v4030_v5  ;;  %v5114_v4 = vld [vmem:[%s6798_s14 + $0x1] ss:$0 sm:$0xff] }
 0x50d   :  { %v4040_v12 = vsel %vm4039_vm15, %v4038_v11, 0.0 }
 0x50e   :  { %4041 = vadd.xlane.f32.xlu0 %v4040_v12 }
 0x524   :  { %4072 = vrot.lane.b32.xlu0 %v4070_v13, %s5527_s25 }
 0x59b   :  { %v4042_v14 = vpop.xlane.xlu0 %4041 }
 0x59c   :  { %v4044_v16 = vmul.f32 0.03125, %v4042_v14 }
 0x59e   :  { %v4045_v17 = vsub.f32 %v4038_v11, %v4044_v16  ;;  %v5119_v11 = vld [vmem:[%s6799_s15 + $0x1] ss:$0 sm:$0xff] }
 0x59f   :  { %v4073_v35 = vpop.permute.xlu0 %4072 }
 0x5a0   :  { %v4046_v18 = vmul.f32 %v4045_v17, %v4045_v17 }
 0x5a2   :  { %v4047_v19 = vsel %vm4039_vm15, %v4046_v18, 0.0  ;;  %v4234_v18 = vstv %s4233_s30 }
 0x5a3   :  { %4048 = vadd.xlane.f32.xlu1 %v4047_v19  ;;  %v4392_v19 = vstv %s5120_s0 }
 0x630   :  { %v4049_v29 = vpop.xlane.xlu1 %4048 }
 0x631   :  { %v4050_v15 = vmul.f32 0.03125, %v4049_v29 }
 0x633   :  { %v4051_v30 = vadd.f32 1e-05, %v4050_v15 }
 0x635   :  { %5500 = vrsqrt.f32 %v4051_v30 }
 0x63f   :  { %v5501_v31 = vpop.eup %5500 }
 0x640   :  { %v4053_v33 = vmul.f32 %v5501_v31, %v4045_v17 }
 0x642   :  { %v4061_v34 = vmul.f32 %v5086_v32, %v4053_v33 }
 0x644   :  { %v4069_v36 = vadd.f32 %v5087_v7, %v4061_v34 }
 0x646   :  { %v4076_v37 = vsel %vm4075_vm2, %v4069_v36, %v4073_v35 }
 0x647   :  { %v4077_v38 = vpack.c.bf16 %v4076_v37, %v4076_v37 }
 0x649   :  { %5142 = vmatmul.mubr.msk.bf16.vlgmr.msra.gmra.mrb[36].mxu1 %vm4105_vm3, %v4077_v38  ;;  %5160 = vmatmul.mubr.msk.bf16.vlgmr.msra.gmra.mrb[44].mxu0 %vm4105_vm3, %v4077_v38 }
 0x64a   :  { %5149 = vmatprep.mubr.msk.bf16.mxu1 %vm5529_vm1, %v5528_v22  ;;  %5146 = vmatpush3.bf16.msra.mxu1 %v5496_v39 }
 0x64b   :  { %5147 = vmatprep.subr.bf16.mxu1 %v5528_v22 }
 0x64e   :  { %5148 = vmatpush3.bf16.msra.mxu1 %v5497_v40 }
 0x64f   :  { %5163 = vmatprep.subr.bf16.mxu1 %v5528_v22 }
 0x71c   :  { %v4147_v42 = vpop.f32.mrb[36].mxu1  ;;  %v4302_v43 = vpop.f32.mrb[44].mxu0 }
 0x71d   :  { %v4148_v44 = vadd.f32 %v5088_v41, %v4147_v42  ;;  %v5143_v45 = vpop.f32.mrb[37].mxu1  ;;  %v5161_v46 = vpop.f32.mrb[45].mxu0  ;;  %v4303_v55 = vadd.f32 %v5104_v49, %v4302_v43 }
 0x71e   :  { %v4150_v50 = vpop.f32.mrb[38].mxu1  ;;  %v4305_v51 = vpop.f32.mrb[46].mxu0 }
 0x71f   :  { %v4153_v47 = vmax.f32 %v4148_v44, 0.0  ;;  %v5144_v48 = vpop.f32.mrb[39].mxu1  ;;  %v5162_v52 = vpop.f32.mrb[47].mxu0  ;;  %v4308_v57 = vmax.f32 %v4303_v55, 0.0 }
 0x721   :  { %v4154_v54 = vpack.c.bf16 %v4153_v47, %v4153_v47  ;;  %v4309_v58 = vpack.c.bf16 %v4308_v57, %v4308_v57 }
 0x723   :  { %5150 = vmatmul.mubr.msk.bf16.vlgmr.msra.gmra.mrb[40].mxu1 %vm4075_vm2, %v4154_v54 }
 0x724   :  { %5164 = vmatpush3.bf16.msra.mxu1 %v5498_v53  ;;  %5167 = vmatprep.mubr.msk.bf16.mxu1 %vm5529_vm1, %v5528_v22 }
 0x725   :  { %5165 = vmatprep.subr.bf16.mxu1 %v5528_v22 }
 0x728   :  { %5166 = vmatpush3.bf16.msra.mxu1 %v5499_v56 }
 0x72b   :  { %5168 = vmatmul.mubr.msk.bf16.vlgmr.msra.gmra.mrb[44].mxu1 %vm4075_vm2, %v4309_v58 }
 0x7f6   :  { %v4215_v60 = vpop.f32.mrb[40].mxu1 }
 0x7f7   :  { %v4216_v61 = vadd.f32 %v5093_v59, %v4215_v60  ;;  %v5151_v62 = vpop.f32.mrb[41].mxu1 }
 0x7f8   :  { %v4218_v63 = vpop.f32.mrb[42].mxu1 }
 0x7f9   :  { %v4221_v1 = vmax.f32 %v4216_v61, 0.0  ;;  %v5152_v2 = vpop.f32.mrb[43].mxu1 }
 0x7fb   :  { %v4229_v3 = vmul.f32 %v5097_v0, %v4221_v1 }
 0x7fd   :  { %v4230_v5 = vsel %vm4039_vm15, %v4229_v3, 0.0 }
 0x7fe   :  { %4231 = vadd.xlane.f32.xlu1 %v4230_v5  ;;  %v4372_v6 = vpop.f32.mrb[44].mxu1 }
 0x7ff   :  { %v4373_v8 = vadd.f32 %v5114_v4, %v4372_v6  ;;  %v5169_v9 = vpop.f32.mrb[45].mxu1 }
 0x800   :  { %v4375_v10 = vpop.f32.mrb[46].mxu1 }
 0x801   :  { %v4378_v12 = vmax.f32 %v4373_v8, 0.0  ;;  %v5170_v13 = vpop.f32.mrb[47].mxu1 }
 0x803   :  { %v4387_v14 = vmul.f32 %v5119_v11, %v4378_v12 }
 0x805   :  { %v4388_v16 = vsel %vm4039_vm15, %v4387_v14, 0.0 }
 0x806   :  { %4389 = vadd.xlane.f32.xlu1 %v4388_v16 }
 0x88b   :  { %v4232_v17 = vpop.xlane.xlu1 %4231 }
 0x88c   :  { %v4235_v21 = vadd.f32 %v4234_v18, %v4232_v17 }
 0x893   :  { %v4390_v20 = vpop.xlane.xlu1 %4389 }
 0x894   :  { %v4393_v22 = vadd.f32 %v4392_v19, %v4390_v20 }
 0x896   :  { %v4395_v23 = vsel %vm4394_vm4, %v4235_v21, %v4393_v22 }
 0x897   :  { %4397 = vst.msk [vmem:[%s6800_s16] sm:$0x3] %vm4396_vm5, %v4395_v23 }
 0x898   :  { %4402 = vsyncpa [#allocation4], 1 }

</bundles_post_ra>
